<compile_context>
chip_gen: v5e
topology: v5e:2x2
jax: 0.10.0
libtpu: 0.0.40
codegen_flags: <defaults>
</compile_context>

<pallas_src>
import jax
import jax.numpy as jnp
from jax import lax
from jax.experimental import pallas as pl
from jax.experimental.pallas import tpu as pltpu

IN_FEATURES = 2048
EMB_SIZE = 512
NUM_CLASSES = 480
NUM_CLASSES_PADDED = 512   # lane-dense output (multiple of 128)
EPS = 1e-12                # F.normalize default eps


def momento_head_kernel(x_ref, w_emb_ref, w_cls_ref, out_ref):
    # x_ref:     (TB, 2048)       VMEM
    # w_emb_ref: (2048, 512)      VMEM (constant across grid)
    # w_cls_ref: (512, 512)       VMEM (constant across grid, zero-padded cols)
    # out_ref:   (TB, 512)  f32   VMEM
    x = x_ref[...]

    # embedding = x @ W_emb (no bias) -> (TB, 512), MXU with f32 accumulation
    emb = jnp.dot(x, w_emb_ref[...], preferred_element_type=jnp.float32)

    # L2 normalize along features:  emb / max(||emb||_2, eps)
    #   == emb * rsqrt(max(sum(emb^2), eps^2))   (rsqrt runs on the EUP slot)
    sq = jnp.sum(emb * emb, axis=1, keepdims=True)
    inv = lax.rsqrt(jnp.maximum(sq, EPS * EPS))
    emb_n = (emb * inv).astype(w_cls_ref.dtype)

    # logits = emb_n @ W_cls (no bias) -> (TB, 512) lane-dense store
    out_ref[...] = jnp.dot(
        emb_n, w_cls_ref[...], preferred_element_type=jnp.float32
    ).astype(out_ref.dtype)


def momento_head(x, w_emb_t, w_cls_t, *, tile_b=256, compute_dtype=jnp.float32):
    """x: (B, 2048); w_emb_t: (2048, 512); w_cls_t: (512, 480). Returns (B, 480) f32."""
    B, F = x.shape
    assert F == IN_FEATURES
    assert w_emb_t.shape == (IN_FEATURES, EMB_SIZE)
    assert w_cls_t.shape == (EMB_SIZE, NUM_CLASSES)

    # Lane-dense classifier: zero-pad 480 -> 512 output columns (sliced off below).
    w_cls_p = jnp.pad(w_cls_t, ((0, 0), (0, NUM_CLASSES_PADDED - NUM_CLASSES)))

    # Batch tile: one step for small B (rounded up to sublane multiple of 8),
    # otherwise full 256-row MXU tiles; pad B with zero rows (zero rows normalize
    # to zero and are sliced off, so they never produce NaNs).
    if B <= tile_b:
        tb = max(8, ((B + 7) // 8) * 8)
    else:
        tb = tile_b
    B_pad = pl.cdiv(B, tb) * tb
    x_p = x if B_pad == B else jnp.pad(x, ((0, B_pad - B), (0, 0)))

    x_p = x_p.astype(compute_dtype)
    w_emb = w_emb_t.astype(compute_dtype)
    w_cls_p = w_cls_p.astype(compute_dtype)

    # Explicit scoped-VMEM budget: double-buffered x/out tiles + both weights + slack.
    itemsize = jnp.dtype(compute_dtype).itemsize
    vmem_bytes = 2 * itemsize * (
        tb * IN_FEATURES
        + IN_FEATURES * EMB_SIZE
        + EMB_SIZE * NUM_CLASSES_PADDED
    ) + 2 * 4 * tb * NUM_CLASSES_PADDED + (6 << 20)
    vmem_limit = int(min(max(vmem_bytes, 16 << 20), 48 << 20))

    grid = (B_pad // tb,)
    out = pl.pallas_call(
        momento_head_kernel,
        out_shape=jax.ShapeDtypeStruct((B_pad, NUM_CLASSES_PADDED), jnp.float32),
        grid_spec=pltpu.PrefetchScalarGridSpec(
            num_scalar_prefetch=0,
            grid=grid,
            in_specs=[
                pl.BlockSpec((tb, IN_FEATURES), lambda i: (i, 0)),
                # Constant index_map -> weights are DMA'd once and stay resident.
                pl.BlockSpec((IN_FEATURES, EMB_SIZE), lambda i: (0, 0)),
                pl.BlockSpec((EMB_SIZE, NUM_CLASSES_PADDED), lambda i: (0, 0)),
            ],
            out_specs=pl.BlockSpec((tb, NUM_CLASSES_PADDED), lambda i: (i, 0)),
        ),
        compiler_params=pltpu.CompilerParams(
            dimension_semantics=("parallel",),   # batch steps shard across TCs (v7x)
            vmem_limit_bytes=vmem_limit,
        ),
    )(x_p, w_emb, w_cls_p)

    return out[:B, :NUM_CLASSES]


def reference_head(x, w_emb_t, w_cls_t):
    emb = x @ w_emb_t
    norm = jnp.sqrt(jnp.sum(emb * emb, axis=1, keepdims=True))
    emb = emb / jnp.maximum(norm, EPS)
    return emb @ w_cls_t


if __name__ == "__main__":
    key = jax.random.PRNGKey(0)
    kx, ke, kc = jax.random.split(key, 3)

    B = 8
    # "pooled ResNet50 features" stand-in (use_backbone=False path)
    x = jax.random.normal(kx, (B, IN_FEATURES), dtype=jnp.float32)

    # nn.Linear-style uniform(-1/sqrt(fan_in), +) init, stored pre-transposed
    # as (in_features, out_features).
    bound_e = 1.0 / (IN_FEATURES ** 0.5)
    w_emb_t = jax.random.uniform(
        ke, (IN_FEATURES, EMB_SIZE), dtype=jnp.float32,
        minval=-bound_e, maxval=bound_e)
    bound_c = 1.0 / (EMB_SIZE ** 0.5)
    w_cls_t = jax.random.uniform(
        kc, (EMB_SIZE, NUM_CLASSES), dtype=jnp.float32,
        minval=-bound_c, maxval=bound_c)

    logits = momento_head(x, w_emb_t, w_cls_t)
    logits = jax.block_until_ready(logits)

    ref = reference_head(x, w_emb_t, w_cls_t)
    assert logits.shape == (B, NUM_CLASSES)
    assert jnp.allclose(logits, ref, atol=1e-4, rtol=1e-4), "mismatch vs reference"

    print("KERNEL_OK")
</pallas_src>

<mosaic_0001>
module attributes {stable_mosaic.version = 11 : i64} {
  func.func @momento_head_kernel(%arg0: i32, %arg1: memref<8x2048xf32, #tpu.memory_space<vmem>>, %arg2: memref<2048x512xf32, #tpu.memory_space<vmem>>, %arg3: memref<512x512xf32, #tpu.memory_space<vmem>>, %arg4: memref<8x512xf32, #tpu.memory_space<vmem>>) attributes {dimension_semantics = [#tpu.dimension_semantics<parallel>], iteration_bounds = array<i64: 1>, scalar_prefetch = 0 : i64, scratch_operands = 0 : i64, tpu.core_type = #tpu.core_type<tc>, window_params = [{transform_indices = @transform_0, window_bounds = array<i64: 8, 2048>}, {pipeline_mode = #tpu.pipeline_mode<synchronous>, transform_indices = @transform_1, window_bounds = array<i64: 2048, 512>}, {pipeline_mode = #tpu.pipeline_mode<synchronous>, transform_indices = @transform_2, window_bounds = array<i64: 512, 512>}, {transform_indices = @transform_3, window_bounds = array<i64: 8, 512>}]} {
    %c0 = arith.constant 0 : index
    %c0_0 = arith.constant 0 : index
    %0 = vector.load %arg1[%c0, %c0_0] : memref<8x2048xf32, #tpu.memory_space<vmem>>, vector<8x2048xf32>
    %c0_1 = arith.constant 0 : index
    %c0_2 = arith.constant 0 : index
    %1 = vector.load %arg2[%c0_1, %c0_2] : memref<2048x512xf32, #tpu.memory_space<vmem>>, vector<2048x512xf32>
    %cst = arith.constant dense<0.000000e+00> : vector<8x512xf32>
    %2 = tpu.matmul %0, %1, %cst {dimension_numbers = #tpu.dot_dimension_numbers<[1], [0], [0], [1], [0, 0, 1, 1], [], []>} : vector<8x2048xf32>, vector<2048x512xf32>, vector<8x512xf32> -> vector<8x512xf32>
    %3 = arith.mulf %2, %2 : vector<8x512xf32>
    %cst_3 = arith.constant dense<0.000000e+00> : vector<8xf32>
    %4 = vector.multi_reduction <add>, %3, %cst_3 [1] : vector<8x512xf32> to vector<8xf32>
    %5 = vector.shape_cast %4 : vector<8xf32> to vector<8x1xf32>
    %cst_4 = arith.constant 1.000000e-24 : f32
    %6 = vector.broadcast %cst_4 : f32 to vector<8x1xf32>
    %7 = arith.maximumf %5, %6 : vector<8x1xf32>
    %8 = math.rsqrt %7 : vector<8x1xf32>
    %9 = vector.broadcast %8 : vector<8x1xf32> to vector<8x512xf32>
    %10 = arith.mulf %2, %9 : vector<8x512xf32>
    %c0_5 = arith.constant 0 : index
    %c0_6 = arith.constant 0 : index
    %11 = vector.load %arg3[%c0_5, %c0_6] : memref<512x512xf32, #tpu.memory_space<vmem>>, vector<512x512xf32>
    %cst_7 = arith.constant dense<0.000000e+00> : vector<8x512xf32>
    %12 = tpu.matmul %10, %11, %cst_7 {dimension_numbers = #tpu.dot_dimension_numbers<[1], [0], [0], [1], [0, 0, 1, 1], [], []>} : vector<8x512xf32>, vector<512x512xf32>, vector<8x512xf32> -> vector<8x512xf32>
    %c0_8 = arith.constant 0 : index
    %c0_9 = arith.constant 0 : index
    %13 = vector.load %arg4[%c0_8, %c0_9] : memref<8x512xf32, #tpu.memory_space<vmem>>, vector<8x512xf32>
    tpu.vector_store %arg4[%c0_8, %c0_9], %12 {strides = array<i32>} : memref<8x512xf32, #tpu.memory_space<vmem>>, vector<8x512xf32>,
    return
  }
  func.func @transform_0(%arg0: i32) -> (i32, i32) {
    %c0_i32 = arith.constant 0 : i32
    %c0_i32_0 = arith.constant 0 : i32
    return %arg0, %c0_i32 : i32, i32
  }
  func.func @transform_1(%arg0: i32) -> (i32, i32) {
    %c0_i32 = arith.constant 0 : i32
    %c0_i32_0 = arith.constant 0 : i32
    %c0_i32_1 = arith.constant 0 : i32
    return %c0_i32, %c0_i32_0 : i32, i32
  }
  func.func @transform_2(%arg0: i32) -> (i32, i32) {
    %c0_i32 = arith.constant 0 : i32
    %c0_i32_0 = arith.constant 0 : i32
    %c0_i32_1 = arith.constant 0 : i32
    return %c0_i32, %c0_i32_0 : i32, i32
  }
  func.func @transform_3(%arg0: i32) -> (i32, i32) {
    %c0_i32 = arith.constant 0 : i32
    %c0_i32_0 = arith.constant 0 : i32
    return %arg0, %c0_i32 : i32, i32
  }
}

</mosaic_0001>

<bundles_post_ra>
// kernel: tpu_custom_call.1
= control target key start
LH: loop header
LB: loop body
LE: loop exit
PB: predicated region body
PF: predicated region fallthrough
CT: control target
= control target key end

     0   :  { %8 = vsyncpa [#allocation3], 0  ;;  %s3278_s0 = inlined_call_operand.hbm [shape: f32[8,2048], index: 0, kind: input, shape index: {}]   ;;  %s3279_s1 = inlined_call_operand.hbm [shape: f32[2048,512], index: 1, kind: input, shape index: {}]   ;;  %s3280_s2 = inlined_call_operand.hbm [shape: f32[512,512], index: 2, kind: input, shape index: {}]   ;;  %s3281_s3 = inlined_call_operand.hbm [shape: f32[8,512], index: 3, kind: output, shape index: {}]  }
   0x1   :  { %9 = vsyncpa [#allocation6], 0  ;;  %s26_s14 = sshll.u32 %s3279_s1, 4  ;;  %s27_s14 = int_to_ptr.hbm [resolvable:$true] %s26_s14 }
   0x2   :  { %10 = vsyncpa [#allocation4], 0  ;;  %s3160_s15 = smov [#allocation5]   ;;  %s16_s19 = sshll.u32 %s3278_s0, 4  ;;  %s17_s19 = int_to_ptr.hbm [resolvable:$true] %s16_s19 }
   0x3   :  { %s28_s16 = sshll.u32 %s3160_s15, 4  ;;  %s3161_s20 = smov 512   ;;  %s29_s16 = int_to_ptr.vmem [resolvable:$true] %s28_s16 }
   0x4   :  { %s3162_s21 = smov 32   ;;  %s3163_s22 = smov [#allocation2]  }
   0x5   :  { %34 = dma.hbm_to_vmem [thread:$0]  %s27_s14, 131072, %s29_s16, [#allocation6], %s3161_s20, %s3161_s20, %s3162_s21  }
   0x6   :  { %s18_s23 = sshll.u32 %s3163_s22, 4  ;;  %s39_s26 = sshll.u32 %s3280_s2, 4  ;;  %s19_s23 = int_to_ptr.vmem [resolvable:$true] %s18_s23  ;;  %s40_s26 = int_to_ptr.hbm [resolvable:$true] %s39_s26 }
   0x7   :  { %21 = dma.hbm_to_vmem [thread:$0]  %s17_s19, 2048, %s19_s23, [#allocation3]  }
   0x8   :  { %s3164_s1 = smov [#allocation7]  }
   0x9   :  { %s41_s27 = sshll.u32 %s3164_s1, 4  ;;  %s42_s27 = int_to_ptr.vmem [resolvable:$true] %s41_s27 }
   0xa   :  { %47 = dma.hbm_to_vmem [thread:$0]  %s40_s26, 32768, %s42_s27, [#allocation6], %s3161_s20, %s3161_s20, %s3162_s21  }
   0xb   :  { %3154 = dma.done.wait [#allocation3], 2048  }
   0xc   :  { %3155 = vsyncadd [#allocation3], 4294965248 }
   0xd   :  { %3156 = dma.done.wait [#allocation6], 163840  }
   0xe   :  { %3157 = vsyncadd [#allocation6], 4294803456  ;;  %v136_v0 = vld [vmem:[#allocation5 + $0x1e0] sm:$0xff]  ;;  %s3165_s0 = smov [#allocation8]   ;;  %s2991_s30 = sshll.u32 %s3281_s3, 4  ;;  %s2992_s30 = int_to_ptr.hbm [resolvable:$true] %s2991_s30 }
   0xf   :  { %v264_v1 = vld [vmem:[#allocation5 + $0x5e0] sm:$0xff]  ;;  %1100 = vmatpush.msra.mxu0 %v136_v0  ;;  %s2989_s2 = sshll.u32 %s3165_s0, 4  ;;  %s2990_s2 = int_to_ptr.vmem [resolvable:$true] %s2989_s2 }
  0x10   :  { %v132_v2 = vld [vmem:[#allocation5 + $0x1c0] sm:$0xff]  ;;  %1140 = vmatpush.msra.mxu2 %v264_v1 }
  0x11   :  { %v200_v3 = vld [vmem:[#allocation5 + $0x3e0] sm:$0xff]  ;;  %1101 = vmatpush.msra.mxu0 %v132_v2 }
  0x12   :  { %v260_v4 = vld [vmem:[#allocation5 + $0x5c0] sm:$0xff]  ;;  %1120 = vmatpush.msra.mxu1 %v200_v3 }
  0x13   :  { %v328_v5 = vld [vmem:[#allocation5 + $0x7e0] sm:$0xff]  ;;  %1141 = vmatpush.msra.mxu2 %v260_v4 }
  0x14   :  { %1160 = vmatpush.msra.mxu3 %v328_v5  ;;  %v128_v6 = vld [vmem:[#allocation5 + $0x1a0] sm:$0xff] }
  0x15   :  { %v196_v7 = vld [vmem:[#allocation5 + $0x3c0] sm:$0xff]  ;;  %1102 = vmatpush.msra.mxu0 %v128_v6 }
  0x16   :  { %v256_v8 = vld [vmem:[#allocation5 + $0x5a0] sm:$0xff]  ;;  %1121 = vmatpush.msra.mxu1 %v196_v7 }
  0x17   :  { %v324_v9 = vld [vmem:[#allocation5 + $0x7c0] sm:$0xff]  ;;  %1142 = vmatpush.msra.mxu2 %v256_v8 }
  0x18   :  { %v192_v10 = vld [vmem:[#allocation5 + $0x3a0] sm:$0xff]  ;;  %1161 = vmatpush.msra.mxu3 %v324_v9 }
  0x19   :  { %v124_v11 = vld [vmem:[#allocation5 + $0x180] sm:$0xff]  ;;  %1122 = vmatpush.msra.mxu1 %v192_v10 }
  0x1a   :  { %v252_v12 = vld [vmem:[#allocation5 + $0x580] sm:$0xff]  ;;  %1103 = vmatpush.msra.mxu0 %v124_v11 }
  0x1b   :  { %v320_v13 = vld [vmem:[#allocation5 + $0x7a0] sm:$0xff]  ;;  %1143 = vmatpush.msra.mxu2 %v252_v12 }
  0x1c   :  { %v188_v14 = vld [vmem:[#allocation5 + $0x380] sm:$0xff]  ;;  %1162 = vmatpush.msra.mxu3 %v320_v13 }
  0x1d   :  { %v316_v15 = vld [vmem:[#allocation5 + $0x780] sm:$0xff]  ;;  %1123 = vmatpush.msra.mxu1 %v188_v14 }
  0x1e   :  { %v120_v16 = vld [vmem:[#allocation5 + $0x160] sm:$0xff]  ;;  %1163 = vmatpush.msra.mxu3 %v316_v15 }
  0x1f   :  { %v248_v17 = vld [vmem:[#allocation5 + $0x560] sm:$0xff]  ;;  %1104 = vmatpush.msra.mxu0 %v120_v16 }
  0x20   :  { %v184_v18 = vld [vmem:[#allocation5 + $0x360] sm:$0xff]  ;;  %1144 = vmatpush.msra.mxu2 %v248_v17 }
  0x21   :  { %v312_v19 = vld [vmem:[#allocation5 + $0x760] sm:$0xff]  ;;  %1124 = vmatpush.msra.mxu1 %v184_v18 }
  0x22   :  { %v116_v20 = vld [vmem:[#allocation5 + $0x140] sm:$0xff]  ;;  %1164 = vmatpush.msra.mxu3 %v312_v19 }
  0x23   :  { %v244_v21 = vld [vmem:[#allocation5 + $0x540] sm:$0xff]  ;;  %1105 = vmatpush.msra.mxu0 %v116_v20 }
  0x24   :  { %v180_v22 = vld [vmem:[#allocation5 + $0x340] sm:$0xff]  ;;  %1145 = vmatpush.msra.mxu2 %v244_v21 }
  0x25   :  { %v308_v23 = vld [vmem:[#allocation5 + $0x740] sm:$0xff]  ;;  %1125 = vmatpush.msra.mxu1 %v180_v22 }
  0x26   :  { %v112_v24 = vld [vmem:[#allocation5 + $0x120] sm:$0xff]  ;;  %1165 = vmatpush.msra.mxu3 %v308_v23 }
  0x27   :  { %v240_v25 = vld [vmem:[#allocation5 + $0x520] sm:$0xff]  ;;  %1106 = vmatpush.msra.mxu0 %v112_v24 }
  0x28   :  { %v176_v26 = vld [vmem:[#allocation5 + $0x320] sm:$0xff]  ;;  %1146 = vmatpush.msra.mxu2 %v240_v25 }
  0x29   :  { %v304_v27 = vld [vmem:[#allocation5 + $0x720] sm:$0xff]  ;;  %1126 = vmatpush.msra.mxu1 %v176_v26 }
  0x2a   :  { %v108_v28 = vld [vmem:[#allocation5 + $0x100] sm:$0xff]  ;;  %1166 = vmatpush.msra.mxu3 %v304_v27 }
  0x2b   :  { %v236_v29 = vld [vmem:[#allocation5 + $0x500] sm:$0xff]  ;;  %1107 = vmatpush.msra.mxu0 %v108_v28 }
  0x2c   :  { %v172_v30 = vld [vmem:[#allocation5 + $0x300] sm:$0xff]  ;;  %1147 = vmatpush.msra.mxu2 %v236_v29 }
  0x2d   :  { %v300_v31 = vld [vmem:[#allocation5 + $0x700] sm:$0xff]  ;;  %1127 = vmatpush.msra.mxu1 %v172_v30 }
  0x2e   :  { %v104_v32 = vld [vmem:[#allocation5 + $0xe0] sm:$0xff]  ;;  %1167 = vmatpush.msra.mxu3 %v300_v31 }
  0x2f   :  { %v232_v33 = vld [vmem:[#allocation5 + $0x4e0] sm:$0xff]  ;;  %1108 = vmatpush.msra.mxu0 %v104_v32 }
  0x30   :  { %v168_v34 = vld [vmem:[#allocation5 + $0x2e0] sm:$0xff]  ;;  %1148 = vmatpush.msra.mxu2 %v232_v33 }
  0x31   :  { %v296_v35 = vld [vmem:[#allocation5 + $0x6e0] sm:$0xff]  ;;  %1128 = vmatpush.msra.mxu1 %v168_v34 }
  0x32   :  { %v100_v36 = vld [vmem:[#allocation5 + $0xc0] sm:$0xff]  ;;  %1168 = vmatpush.msra.mxu3 %v296_v35 }
  0x33   :  { %v228_v37 = vld [vmem:[#allocation5 + $0x4c0] sm:$0xff]  ;;  %1109 = vmatpush.msra.mxu0 %v100_v36 }
  0x34   :  { %v164_v38 = vld [vmem:[#allocation5 + $0x2c0] sm:$0xff]  ;;  %1149 = vmatpush.msra.mxu2 %v228_v37 }
  0x35   :  { %v292_v39 = vld [vmem:[#allocation5 + $0x6c0] sm:$0xff]  ;;  %1129 = vmatpush.msra.mxu1 %v164_v38 }
  0x36   :  { %v96_v40 = vld [vmem:[#allocation5 + $0xa0] sm:$0xff]  ;;  %1169 = vmatpush.msra.mxu3 %v292_v39 }
  0x37   :  { %v224_v41 = vld [vmem:[#allocation5 + $0x4a0] sm:$0xff]  ;;  %1110 = vmatpush.msra.mxu0 %v96_v40 }
  0x38   :  { %v160_v42 = vld [vmem:[#allocation5 + $0x2a0] sm:$0xff]  ;;  %1150 = vmatpush.msra.mxu2 %v224_v41 }
  0x39   :  { %v288_v43 = vld [vmem:[#allocation5 + $0x6a0] sm:$0xff]  ;;  %1130 = vmatpush.msra.mxu1 %v160_v42 }
  0x3a   :  { %v92_v44 = vld [vmem:[#allocation5 + $0x80] sm:$0xff]  ;;  %1170 = vmatpush.msra.mxu3 %v288_v43 }
  0x3b   :  { %v220_v45 = vld [vmem:[#allocation5 + $0x480] sm:$0xff]  ;;  %1111 = vmatpush.msra.mxu0 %v92_v44 }
  0x3c   :  { %v156_v46 = vld [vmem:[#allocation5 + $0x280] sm:$0xff]  ;;  %1151 = vmatpush.msra.mxu2 %v220_v45 }
  0x3d   :  { %v284_v47 = vld [vmem:[#allocation5 + $0x680] sm:$0xff]  ;;  %1131 = vmatpush.msra.mxu1 %v156_v46 }
  0x3e   :  { %v88_v48 = vld [vmem:[#allocation5 + $0x60] sm:$0xff]  ;;  %1171 = vmatpush.msra.mxu3 %v284_v47 }
  0x3f   :  { %v216_v49 = vld [vmem:[#allocation5 + $0x460] sm:$0xff]  ;;  %1112 = vmatpush.msra.mxu0 %v88_v48 }
  0x40   :  { %v152_v50 = vld [vmem:[#allocation5 + $0x260] sm:$0xff]  ;;  %1152 = vmatpush.msra.mxu2 %v216_v49 }
  0x41   :  { %v280_v51 = vld [vmem:[#allocation5 + $0x660] sm:$0xff]  ;;  %1132 = vmatpush.msra.mxu1 %v152_v50 }
  0x42   :  { %v84_v52 = vld [vmem:[#allocation5 + $0x40] sm:$0xff]  ;;  %1172 = vmatpush.msra.mxu3 %v280_v51 }
  0x43   :  { %v212_v53 = vld [vmem:[#allocation5 + $0x440] sm:$0xff]  ;;  %1113 = vmatpush.msra.mxu0 %v84_v52 }
  0x44   :  { %v148_v54 = vld [vmem:[#allocation5 + $0x240] sm:$0xff]  ;;  %1153 = vmatpush.msra.mxu2 %v212_v53 }
  0x45   :  { %v276_v55 = vld [vmem:[#allocation5 + $0x640] sm:$0xff]  ;;  %1133 = vmatpush.msra.mxu1 %v148_v54 }
  0x46   :  { %v80_v56 = vld [vmem:[#allocation5 + $0x20] sm:$0xff]  ;;  %1173 = vmatpush.msra.mxu3 %v276_v55 }
  0x47   :  { %v208_v57 = vld [vmem:[#allocation5 + $0x420] sm:$0xff]  ;;  %1114 = vmatpush.msra.mxu0 %v80_v56 }
  0x48   :  { %v144_v58 = vld [vmem:[#allocation5 + $0x220] sm:$0xff]  ;;  %1154 = vmatpush.msra.mxu2 %v208_v57 }
  0x49   :  { %v272_v59 = vld [vmem:[#allocation5 + $0x620] sm:$0xff]  ;;  %1134 = vmatpush.msra.mxu1 %v144_v58  ;;  %v62_v58 = vld [vmem:[#allocation2 + $0x10] sm:$0xff] }
  0x4a   :  { %v76_v60 = vld [vmem:[#allocation5] sm:$0xff]  ;;  %1174 = vmatpush.msra.mxu3 %v272_v59 }
  0x4b   :  { %v204_v61 = vld [vmem:[#allocation5 + $0x400] sm:$0xff]  ;;  %1115 = vmatpush.msra.mxu0 %v76_v60 }
  0x4c   :  { %v392_v62 = vld [vmem:[#allocation5 + $0x9e0] sm:$0xff]  ;;  %1155 = vmatpush.msra.mxu2 %v204_v61 }
  0x4d   :  { %v520_v63 = vld [vmem:[#allocation5 + $0xde0] sm:$0xff]  ;;  %1180 = vmatpush.msrb.mxu0 %v392_v62  ;;  %1156 = vmatmul.f32.vlgmr.msra.gmra.mxu2 %v62_v58 }
  0x4e   :  { %v140_v0 = vld [vmem:[#allocation5 + $0x200] sm:$0xff]  ;;  %1220 = vmatpush.msrb.mxu2 %v520_v63 }
  0x4f   :  { %v268_v1 = vld [vmem:[#allocation5 + $0x600] sm:$0xff]  ;;  %1135 = vmatpush.msra.mxu1 %v140_v0  ;;  %v63_v0 = vld [vmem:[#allocation2 + $0x18] sm:$0xff] }
  0x50   :  { %v388_v2 = vld [vmem:[#allocation5 + $0x9c0] sm:$0xff]  ;;  %1175 = vmatpush.msra.mxu3 %v268_v1 }
  0x51   :  { %v456_v3 = vld [vmem:[#allocation5 + $0xbe0] sm:$0xff]  ;;  %1181 = vmatpush.msrb.mxu0 %v388_v2  ;;  %1176 = vmatmul.f32.vlgmr.msra.gmra.mxu3 %v63_v0 }
  0x52   :  { %v516_v4 = vld [vmem:[#allocation5 + $0xdc0] sm:$0xff]  ;;  %1200 = vmatpush.msrb.mxu1 %v456_v3 }
  0x53   :  { %v584_v5 = vld [vmem:[#allocation5 + $0xfe0] sm:$0xff]  ;;  %1221 = vmatpush.msrb.mxu2 %v516_v4 }
  0x54   :  { %v384_v6 = vld [vmem:[#allocation5 + $0x9a0] sm:$0xff]  ;;  %1240 = vmatpush.msrb.mxu3 %v584_v5  ;;  %v61_v5 = vld [vmem:[#allocation2 + $0x8] sm:$0xff] }
  0x55   :  { %v452_v7 = vld [vmem:[#allocation5 + $0xbc0] sm:$0xff]  ;;  %1182 = vmatpush.msrb.mxu0 %v384_v6  ;;  %1136 = vmatmul.f32.vlgmr.msra.gmra.mxu1 %v61_v5 }
  0x56   :  { %v512_v8 = vld [vmem:[#allocation5 + $0xda0] sm:$0xff]  ;;  %1201 = vmatpush.msrb.mxu1 %v452_v7 }
  0x57   :  { %v580_v9 = vld [vmem:[#allocation5 + $0xfc0] sm:$0xff]  ;;  %1222 = vmatpush.msrb.mxu2 %v512_v8 }
  0x58   :  { %v380_v10 = vld [vmem:[#allocation5 + $0x980] sm:$0xff]  ;;  %1241 = vmatpush.msrb.mxu3 %v580_v9 }
  0x59   :  { %v448_v11 = vld [vmem:[#allocation5 + $0xba0] sm:$0xff]  ;;  %1183 = vmatpush.msrb.mxu0 %v380_v10 }
  0x5a   :  { %v508_v12 = vld [vmem:[#allocation5 + $0xd80] sm:$0xff]  ;;  %1202 = vmatpush.msrb.mxu1 %v448_v11 }
  0x5b   :  { %v576_v13 = vld [vmem:[#allocation5 + $0xfa0] sm:$0xff]  ;;  %1223 = vmatpush.msrb.mxu2 %v508_v12 }
  0x5c   :  { %v376_v14 = vld [vmem:[#allocation5 + $0x960] sm:$0xff]  ;;  %1242 = vmatpush.msrb.mxu3 %v576_v13 }
  0x5d   :  { %v444_v15 = vld [vmem:[#allocation5 + $0xb80] sm:$0xff]  ;;  %1184 = vmatpush.msrb.mxu0 %v376_v14  ;;  %v66_v14 = vld [vmem:[#allocation2 + $0x30] sm:$0xff] }
  0x5e   :  { %v504_v16 = vld [vmem:[#allocation5 + $0xd60] sm:$0xff]  ;;  %1203 = vmatpush.msrb.mxu1 %v444_v15 }
  0x5f   :  { %v572_v17 = vld [vmem:[#allocation5 + $0xf80] sm:$0xff]  ;;  %1224 = vmatpush.msrb.mxu2 %v504_v16 }
  0x60   :  { %v372_v18 = vld [vmem:[#allocation5 + $0x940] sm:$0xff]  ;;  %1243 = vmatpush.msrb.mxu3 %v572_v17 }
  0x61   :  { %v440_v19 = vld [vmem:[#allocation5 + $0xb60] sm:$0xff]  ;;  %1185 = vmatpush.msrb.mxu0 %v372_v18 }
  0x62   :  { %v500_v20 = vld [vmem:[#allocation5 + $0xd40] sm:$0xff]  ;;  %1204 = vmatpush.msrb.mxu1 %v440_v19 }
  0x63   :  { %v568_v21 = vld [vmem:[#allocation5 + $0xf60] sm:$0xff]  ;;  %1225 = vmatpush.msrb.mxu2 %v500_v20  ;;  %v67_v20 = vld [vmem:[#allocation2 + $0x38] sm:$0xff] }
  0x64   :  { %v368_v22 = vld [vmem:[#allocation5 + $0x920] sm:$0xff]  ;;  %1244 = vmatpush.msrb.mxu3 %v568_v21 }
  0x65   :  { %v436_v23 = vld [vmem:[#allocation5 + $0xb40] sm:$0xff]  ;;  %1186 = vmatpush.msrb.mxu0 %v368_v22 }
  0x66   :  { %v496_v24 = vld [vmem:[#allocation5 + $0xd20] sm:$0xff]  ;;  %1205 = vmatpush.msrb.mxu1 %v436_v23 }
  0x67   :  { %v564_v25 = vld [vmem:[#allocation5 + $0xf40] sm:$0xff]  ;;  %1226 = vmatpush.msrb.mxu2 %v496_v24 }
  0x68   :  { %v364_v26 = vld [vmem:[#allocation5 + $0x900] sm:$0xff]  ;;  %1245 = vmatpush.msrb.mxu3 %v564_v25  ;;  %v65_v25 = vld [vmem:[#allocation2 + $0x28] sm:$0xff] }
  0x69   :  { %v432_v27 = vld [vmem:[#allocation5 + $0xb20] sm:$0xff]  ;;  %1187 = vmatpush.msrb.mxu0 %v364_v26 }
  0x6a   :  { %v492_v28 = vld [vmem:[#allocation5 + $0xd00] sm:$0xff]  ;;  %1206 = vmatpush.msrb.mxu1 %v432_v27 }
  0x6b   :  { %v560_v29 = vld [vmem:[#allocation5 + $0xf20] sm:$0xff]  ;;  %1227 = vmatpush.msrb.mxu2 %v492_v28 }
  0x6c   :  { %v360_v30 = vld [vmem:[#allocation5 + $0x8e0] sm:$0xff]  ;;  %1246 = vmatpush.msrb.mxu3 %v560_v29 }
  0x6d   :  { %v428_v31 = vld [vmem:[#allocation5 + $0xb00] sm:$0xff]  ;;  %1188 = vmatpush.msrb.mxu0 %v360_v30 }
  0x6e   :  { %v488_v32 = vld [vmem:[#allocation5 + $0xce0] sm:$0xff]  ;;  %1207 = vmatpush.msrb.mxu1 %v428_v31 }
  0x6f   :  { %v556_v33 = vld [vmem:[#allocation5 + $0xf00] sm:$0xff]  ;;  %1228 = vmatpush.msrb.mxu2 %v488_v32 }
  0x70   :  { %v356_v34 = vld [vmem:[#allocation5 + $0x8c0] sm:$0xff]  ;;  %1247 = vmatpush.msrb.mxu3 %v556_v33 }
  0x71   :  { %v424_v35 = vld [vmem:[#allocation5 + $0xae0] sm:$0xff]  ;;  %1189 = vmatpush.msrb.mxu0 %v356_v34 }
  0x72   :  { %v484_v36 = vld [vmem:[#allocation5 + $0xcc0] sm:$0xff]  ;;  %1208 = vmatpush.msrb.mxu1 %v424_v35 }
  0x73   :  { %v552_v37 = vld [vmem:[#allocation5 + $0xee0] sm:$0xff]  ;;  %1229 = vmatpush.msrb.mxu2 %v484_v36 }
  0x74   :  { %v352_v38 = vld [vmem:[#allocation5 + $0x8a0] sm:$0xff]  ;;  %1248 = vmatpush.msrb.mxu3 %v552_v37 }
  0x75   :  { %v420_v39 = vld [vmem:[#allocation5 + $0xac0] sm:$0xff]  ;;  %1190 = vmatpush.msrb.mxu0 %v352_v38 }
  0x76   :  { %v480_v40 = vld [vmem:[#allocation5 + $0xca0] sm:$0xff]  ;;  %1209 = vmatpush.msrb.mxu1 %v420_v39 }
  0x77   :  { %v548_v41 = vld [vmem:[#allocation5 + $0xec0] sm:$0xff]  ;;  %1230 = vmatpush.msrb.mxu2 %v480_v40 }
  0x78   :  { %v348_v42 = vld [vmem:[#allocation5 + $0x880] sm:$0xff]  ;;  %1249 = vmatpush.msrb.mxu3 %v548_v41 }
  0x79   :  { %v416_v43 = vld [vmem:[#allocation5 + $0xaa0] sm:$0xff]  ;;  %1191 = vmatpush.msrb.mxu0 %v348_v42 }
  0x7a   :  { %v476_v44 = vld [vmem:[#allocation5 + $0xc80] sm:$0xff]  ;;  %1210 = vmatpush.msrb.mxu1 %v416_v43 }
  0x7b   :  { %v544_v45 = vld [vmem:[#allocation5 + $0xea0] sm:$0xff]  ;;  %1231 = vmatpush.msrb.mxu2 %v476_v44 }
  0x7c   :  { %v344_v46 = vld [vmem:[#allocation5 + $0x860] sm:$0xff]  ;;  %1250 = vmatpush.msrb.mxu3 %v544_v45 }
  0x7d   :  { %v412_v47 = vld [vmem:[#allocation5 + $0xa80] sm:$0xff]  ;;  %1192 = vmatpush.msrb.mxu0 %v344_v46 }
  0x7e   :  { %v472_v48 = vld [vmem:[#allocation5 + $0xc60] sm:$0xff]  ;;  %1211 = vmatpush.msrb.mxu1 %v412_v47 }
  0x7f   :  { %v540_v49 = vld [vmem:[#allocation5 + $0xe80] sm:$0xff]  ;;  %1232 = vmatpush.msrb.mxu2 %v472_v48 }
  0x80   :  { %v340_v50 = vld [vmem:[#allocation5 + $0x840] sm:$0xff]  ;;  %1251 = vmatpush.msrb.mxu3 %v540_v49 }
  0x81   :  { %v408_v51 = vld [vmem:[#allocation5 + $0xa60] sm:$0xff]  ;;  %1193 = vmatpush.msrb.mxu0 %v340_v50 }
  0x82   :  { %v468_v52 = vld [vmem:[#allocation5 + $0xc40] sm:$0xff]  ;;  %1212 = vmatpush.msrb.mxu1 %v408_v51 }
  0x83   :  { %v536_v53 = vld [vmem:[#allocation5 + $0xe60] sm:$0xff]  ;;  %1233 = vmatpush.msrb.mxu2 %v468_v52 }
  0x84   :  { %v336_v54 = vld [vmem:[#allocation5 + $0x820] sm:$0xff]  ;;  %1252 = vmatpush.msrb.mxu3 %v536_v53 }
  0x85   :  { %v404_v55 = vld [vmem:[#allocation5 + $0xa40] sm:$0xff]  ;;  %1194 = vmatpush.msrb.mxu0 %v336_v54 }
  0x86   :  { %v464_v56 = vld [vmem:[#allocation5 + $0xc20] sm:$0xff]  ;;  %1213 = vmatpush.msrb.mxu1 %v404_v55 }
  0x87   :  { %v532_v57 = vld [vmem:[#allocation5 + $0xe40] sm:$0xff]  ;;  %1234 = vmatpush.msrb.mxu2 %v464_v56 }
  0x88   :  { %v332_v59 = vld [vmem:[#allocation5 + $0x800] sm:$0xff]  ;;  %1253 = vmatpush.msrb.mxu3 %v532_v57 }
  0x89   :  { %v400_v60 = vld [vmem:[#allocation5 + $0xa20] sm:$0xff]  ;;  %1195 = vmatpush.msrb.mxu0 %v332_v59 }
  0x8a   :  { %v460_v61 = vld [vmem:[#allocation5 + $0xc00] sm:$0xff]  ;;  %1214 = vmatpush.msrb.mxu1 %v400_v60 }
  0x8b   :  { %v528_v62 = vld [vmem:[#allocation5 + $0xe20] sm:$0xff]  ;;  %1235 = vmatpush.msrb.mxu2 %v460_v61 }
  0x8c   :  { %v60_v63 = vld [vmem:[#allocation2] sm:$0xff]  ;;  %1254 = vmatpush.msrb.mxu3 %v528_v62  ;;  %1236 = vmatmul.f32.vlgmr.msrb.gmra.mxu2 %v66_v14 }
  0x8d   :  { %v648_v1 = vld [vmem:[#allocation5 + $0x11e0] sm:$0xff]  ;;  %1116 = vmatmul.f32.vlgmr.msra.gmra.mxu0 %v60_v63 }
  0x8e   :  { %v776_v2 = vld [vmem:[#allocation5 + $0x15e0] sm:$0xff]  ;;  %1260 = vmatpush.msra.mxu0 %v648_v1 }
  0x8f   :  { %v396_v3 = vld [vmem:[#allocation5 + $0xa00] sm:$0xff]  ;;  %1300 = vmatpush.msra.mxu2 %v776_v2 }
  0x90   :  { %v524_v4 = vld [vmem:[#allocation5 + $0xe00] sm:$0xff]  ;;  %1215 = vmatpush.msrb.mxu1 %v396_v3 }
  0x91   :  { %v644_v6 = vld [vmem:[#allocation5 + $0x11c0] sm:$0xff]  ;;  %1255 = vmatpush.msrb.mxu3 %v524_v4  ;;  %1216 = vmatmul.f32.vlgmr.msrb.gmra.mxu1 %v65_v25 }
  0x92   :  { %v712_v7 = vld [vmem:[#allocation5 + $0x13e0] sm:$0xff]  ;;  %1261 = vmatpush.msra.mxu0 %v644_v6  ;;  %1256 = vmatmul.f32.vlgmr.msrb.gmra.mxu3 %v67_v20 }
  0x93   :  { %v772_v8 = vld [vmem:[#allocation5 + $0x15c0] sm:$0xff]  ;;  %1280 = vmatpush.msra.mxu1 %v712_v7  ;;  %v70_v7 = vld [vmem:[#allocation2 + $0x50] sm:$0xff] }
  0x94   :  { %v840_v9 = vld [vmem:[#allocation5 + $0x17e0] sm:$0xff]  ;;  %1301 = vmatpush.msra.mxu2 %v772_v8 }
  0x95   :  { %v640_v10 = vld [vmem:[#allocation5 + $0x11a0] sm:$0xff]  ;;  %1320 = vmatpush.msra.mxu3 %v840_v9 }
  0x96   :  { %v708_v11 = vld [vmem:[#allocation5 + $0x13c0] sm:$0xff]  ;;  %1262 = vmatpush.msra.mxu0 %v640_v10 }
  0x97   :  { %v768_v12 = vld [vmem:[#allocation5 + $0x15a0] sm:$0xff]  ;;  %1281 = vmatpush.msra.mxu1 %v708_v11 }
  0x98   :  { %v836_v13 = vld [vmem:[#allocation5 + $0x17c0] sm:$0xff]  ;;  %1302 = vmatpush.msra.mxu2 %v768_v12  ;;  %v69_v12 = vld [vmem:[#allocation2 + $0x48] sm:$0xff] }
  0x99   :  { %v636_v15 = vld [vmem:[#allocation5 + $0x1180] sm:$0xff]  ;;  %1321 = vmatpush.msra.mxu3 %v836_v13  ;;  %v71_v13 = vld [vmem:[#allocation2 + $0x58] sm:$0xff] }
  0x9a   :  { %v704_v16 = vld [vmem:[#allocation5 + $0x13a0] sm:$0xff]  ;;  %1263 = vmatpush.msra.mxu0 %v636_v15 }
  0x9b   :  { %v764_v17 = vld [vmem:[#allocation5 + $0x1580] sm:$0xff]  ;;  %1282 = vmatpush.msra.mxu1 %v704_v16 }
  0x9c   :  { %v832_v18 = vld [vmem:[#allocation5 + $0x17a0] sm:$0xff]  ;;  %1303 = vmatpush.msra.mxu2 %v764_v17 }
  0x9d   :  { %v64_v19 = vld [vmem:[#allocation2 + $0x20] sm:$0xff]  ;;  %1322 = vmatpush.msra.mxu3 %v832_v18 }
  0x9e   :  { %v632_v21 = vld [vmem:[#allocation5 + $0x1160] sm:$0xff]  ;;  %1196 = vmatmul.f32.vlgmr.msrb.gmra.mxu0 %v64_v19 }
  0x9f   :  { %v700_v22 = vld [vmem:[#allocation5 + $0x1380] sm:$0xff]  ;;  %1264 = vmatpush.msra.mxu0 %v632_v21 }
  0xa0   :  { %v760_v23 = vld [vmem:[#allocation5 + $0x1560] sm:$0xff]  ;;  %1283 = vmatpush.msra.mxu1 %v700_v22 }
  0xa1   :  { %v828_v24 = vld [vmem:[#allocation5 + $0x1780] sm:$0xff]  ;;  %1304 = vmatpush.msra.mxu2 %v760_v23 }
  0xa2   :  { %v628_v26 = vld [vmem:[#allocation5 + $0x1140] sm:$0xff]  ;;  %1323 = vmatpush.msra.mxu3 %v828_v24 }
  0xa3   :  { %v696_v27 = vld [vmem:[#allocation5 + $0x1360] sm:$0xff]  ;;  %1265 = vmatpush.msra.mxu0 %v628_v26 }
  0xa4   :  { %v756_v28 = vld [vmem:[#allocation5 + $0x1540] sm:$0xff]  ;;  %1284 = vmatpush.msra.mxu1 %v696_v27 }
  0xa5   :  { %v824_v29 = vld [vmem:[#allocation5 + $0x1760] sm:$0xff]  ;;  %1305 = vmatpush.msra.mxu2 %v756_v28 }
  0xa6   :  { %v624_v30 = vld [vmem:[#allocation5 + $0x1120] sm:$0xff]  ;;  %1324 = vmatpush.msra.mxu3 %v824_v29 }
  0xa7   :  { %v692_v31 = vld [vmem:[#allocation5 + $0x1340] sm:$0xff]  ;;  %1266 = vmatpush.msra.mxu0 %v624_v30 }
  0xa8   :  { %v752_v32 = vld [vmem:[#allocation5 + $0x1520] sm:$0xff]  ;;  %1285 = vmatpush.msra.mxu1 %v692_v31 }
  0xa9   :  { %v820_v33 = vld [vmem:[#allocation5 + $0x1740] sm:$0xff]  ;;  %1306 = vmatpush.msra.mxu2 %v752_v32 }
  0xaa   :  { %v620_v34 = vld [vmem:[#allocation5 + $0x1100] sm:$0xff]  ;;  %1325 = vmatpush.msra.mxu3 %v820_v33 }
  0xab   :  { %v688_v35 = vld [vmem:[#allocation5 + $0x1320] sm:$0xff]  ;;  %1267 = vmatpush.msra.mxu0 %v620_v34 }
  0xac   :  { %v748_v36 = vld [vmem:[#allocation5 + $0x1500] sm:$0xff]  ;;  %1286 = vmatpush.msra.mxu1 %v688_v35 }
  0xad   :  { %v816_v37 = vld [vmem:[#allocation5 + $0x1720] sm:$0xff]  ;;  %1307 = vmatpush.msra.mxu2 %v748_v36 }
  0xae   :  { %v616_v38 = vld [vmem:[#allocation5 + $0x10e0] sm:$0xff]  ;;  %1326 = vmatpush.msra.mxu3 %v816_v37 }
  0xaf   :  { %v684_v39 = vld [vmem:[#allocation5 + $0x1300] sm:$0xff]  ;;  %1268 = vmatpush.msra.mxu0 %v616_v38 }
  0xb0   :  { %v744_v40 = vld [vmem:[#allocation5 + $0x14e0] sm:$0xff]  ;;  %1287 = vmatpush.msra.mxu1 %v684_v39 }
  0xb1   :  { %v812_v41 = vld [vmem:[#allocation5 + $0x1700] sm:$0xff]  ;;  %1308 = vmatpush.msra.mxu2 %v744_v40 }
  0xb2   :  { %v612_v42 = vld [vmem:[#allocation5 + $0x10c0] sm:$0xff]  ;;  %1327 = vmatpush.msra.mxu3 %v812_v41 }
  0xb3   :  { %v680_v43 = vld [vmem:[#allocation5 + $0x12e0] sm:$0xff]  ;;  %1269 = vmatpush.msra.mxu0 %v612_v42 }
  0xb4   :  { %v740_v44 = vld [vmem:[#allocation5 + $0x14c0] sm:$0xff]  ;;  %1288 = vmatpush.msra.mxu1 %v680_v43 }
  0xb5   :  { %v808_v45 = vld [vmem:[#allocation5 + $0x16e0] sm:$0xff]  ;;  %1309 = vmatpush.msra.mxu2 %v740_v44 }
  0xb6   :  { %v608_v46 = vld [vmem:[#allocation5 + $0x10a0] sm:$0xff]  ;;  %1328 = vmatpush.msra.mxu3 %v808_v45 }
  0xb7   :  { %v676_v47 = vld [vmem:[#allocation5 + $0x12c0] sm:$0xff]  ;;  %1270 = vmatpush.msra.mxu0 %v608_v46 }
  0xb8   :  { %v736_v48 = vld [vmem:[#allocation5 + $0x14a0] sm:$0xff]  ;;  %1289 = vmatpush.msra.mxu1 %v676_v47 }
  0xb9   :  { %v804_v49 = vld [vmem:[#allocation5 + $0x16c0] sm:$0xff]  ;;  %1310 = vmatpush.msra.mxu2 %v736_v48 }
  0xba   :  { %v604_v50 = vld [vmem:[#allocation5 + $0x1080] sm:$0xff]  ;;  %1329 = vmatpush.msra.mxu3 %v804_v49 }
  0xbb   :  { %v672_v51 = vld [vmem:[#allocation5 + $0x12a0] sm:$0xff]  ;;  %1271 = vmatpush.msra.mxu0 %v604_v50 }
  0xbc   :  { %v732_v52 = vld [vmem:[#allocation5 + $0x1480] sm:$0xff]  ;;  %1290 = vmatpush.msra.mxu1 %v672_v51 }
  0xbd   :  { %v800_v53 = vld [vmem:[#allocation5 + $0x16a0] sm:$0xff]  ;;  %1311 = vmatpush.msra.mxu2 %v732_v52 }
  0xbe   :  { %v600_v54 = vld [vmem:[#allocation5 + $0x1060] sm:$0xff]  ;;  %1330 = vmatpush.msra.mxu3 %v800_v53 }
  0xbf   :  { %v668_v55 = vld [vmem:[#allocation5 + $0x1280] sm:$0xff]  ;;  %1272 = vmatpush.msra.mxu0 %v600_v54 }
  0xc0   :  { %v728_v56 = vld [vmem:[#allocation5 + $0x1460] sm:$0xff]  ;;  %1291 = vmatpush.msra.mxu1 %v668_v55 }
  0xc1   :  { %v796_v57 = vld [vmem:[#allocation5 + $0x1680] sm:$0xff]  ;;  %1312 = vmatpush.msra.mxu2 %v728_v56 }
  0xc2   :  { %v596_v58 = vld [vmem:[#allocation5 + $0x1040] sm:$0xff]  ;;  %1331 = vmatpush.msra.mxu3 %v796_v57 }
  0xc3   :  { %v664_v59 = vld [vmem:[#allocation5 + $0x1260] sm:$0xff]  ;;  %1273 = vmatpush.msra.mxu0 %v596_v58 }
  0xc4   :  { %v724_v60 = vld [vmem:[#allocation5 + $0x1440] sm:$0xff]  ;;  %1292 = vmatpush.msra.mxu1 %v664_v59 }
  0xc5   :  { %v792_v61 = vld [vmem:[#allocation5 + $0x1660] sm:$0xff]  ;;  %1313 = vmatpush.msra.mxu2 %v724_v60 }
  0xc6   :  { %v592_v62 = vld [vmem:[#allocation5 + $0x1020] sm:$0xff]  ;;  %1332 = vmatpush.msra.mxu3 %v792_v61 }
  0xc7   :  { %v660_v63 = vld [vmem:[#allocation5 + $0x1240] sm:$0xff]  ;;  %1274 = vmatpush.msra.mxu0 %v592_v62 }
  0xc8   :  { %v720_v0 = vld [vmem:[#allocation5 + $0x1420] sm:$0xff]  ;;  %1293 = vmatpush.msra.mxu1 %v660_v63 }
  0xc9   :  { %v788_v1 = vld [vmem:[#allocation5 + $0x1640] sm:$0xff]  ;;  %1314 = vmatpush.msra.mxu2 %v720_v0 }
  0xca   :  { %v588_v2 = vld [vmem:[#allocation5 + $0x1000] sm:$0xff]  ;;  %1333 = vmatpush.msra.mxu3 %v788_v1 }
  0xcb   :  { %v656_v3 = vld [vmem:[#allocation5 + $0x1220] sm:$0xff]  ;;  %1275 = vmatpush.msra.mxu0 %v588_v2 }
  0xcc   :  { %v716_v4 = vld [vmem:[#allocation5 + $0x1400] sm:$0xff]  ;;  %1294 = vmatpush.msra.mxu1 %v656_v3 }
  0xcd   :  { %v784_v5 = vld [vmem:[#allocation5 + $0x1620] sm:$0xff]  ;;  %1315 = vmatpush.msra.mxu2 %v716_v4 }
  0xce   :  { %v68_v6 = vld [vmem:[#allocation2 + $0x40] sm:$0xff]  ;;  %1334 = vmatpush.msra.mxu3 %v784_v5  ;;  %1316 = vmatmul.f32.vlgmr.msra.gmra.mxu2 %v70_v7 }
  0xcf   :  { %v904_v8 = vld [vmem:[#allocation5 + $0x19e0] sm:$0xff]  ;;  %1276 = vmatmul.f32.vlgmr.msra.gmra.mxu0 %v68_v6 }
  0xd0   :  { %v1032_v9 = vld [vmem:[#allocation5 + $0x1de0] sm:$0xff]  ;;  %1340 = vmatpush.msrb.mxu0 %v904_v8 }
  0xd1   :  { %v652_v10 = vld [vmem:[#allocation5 + $0x1200] sm:$0xff]  ;;  %1380 = vmatpush.msrb.mxu2 %v1032_v9 }
  0xd2   :  { %v780_v11 = vld [vmem:[#allocation5 + $0x1600] sm:$0xff]  ;;  %1295 = vmatpush.msra.mxu1 %v652_v10 }
  0xd3   :  { %v900_v14 = vld [vmem:[#allocation5 + $0x19c0] sm:$0xff]  ;;  %1335 = vmatpush.msra.mxu3 %v780_v11  ;;  %1296 = vmatmul.f32.vlgmr.msra.gmra.mxu1 %v69_v12  ;;  %v74_v11 = vld [vmem:[#allocation2 + $0x70] sm:$0xff]  ;;  %v137_v12 = vld [vmem:[#allocation5 + $0x1e8] sm:$0xff] }
  0xd4   :  { %v968_v15 = vld [vmem:[#allocation5 + $0x1be0] sm:$0xff]  ;;  %1336 = vmatmul.f32.vlgmr.msra.gmra.mxu3 %v71_v13  ;;  %1341 = vmatpush.msrb.mxu0 %v900_v14  ;;  %v265_v13 = vld [vmem:[#allocation5 + $0x5e8] sm:$0xff] }
  0xd5   :  { %v1028_v16 = vld [vmem:[#allocation5 + $0x1dc0] sm:$0xff]  ;;  %1360 = vmatpush.msrb.mxu1 %v968_v15 }
  0xd6   :  { %v1096_v17 = vld [vmem:[#allocation5 + $0x1fe0] sm:$0xff]  ;;  %1381 = vmatpush.msrb.mxu2 %v1028_v16  ;;  %v73_v16 = vld [vmem:[#allocation2 + $0x68] sm:$0xff] }
  0xd7   :  { %v896_v18 = vld [vmem:[#allocation5 + $0x19a0] sm:$0xff]  ;;  %1400 = vmatpush.msrb.mxu3 %v1096_v17  ;;  %v75_v17 = vld [vmem:[#allocation2 + $0x78] sm:$0xff] }
  0xd8   :  { %v964_v19 = vld [vmem:[#allocation5 + $0x1bc0] sm:$0xff]  ;;  %1342 = vmatpush.msrb.mxu0 %v896_v18  ;;  %v133_v18 = vld [vmem:[#allocation5 + $0x1c8] sm:$0xff] }
  0xd9   :  { %v1024_v20 = vld [vmem:[#allocation5 + $0x1da0] sm:$0xff]  ;;  %1361 = vmatpush.msrb.mxu1 %v964_v19  ;;  %v201_v19 = vld [vmem:[#allocation5 + $0x3e8] sm:$0xff] }
  0xda   :  { %v1092_v21 = vld [vmem:[#allocation5 + $0x1fc0] sm:$0xff]  ;;  %1382 = vmatpush.msrb.mxu2 %v1024_v20  ;;  %v261_v20 = vld [vmem:[#allocation5 + $0x5c8] sm:$0xff] }
  0xdb   :  { %v892_v22 = vld [vmem:[#allocation5 + $0x1980] sm:$0xff]  ;;  %1401 = vmatpush.msrb.mxu3 %v1092_v21  ;;  %v329_v21 = vld [vmem:[#allocation5 + $0x7e8] sm:$0xff] }
  0xdc   :  { %v960_v23 = vld [vmem:[#allocation5 + $0x1ba0] sm:$0xff]  ;;  %1343 = vmatpush.msrb.mxu0 %v892_v22  ;;  %v129_v22 = vld [vmem:[#allocation5 + $0x1a8] sm:$0xff] }
  0xdd   :  { %v1020_v24 = vld [vmem:[#allocation5 + $0x1d80] sm:$0xff]  ;;  %1362 = vmatpush.msrb.mxu1 %v960_v23  ;;  %v197_v23 = vld [vmem:[#allocation5 + $0x3c8] sm:$0xff] }
  0xde   :  { %v1088_v25 = vld [vmem:[#allocation5 + $0x1fa0] sm:$0xff]  ;;  %1383 = vmatpush.msrb.mxu2 %v1020_v24  ;;  %v257_v24 = vld [vmem:[#allocation5 + $0x5a8] sm:$0xff] }
  0xdf   :  { %v888_v26 = vld [vmem:[#allocation5 + $0x1960] sm:$0xff]  ;;  %1402 = vmatpush.msrb.mxu3 %v1088_v25  ;;  %v325_v25 = vld [vmem:[#allocation5 + $0x7c8] sm:$0xff] }
  0xe0   :  { %v956_v27 = vld [vmem:[#allocation5 + $0x1b80] sm:$0xff]  ;;  %1344 = vmatpush.msrb.mxu0 %v888_v26  ;;  %v125_v26 = vld [vmem:[#allocation5 + $0x188] sm:$0xff] }
  0xe1   :  { %v1016_v28 = vld [vmem:[#allocation5 + $0x1d60] sm:$0xff]  ;;  %1363 = vmatpush.msrb.mxu1 %v956_v27  ;;  %v193_v27 = vld [vmem:[#allocation5 + $0x3a8] sm:$0xff] }
  0xe2   :  { %v1084_v29 = vld [vmem:[#allocation5 + $0x1f80] sm:$0xff]  ;;  %1384 = vmatpush.msrb.mxu2 %v1016_v28  ;;  %v253_v28 = vld [vmem:[#allocation5 + $0x588] sm:$0xff] }
  0xe3   :  { %v884_v30 = vld [vmem:[#allocation5 + $0x1940] sm:$0xff]  ;;  %1403 = vmatpush.msrb.mxu3 %v1084_v29  ;;  %v321_v29 = vld [vmem:[#allocation5 + $0x7a8] sm:$0xff] }
  0xe4   :  { %v952_v31 = vld [vmem:[#allocation5 + $0x1b60] sm:$0xff]  ;;  %1345 = vmatpush.msrb.mxu0 %v884_v30  ;;  %v121_v30 = vld [vmem:[#allocation5 + $0x168] sm:$0xff] }
  0xe5   :  { %v1012_v32 = vld [vmem:[#allocation5 + $0x1d40] sm:$0xff]  ;;  %1364 = vmatpush.msrb.mxu1 %v952_v31  ;;  %v189_v31 = vld [vmem:[#allocation5 + $0x388] sm:$0xff] }
  0xe6   :  { %v1080_v33 = vld [vmem:[#allocation5 + $0x1f60] sm:$0xff]  ;;  %1385 = vmatpush.msrb.mxu2 %v1012_v32  ;;  %v249_v32 = vld [vmem:[#allocation5 + $0x568] sm:$0xff] }
  0xe7   :  { %v880_v34 = vld [vmem:[#allocation5 + $0x1920] sm:$0xff]  ;;  %1404 = vmatpush.msrb.mxu3 %v1080_v33  ;;  %v317_v33 = vld [vmem:[#allocation5 + $0x788] sm:$0xff] }
  0xe8   :  { %v948_v35 = vld [vmem:[#allocation5 + $0x1b40] sm:$0xff]  ;;  %1346 = vmatpush.msrb.mxu0 %v880_v34  ;;  %v117_v34 = vld [vmem:[#allocation5 + $0x148] sm:$0xff] }
  0xe9   :  { %v1008_v36 = vld [vmem:[#allocation5 + $0x1d20] sm:$0xff]  ;;  %1365 = vmatpush.msrb.mxu1 %v948_v35  ;;  %v185_v35 = vld [vmem:[#allocation5 + $0x368] sm:$0xff] }
  0xea   :  { %v1076_v37 = vld [vmem:[#allocation5 + $0x1f40] sm:$0xff]  ;;  %1386 = vmatpush.msrb.mxu2 %v1008_v36  ;;  %v245_v36 = vld [vmem:[#allocation5 + $0x548] sm:$0xff] }
  0xeb   :  { %v876_v38 = vld [vmem:[#allocation5 + $0x1900] sm:$0xff]  ;;  %1405 = vmatpush.msrb.mxu3 %v1076_v37  ;;  %v313_v37 = vld [vmem:[#allocation5 + $0x768] sm:$0xff] }
  0xec   :  { %v944_v39 = vld [vmem:[#allocation5 + $0x1b20] sm:$0xff]  ;;  %1347 = vmatpush.msrb.mxu0 %v876_v38  ;;  %v113_v38 = vld [vmem:[#allocation5 + $0x128] sm:$0xff] }
  0xed   :  { %v1004_v40 = vld [vmem:[#allocation5 + $0x1d00] sm:$0xff]  ;;  %1366 = vmatpush.msrb.mxu1 %v944_v39  ;;  %v181_v39 = vld [vmem:[#allocation5 + $0x348] sm:$0xff] }
  0xee   :  { %v1072_v41 = vld [vmem:[#allocation5 + $0x1f20] sm:$0xff]  ;;  %1387 = vmatpush.msrb.mxu2 %v1004_v40  ;;  %v241_v40 = vld [vmem:[#allocation5 + $0x528] sm:$0xff] }
  0xef   :  { %v872_v42 = vld [vmem:[#allocation5 + $0x18e0] sm:$0xff]  ;;  %1406 = vmatpush.msrb.mxu3 %v1072_v41  ;;  %v309_v41 = vld [vmem:[#allocation5 + $0x748] sm:$0xff] }
  0xf0   :  { %v940_v43 = vld [vmem:[#allocation5 + $0x1b00] sm:$0xff]  ;;  %1348 = vmatpush.msrb.mxu0 %v872_v42  ;;  %v109_v42 = vld [vmem:[#allocation5 + $0x108] sm:$0xff] }
  0xf1   :  { %v1000_v44 = vld [vmem:[#allocation5 + $0x1ce0] sm:$0xff]  ;;  %1367 = vmatpush.msrb.mxu1 %v940_v43  ;;  %v177_v43 = vld [vmem:[#allocation5 + $0x328] sm:$0xff] }
  0xf2   :  { %v1068_v45 = vld [vmem:[#allocation5 + $0x1f00] sm:$0xff]  ;;  %1388 = vmatpush.msrb.mxu2 %v1000_v44  ;;  %v237_v44 = vld [vmem:[#allocation5 + $0x508] sm:$0xff] }
  0xf3   :  { %v868_v46 = vld [vmem:[#allocation5 + $0x18c0] sm:$0xff]  ;;  %1407 = vmatpush.msrb.mxu3 %v1068_v45  ;;  %v305_v45 = vld [vmem:[#allocation5 + $0x728] sm:$0xff] }
  0xf4   :  { %v936_v47 = vld [vmem:[#allocation5 + $0x1ae0] sm:$0xff]  ;;  %1349 = vmatpush.msrb.mxu0 %v868_v46  ;;  %v105_v46 = vld [vmem:[#allocation5 + $0xe8] sm:$0xff] }
  0xf5   :  { %v996_v48 = vld [vmem:[#allocation5 + $0x1cc0] sm:$0xff]  ;;  %1368 = vmatpush.msrb.mxu1 %v936_v47  ;;  %v173_v47 = vld [vmem:[#allocation5 + $0x308] sm:$0xff] }
  0xf6   :  { %v1064_v49 = vld [vmem:[#allocation5 + $0x1ee0] sm:$0xff]  ;;  %1389 = vmatpush.msrb.mxu2 %v996_v48  ;;  %v233_v48 = vld [vmem:[#allocation5 + $0x4e8] sm:$0xff] }
  0xf7   :  { %v864_v50 = vld [vmem:[#allocation5 + $0x18a0] sm:$0xff]  ;;  %1408 = vmatpush.msrb.mxu3 %v1064_v49  ;;  %v301_v49 = vld [vmem:[#allocation5 + $0x708] sm:$0xff] }
  0xf8   :  { %v932_v51 = vld [vmem:[#allocation5 + $0x1ac0] sm:$0xff]  ;;  %1350 = vmatpush.msrb.mxu0 %v864_v50  ;;  %v101_v50 = vld [vmem:[#allocation5 + $0xc8] sm:$0xff] }
  0xf9   :  { %v992_v52 = vld [vmem:[#allocation5 + $0x1ca0] sm:$0xff]  ;;  %1369 = vmatpush.msrb.mxu1 %v932_v51  ;;  %v169_v51 = vld [vmem:[#allocation5 + $0x2e8] sm:$0xff] }
  0xfa   :  { %v1060_v53 = vld [vmem:[#allocation5 + $0x1ec0] sm:$0xff]  ;;  %1390 = vmatpush.msrb.mxu2 %v992_v52  ;;  %v229_v52 = vld [vmem:[#allocation5 + $0x4c8] sm:$0xff] }
  0xfb   :  { %v860_v54 = vld [vmem:[#allocation5 + $0x1880] sm:$0xff]  ;;  %1409 = vmatpush.msrb.mxu3 %v1060_v53  ;;  %v297_v53 = vld [vmem:[#allocation5 + $0x6e8] sm:$0xff] }
  0xfc   :  { %v928_v55 = vld [vmem:[#allocation5 + $0x1aa0] sm:$0xff]  ;;  %1351 = vmatpush.msrb.mxu0 %v860_v54  ;;  %v97_v54 = vld [vmem:[#allocation5 + $0xa8] sm:$0xff] }
  0xfd   :  { %v988_v56 = vld [vmem:[#allocation5 + $0x1c80] sm:$0xff]  ;;  %1370 = vmatpush.msrb.mxu1 %v928_v55  ;;  %v165_v55 = vld [vmem:[#allocation5 + $0x2c8] sm:$0xff] }
  0xfe   :  { %v1056_v57 = vld [vmem:[#allocation5 + $0x1ea0] sm:$0xff]  ;;  %1391 = vmatpush.msrb.mxu2 %v988_v56  ;;  %v225_v56 = vld [vmem:[#allocation5 + $0x4a8] sm:$0xff] }
  0xff   :  { %v856_v58 = vld [vmem:[#allocation5 + $0x1860] sm:$0xff]  ;;  %1410 = vmatpush.msrb.mxu3 %v1056_v57  ;;  %v293_v57 = vld [vmem:[#allocation5 + $0x6c8] sm:$0xff] }
 0x100   :  { %v924_v59 = vld [vmem:[#allocation5 + $0x1a80] sm:$0xff]  ;;  %1352 = vmatpush.msrb.mxu0 %v856_v58  ;;  %v93_v58 = vld [vmem:[#allocation5 + $0x88] sm:$0xff] }
 0x101   :  { %v984_v60 = vld [vmem:[#allocation5 + $0x1c60] sm:$0xff]  ;;  %1371 = vmatpush.msrb.mxu1 %v924_v59  ;;  %v161_v59 = vld [vmem:[#allocation5 + $0x2a8] sm:$0xff] }
 0x102   :  { %v1052_v61 = vld [vmem:[#allocation5 + $0x1e80] sm:$0xff]  ;;  %1392 = vmatpush.msrb.mxu2 %v984_v60  ;;  %v221_v60 = vld [vmem:[#allocation5 + $0x488] sm:$0xff] }
 0x103   :  { %v852_v62 = vld [vmem:[#allocation5 + $0x1840] sm:$0xff]  ;;  %1411 = vmatpush.msrb.mxu3 %v1052_v61  ;;  %v289_v61 = vld [vmem:[#allocation5 + $0x6a8] sm:$0xff] }
 0x104   :  { %v920_v63 = vld [vmem:[#allocation5 + $0x1a60] sm:$0xff]  ;;  %1353 = vmatpush.msrb.mxu0 %v852_v62  ;;  %v89_v62 = vld [vmem:[#allocation5 + $0x68] sm:$0xff] }
 0x105   :  { %v980_v0 = vld [vmem:[#allocation5 + $0x1c40] sm:$0xff]  ;;  %1372 = vmatpush.msrb.mxu1 %v920_v63  ;;  %v157_v63 = vld [vmem:[#allocation5 + $0x288] sm:$0xff] }
 0x106   :  { %v1048_v1 = vld [vmem:[#allocation5 + $0x1e60] sm:$0xff]  ;;  %1393 = vmatpush.msrb.mxu2 %v980_v0  ;;  %v217_v0 = vld [vmem:[#allocation5 + $0x468] sm:$0xff] }
 0x107   :  { %v848_v2 = vld [vmem:[#allocation5 + $0x1820] sm:$0xff]  ;;  %1412 = vmatpush.msrb.mxu3 %v1048_v1  ;;  %v285_v1 = vld [vmem:[#allocation5 + $0x688] sm:$0xff] }
 0x108   :  { %v916_v3 = vld [vmem:[#allocation5 + $0x1a40] sm:$0xff]  ;;  %1354 = vmatpush.msrb.mxu0 %v848_v2  ;;  %v85_v2 = vld [vmem:[#allocation5 + $0x48] sm:$0xff] }
 0x109   :  { %v976_v4 = vld [vmem:[#allocation5 + $0x1c20] sm:$0xff]  ;;  %1373 = vmatpush.msrb.mxu1 %v916_v3  ;;  %v153_v3 = vld [vmem:[#allocation5 + $0x268] sm:$0xff] }
 0x10a   :  { %v1044_v5 = vld [vmem:[#allocation5 + $0x1e40] sm:$0xff]  ;;  %1394 = vmatpush.msrb.mxu2 %v976_v4  ;;  %v213_v4 = vld [vmem:[#allocation5 + $0x448] sm:$0xff] }
 0x10b   :  { %v844_v6 = vld [vmem:[#allocation5 + $0x1800] sm:$0xff]  ;;  %1413 = vmatpush.msrb.mxu3 %v1044_v5  ;;  %v281_v5 = vld [vmem:[#allocation5 + $0x668] sm:$0xff] }
 0x10c   :  { %v912_v7 = vld [vmem:[#allocation5 + $0x1a20] sm:$0xff]  ;;  %1355 = vmatpush.msrb.mxu0 %v844_v6  ;;  %v81_v6 = vld [vmem:[#allocation5 + $0x28] sm:$0xff] }
 0x10d   :  { %v972_v8 = vld [vmem:[#allocation5 + $0x1c00] sm:$0xff]  ;;  %1374 = vmatpush.msrb.mxu1 %v912_v7  ;;  %v149_v7 = vld [vmem:[#allocation5 + $0x248] sm:$0xff] }
 0x10e   :  { %v1040_v9 = vld [vmem:[#allocation5 + $0x1e20] sm:$0xff]  ;;  %1395 = vmatpush.msrb.mxu2 %v972_v8  ;;  %1420 = vmatpush.msra.mxu0 %v137_v12  ;;  %v209_v8 = vld [vmem:[#allocation5 + $0x428] sm:$0xff] }
 0x10f   :  { %v72_v10 = vld [vmem:[#allocation2 + $0x60] sm:$0xff]  ;;  %1414 = vmatpush.msrb.mxu3 %v1040_v9  ;;  %1396 = vmatmul.f32.vlgmr.msrb.gmra.mxu2 %v74_v11  ;;  %v277_v9 = vld [vmem:[#allocation5 + $0x648] sm:$0xff] }
 0x110   :  { %v908_v14 = vld [vmem:[#allocation5 + $0x1a00] sm:$0xff]  ;;  %1356 = vmatmul.f32.vlgmr.msrb.gmra.mxu0 %v72_v10  ;;  %1460 = vmatpush.msra.mxu2 %v265_v13  ;;  %v77_v10 = vld [vmem:[#allocation5 + $0x8] sm:$0xff] }
 0x111   :  { %v1036_v15 = vld [vmem:[#allocation5 + $0x1e00] sm:$0xff]  ;;  %1375 = vmatpush.msrb.mxu1 %v908_v14  ;;  %1421 = vmatpush.msra.mxu0 %v133_v18  ;;  %v145_v11 = vld [vmem:[#allocation5 + $0x228] sm:$0xff] }
 0x112   :  { %1415 = vmatpush.msrb.mxu3 %v1036_v15  ;;  %1376 = vmatmul.f32.vlgmr.msrb.gmra.mxu1 %v73_v16  ;;  %v205_v12 = vld [vmem:[#allocation5 + $0x408] sm:$0xff] }
 0x113   :  { %1416 = vmatmul.f32.vlgmr.msrb.gmra.mxu3 %v75_v17  ;;  %1440 = vmatpush.msra.mxu1 %v201_v19  ;;  %v273_v13 = vld [vmem:[#allocation5 + $0x628] sm:$0xff] }
 0x114   :  { %1461 = vmatpush.msra.mxu2 %v261_v20  ;;  %1480 = vmatpush.msra.mxu3 %v329_v21  ;;  %v393_v14 = vld [vmem:[#allocation5 + $0x9e8] sm:$0xff] }
 0x115   :  { %1422 = vmatpush.msra.mxu0 %v129_v22  ;;  %1441 = vmatpush.msra.mxu1 %v197_v23  ;;  %v521_v15 = vld [vmem:[#allocation5 + $0xde8] sm:$0xff] }
 0x116   :  { %1462 = vmatpush.msra.mxu2 %v257_v24  ;;  %1481 = vmatpush.msra.mxu3 %v325_v25  ;;  %v141_v16 = vld [vmem:[#allocation5 + $0x208] sm:$0xff] }
 0x117   :  { %1423 = vmatpush.msra.mxu0 %v125_v26  ;;  %1442 = vmatpush.msra.mxu1 %v193_v27  ;;  %v269_v17 = vld [vmem:[#allocation5 + $0x608] sm:$0xff] }
 0x118   :  { %1463 = vmatpush.msra.mxu2 %v253_v28  ;;  %1482 = vmatpush.msra.mxu3 %v321_v29  ;;  %v389_v18 = vld [vmem:[#allocation5 + $0x9c8] sm:$0xff] }
 0x119   :  { %1424 = vmatpush.msra.mxu0 %v121_v30  ;;  %1443 = vmatpush.msra.mxu1 %v189_v31  ;;  %v457_v19 = vld [vmem:[#allocation5 + $0xbe8] sm:$0xff] }
 0x11a   :  { %1464 = vmatpush.msra.mxu2 %v249_v32  ;;  %1483 = vmatpush.msra.mxu3 %v317_v33  ;;  %v517_v20 = vld [vmem:[#allocation5 + $0xdc8] sm:$0xff] }
 0x11b   :  { %1425 = vmatpush.msra.mxu0 %v117_v34  ;;  %1444 = vmatpush.msra.mxu1 %v185_v35  ;;  %v585_v21 = vld [vmem:[#allocation5 + $0xfe8] sm:$0xff] }
 0x11c   :  { %1465 = vmatpush.msra.mxu2 %v245_v36  ;;  %1484 = vmatpush.msra.mxu3 %v313_v37  ;;  %v385_v22 = vld [vmem:[#allocation5 + $0x9a8] sm:$0xff] }
 0x11d   :  { %1426 = vmatpush.msra.mxu0 %v113_v38  ;;  %1445 = vmatpush.msra.mxu1 %v181_v39  ;;  %v453_v23 = vld [vmem:[#allocation5 + $0xbc8] sm:$0xff] }
 0x11e   :  { %1466 = vmatpush.msra.mxu2 %v241_v40  ;;  %1485 = vmatpush.msra.mxu3 %v309_v41  ;;  %v513_v24 = vld [vmem:[#allocation5 + $0xda8] sm:$0xff] }
 0x11f   :  { %1427 = vmatpush.msra.mxu0 %v109_v42  ;;  %1446 = vmatpush.msra.mxu1 %v177_v43  ;;  %v581_v25 = vld [vmem:[#allocation5 + $0xfc8] sm:$0xff] }
 0x120   :  { %1467 = vmatpush.msra.mxu2 %v237_v44  ;;  %1486 = vmatpush.msra.mxu3 %v305_v45  ;;  %v381_v26 = vld [vmem:[#allocation5 + $0x988] sm:$0xff] }
 0x121   :  { %1428 = vmatpush.msra.mxu0 %v105_v46  ;;  %1447 = vmatpush.msra.mxu1 %v173_v47  ;;  %v449_v27 = vld [vmem:[#allocation5 + $0xba8] sm:$0xff] }
 0x122   :  { %1468 = vmatpush.msra.mxu2 %v233_v48  ;;  %1487 = vmatpush.msra.mxu3 %v301_v49  ;;  %v509_v28 = vld [vmem:[#allocation5 + $0xd88] sm:$0xff] }
 0x123   :  { %1429 = vmatpush.msra.mxu0 %v101_v50  ;;  %1448 = vmatpush.msra.mxu1 %v169_v51  ;;  %v577_v29 = vld [vmem:[#allocation5 + $0xfa8] sm:$0xff] }
 0x124   :  { %1469 = vmatpush.msra.mxu2 %v229_v52  ;;  %1488 = vmatpush.msra.mxu3 %v297_v53  ;;  %v377_v30 = vld [vmem:[#allocation5 + $0x968] sm:$0xff] }
 0x125   :  { %1430 = vmatpush.msra.mxu0 %v97_v54  ;;  %1449 = vmatpush.msra.mxu1 %v165_v55  ;;  %v445_v31 = vld [vmem:[#allocation5 + $0xb88] sm:$0xff] }
 0x126   :  { %1470 = vmatpush.msra.mxu2 %v225_v56  ;;  %1489 = vmatpush.msra.mxu3 %v293_v57  ;;  %v505_v32 = vld [vmem:[#allocation5 + $0xd68] sm:$0xff] }
 0x127   :  { %1431 = vmatpush.msra.mxu0 %v93_v58  ;;  %1450 = vmatpush.msra.mxu1 %v161_v59  ;;  %v573_v33 = vld [vmem:[#allocation5 + $0xf88] sm:$0xff] }
 0x128   :  { %1471 = vmatpush.msra.mxu2 %v221_v60  ;;  %1490 = vmatpush.msra.mxu3 %v289_v61  ;;  %v373_v34 = vld [vmem:[#allocation5 + $0x948] sm:$0xff] }
 0x129   :  { %1432 = vmatpush.msra.mxu0 %v89_v62  ;;  %1451 = vmatpush.msra.mxu1 %v157_v63  ;;  %v441_v35 = vld [vmem:[#allocation5 + $0xb68] sm:$0xff] }
 0x12a   :  { %1472 = vmatpush.msra.mxu2 %v217_v0  ;;  %1491 = vmatpush.msra.mxu3 %v285_v1  ;;  %v501_v36 = vld [vmem:[#allocation5 + $0xd48] sm:$0xff]  ;;  %v1117_v0 = vpop.f32.mrf.mxu0 }
 0x12b   :  { %1433 = vmatpush.msra.mxu0 %v85_v2  ;;  %1452 = vmatpush.msra.mxu1 %v153_v3  ;;  %v569_v37 = vld [vmem:[#allocation5 + $0xf68] sm:$0xff] }
 0x12c   :  { %1473 = vmatpush.msra.mxu2 %v213_v4  ;;  %1492 = vmatpush.msra.mxu3 %v281_v5  ;;  %v369_v38 = vld [vmem:[#allocation5 + $0x928] sm:$0xff] }
 0x12d   :  { %1434 = vmatpush.msra.mxu0 %v81_v6  ;;  %1453 = vmatpush.msra.mxu1 %v149_v7  ;;  %v437_v39 = vld [vmem:[#allocation5 + $0xb48] sm:$0xff]  ;;  %v1137_v7 = vpop.f32.mrf.mxu1 }
 0x12e   :  { %1474 = vmatpush.msra.mxu2 %v209_v8  ;;  %1493 = vmatpush.msra.mxu3 %v277_v9  ;;  %v497_v40 = vld [vmem:[#allocation5 + $0xd28] sm:$0xff] }
 0x12f   :  { %1435 = vmatpush.msra.mxu0 %v77_v10  ;;  %1454 = vmatpush.msra.mxu1 %v145_v11  ;;  %v565_v41 = vld [vmem:[#allocation5 + $0xf48] sm:$0xff]  ;;  %v1138_v10 = vadd.f32 %v1137_v7, %v1117_v0  ;;  %v1157_v11 = vpop.f32.mrf.mxu2 }
 0x130   :  { %1475 = vmatpush.msra.mxu2 %v205_v12  ;;  %1494 = vmatpush.msra.mxu3 %v273_v13  ;;  %v365_v42 = vld [vmem:[#allocation5 + $0x908] sm:$0xff] }
 0x131   :  { %1500 = vmatpush.msrb.mxu0 %v393_v14  ;;  %1455 = vmatpush.msra.mxu1 %v141_v16  ;;  %v433_v43 = vld [vmem:[#allocation5 + $0xb28] sm:$0xff] }
 0x132   :  { %1540 = vmatpush.msrb.mxu2 %v521_v15  ;;  %1495 = vmatpush.msra.mxu3 %v269_v17  ;;  %v493_v44 = vld [vmem:[#allocation5 + $0xd08] sm:$0xff]  ;;  %v1158_v15 = vadd.f32 %v1157_v11, %v1138_v10 }
 0x133   :  { %1501 = vmatpush.msrb.mxu0 %v389_v18  ;;  %1520 = vmatpush.msrb.mxu1 %v457_v19  ;;  %v561_v45 = vld [vmem:[#allocation5 + $0xf28] sm:$0xff]  ;;  %v1177_v18 = vpop.f32.mrf.mxu3 }
 0x134   :  { %1541 = vmatpush.msrb.mxu2 %v517_v20  ;;  %1560 = vmatpush.msrb.mxu3 %v585_v21  ;;  %v361_v46 = vld [vmem:[#allocation5 + $0x8e8] sm:$0xff]  ;;  %v1178_v20 = vadd.f32 %v1177_v18, %v1158_v15  ;;  %v3010_v21 = vld [vmem:[#allocation2 + $0x10] sm:$0xff] }
 0x135   :  { %1502 = vmatpush.msrb.mxu0 %v385_v22  ;;  %1521 = vmatpush.msrb.mxu1 %v453_v23  ;;  %v429_v47 = vld [vmem:[#allocation5 + $0xb08] sm:$0xff] }
 0x136   :  { %1542 = vmatpush.msrb.mxu2 %v513_v24  ;;  %1561 = vmatpush.msrb.mxu3 %v581_v25  ;;  %v489_v48 = vld [vmem:[#allocation5 + $0xce8] sm:$0xff]  ;;  %v1197_v25 = vpop.f32.mrf.mxu0 }
 0x137   :  { %1503 = vmatpush.msrb.mxu0 %v381_v26  ;;  %1522 = vmatpush.msrb.mxu1 %v449_v27  ;;  %v557_v49 = vld [vmem:[#allocation5 + $0xf08] sm:$0xff]  ;;  %v3011_v26 = vld [vmem:[#allocation2] sm:$0xff] }
 0x138   :  { %1543 = vmatpush.msrb.mxu2 %v509_v28  ;;  %1562 = vmatpush.msrb.mxu3 %v577_v29  ;;  %v357_v50 = vld [vmem:[#allocation5 + $0x8c8] sm:$0xff]  ;;  %v1198_v28 = vadd.f32 %v1197_v25, %v1178_v20  ;;  %v3012_v29 = vld [vmem:[#allocation2 + $0x18] sm:$0xff] }
 0x139   :  { %1504 = vmatpush.msrb.mxu0 %v377_v30  ;;  %1523 = vmatpush.msrb.mxu1 %v445_v31  ;;  %v425_v51 = vld [vmem:[#allocation5 + $0xae8] sm:$0xff] }
 0x13a   :  { %1544 = vmatpush.msrb.mxu2 %v505_v32  ;;  %1563 = vmatpush.msrb.mxu3 %v573_v33  ;;  %v485_v52 = vld [vmem:[#allocation5 + $0xcc8] sm:$0xff] }
 0x13b   :  { %1505 = vmatpush.msrb.mxu0 %v373_v34  ;;  %1524 = vmatpush.msrb.mxu1 %v441_v35  ;;  %v553_v53 = vld [vmem:[#allocation5 + $0xee8] sm:$0xff]  ;;  %v1217_v34 = vpop.f32.mrf.mxu1 }
 0x13c   :  { %1545 = vmatpush.msrb.mxu2 %v501_v36  ;;  %1564 = vmatpush.msrb.mxu3 %v569_v37  ;;  %v353_v54 = vld [vmem:[#allocation5 + $0x8a8] sm:$0xff] }
 0x13d   :  { %1506 = vmatpush.msrb.mxu0 %v369_v38  ;;  %1525 = vmatpush.msrb.mxu1 %v437_v39  ;;  %v421_v55 = vld [vmem:[#allocation5 + $0xac8] sm:$0xff]  ;;  %v1218_v38 = vadd.f32 %v1217_v34, %v1198_v28  ;;  %v1237_v39 = vpop.f32.mrf.mxu2 }
 0x13e   :  { %1546 = vmatpush.msrb.mxu2 %v497_v40  ;;  %1565 = vmatpush.msrb.mxu3 %v565_v41  ;;  %v481_v56 = vld [vmem:[#allocation5 + $0xca8] sm:$0xff] }
 0x13f   :  { %1507 = vmatpush.msrb.mxu0 %v365_v42  ;;  %1526 = vmatpush.msrb.mxu1 %v433_v43  ;;  %v549_v57 = vld [vmem:[#allocation5 + $0xec8] sm:$0xff]  ;;  %v1238_v43 = vadd.f32 %v1237_v39, %v1218_v38 }
 0x140   :  { %1547 = vmatpush.msrb.mxu2 %v493_v44  ;;  %1566 = vmatpush.msrb.mxu3 %v561_v45  ;;  %v349_v58 = vld [vmem:[#allocation5 + $0x888] sm:$0xff] }
 0x141   :  { %1508 = vmatpush.msrb.mxu0 %v361_v46  ;;  %1527 = vmatpush.msrb.mxu1 %v429_v47  ;;  %v417_v59 = vld [vmem:[#allocation5 + $0xaa8] sm:$0xff]  ;;  %v1257_v46 = vpop.f32.mrf.mxu3 }
 0x142   :  { %1548 = vmatpush.msrb.mxu2 %v489_v48  ;;  %1567 = vmatpush.msrb.mxu3 %v557_v49  ;;  %v477_v60 = vld [vmem:[#allocation5 + $0xc88] sm:$0xff]  ;;  %v3195_v48 = vadd.f32 %v1257_v46, %v1238_v43  ;;  %v3014_v49 = vld [vmem:[#allocation2 + $0x30] sm:$0xff] }
 0x143   :  { %1509 = vmatpush.msrb.mxu0 %v357_v50  ;;  %1528 = vmatpush.msrb.mxu1 %v425_v51  ;;  %v545_v61 = vld [vmem:[#allocation5 + $0xea8] sm:$0xff] }
 0x144   :  { %1549 = vmatpush.msrb.mxu2 %v485_v52  ;;  %1568 = vmatpush.msrb.mxu3 %v553_v53  ;;  %v345_v62 = vld [vmem:[#allocation5 + $0x868] sm:$0xff]  ;;  %v3015_v53 = vld [vmem:[#allocation2 + $0x20] sm:$0xff] }
 0x145   :  { %1510 = vmatpush.msrb.mxu0 %v353_v54  ;;  %1529 = vmatpush.msrb.mxu1 %v421_v55  ;;  %v413_v63 = vld [vmem:[#allocation5 + $0xa88] sm:$0xff]  ;;  %v3016_v55 = vld [vmem:[#allocation2 + $0x38] sm:$0xff] }
 0x146   :  { %1550 = vmatpush.msrb.mxu2 %v481_v56  ;;  %1569 = vmatpush.msrb.mxu3 %v549_v57  ;;  %v473_v1 = vld [vmem:[#allocation5 + $0xc68] sm:$0xff] }
 0x147   :  { %1511 = vmatpush.msrb.mxu0 %v349_v58  ;;  %1530 = vmatpush.msrb.mxu1 %v417_v59  ;;  %v541_v2 = vld [vmem:[#allocation5 + $0xe88] sm:$0xff] }
 0x148   :  { %1551 = vmatpush.msrb.mxu2 %v477_v60  ;;  %1570 = vmatpush.msrb.mxu3 %v545_v61  ;;  %v341_v3 = vld [vmem:[#allocation5 + $0x848] sm:$0xff] }
 0x149   :  { %v409_v4 = vld [vmem:[#allocation5 + $0xa68] sm:$0xff]  ;;  %1512 = vmatpush.msrb.mxu0 %v345_v62  ;;  %1531 = vmatpush.msrb.mxu1 %v413_v63 }
 0x14a   :  { %v469_v5 = vld [vmem:[#allocation5 + $0xc48] sm:$0xff]  ;;  %1552 = vmatpush.msrb.mxu2 %v473_v1  ;;  %1571 = vmatpush.msrb.mxu3 %v541_v2 }
 0x14b   :  { %v537_v6 = vld [vmem:[#allocation5 + $0xe68] sm:$0xff]  ;;  %1513 = vmatpush.msrb.mxu0 %v341_v3  ;;  %1532 = vmatpush.msrb.mxu1 %v409_v4 }
 0x14c   :  { %v337_v8 = vld [vmem:[#allocation5 + $0x828] sm:$0xff]  ;;  %1553 = vmatpush.msrb.mxu2 %v469_v5  ;;  %1572 = vmatpush.msrb.mxu3 %v537_v6 }
 0x14d   :  { %v405_v9 = vld [vmem:[#allocation5 + $0xa48] sm:$0xff]  ;;  %1514 = vmatpush.msrb.mxu0 %v337_v8  ;;  %1476 = vmatmul.f32.vlgmr.msra.gmra.mxu2 %v3010_v21 }
 0x14e   :  { %v465_v12 = vld [vmem:[#allocation5 + $0xc28] sm:$0xff]  ;;  %1533 = vmatpush.msrb.mxu1 %v405_v9  ;;  %1436 = vmatmul.f32.vlgmr.msra.gmra.mxu0 %v3011_v26 }
 0x14f   :  { %v533_v13 = vld [vmem:[#allocation5 + $0xe48] sm:$0xff]  ;;  %1554 = vmatpush.msrb.mxu2 %v465_v12  ;;  %1496 = vmatmul.f32.vlgmr.msra.gmra.mxu3 %v3012_v29 }
 0x150   :  { %v333_v14 = vld [vmem:[#allocation5 + $0x808] sm:$0xff]  ;;  %1573 = vmatpush.msrb.mxu3 %v533_v13 }
 0x151   :  { %v401_v16 = vld [vmem:[#allocation5 + $0xa28] sm:$0xff]  ;;  %1515 = vmatpush.msrb.mxu0 %v333_v14  ;;  %v1317_v39 = vpop.f32.mrf.mxu2 }
 0x152   :  { %v461_v17 = vld [vmem:[#allocation5 + $0xc08] sm:$0xff]  ;;  %1534 = vmatpush.msrb.mxu1 %v401_v16 }
 0x153   :  { %v529_v19 = vld [vmem:[#allocation5 + $0xe28] sm:$0xff]  ;;  %1555 = vmatpush.msrb.mxu2 %v461_v17 }
 0x154   :  { %v649_v22 = vld [vmem:[#allocation5 + $0x11e8] sm:$0xff]  ;;  %1574 = vmatpush.msrb.mxu3 %v529_v19 }
 0x155   :  { %v777_v23 = vld [vmem:[#allocation5 + $0x15e8] sm:$0xff]  ;;  %1580 = vmatpush.msra.mxu0 %v649_v22  ;;  %1556 = vmatmul.f32.vlgmr.msrb.gmra.mxu2 %v3014_v49  ;;  %v3018_v49 = vld [vmem:[#allocation2 + $0x40] sm:$0xff] }
 0x156   :  { %v397_v24 = vld [vmem:[#allocation5 + $0xa08] sm:$0xff]  ;;  %1620 = vmatpush.msra.mxu2 %v777_v23  ;;  %1516 = vmatmul.f32.vlgmr.msrb.gmra.mxu0 %v3015_v53  ;;  %v1277_v23 = vpop.f32.mrf.mxu0 }
 0x157   :  { %v525_v27 = vld [vmem:[#allocation5 + $0xe08] sm:$0xff]  ;;  %1535 = vmatpush.msrb.mxu1 %v397_v24  ;;  %v1278_v26 = vadd.f32 %v1277_v23, %v3195_v48 }
 0x158   :  { %v645_v30 = vld [vmem:[#allocation5 + $0x11c8] sm:$0xff]  ;;  %1575 = vmatpush.msrb.mxu3 %v525_v27 }
 0x159   :  { %v713_v31 = vld [vmem:[#allocation5 + $0x13e8] sm:$0xff]  ;;  %1581 = vmatpush.msra.mxu0 %v645_v30  ;;  %1576 = vmatmul.f32.vlgmr.msrb.gmra.mxu3 %v3016_v55 }
 0x15a   :  { %v773_v32 = vld [vmem:[#allocation5 + $0x15c8] sm:$0xff] }
 0x15b   :  { %v841_v33 = vld [vmem:[#allocation5 + $0x17e8] sm:$0xff]  ;;  %1621 = vmatpush.msra.mxu2 %v773_v32 }
 0x15c   :  { %v3013_v35 = vld [vmem:[#allocation2 + $0x8] sm:$0xff]  ;;  %1640 = vmatpush.msra.mxu3 %v841_v33 }
 0x15d   :  { %1456 = vmatmul.f32.vlgmr.msra.gmra.mxu1 %v3013_v35  ;;  %v641_v36 = vld [vmem:[#allocation5 + $0x11a8] sm:$0xff] }
 0x15e   :  { %v709_v37 = vld [vmem:[#allocation5 + $0x13c8] sm:$0xff]  ;;  %1600 = vmatpush.msra.mxu1 %v713_v31  ;;  %1582 = vmatpush.msra.mxu0 %v641_v36  ;;  %v1297_v31 = vpop.f32.mrf.mxu1 }
 0x15f   :  { %v769_v40 = vld [vmem:[#allocation5 + $0x15a8] sm:$0xff]  ;;  %v1298_v34 = vadd.f32 %v1297_v31, %v1278_v26 }
 0x160   :  { %v837_v41 = vld [vmem:[#allocation5 + $0x17c8] sm:$0xff]  ;;  %1601 = vmatpush.msra.mxu1 %v709_v37  ;;  %1622 = vmatpush.msra.mxu2 %v769_v40 }
 0x161   :  { %v637_v42 = vld [vmem:[#allocation5 + $0x1188] sm:$0xff]  ;;  %1641 = vmatpush.msra.mxu3 %v837_v41 }
 0x162   :  { %v705_v44 = vld [vmem:[#allocation5 + $0x13a8] sm:$0xff]  ;;  %1583 = vmatpush.msra.mxu0 %v637_v42  ;;  %v1318_v42 = vadd.f32 %v1317_v39, %v1298_v34 }
 0x163   :  { %v765_v45 = vld [vmem:[#allocation5 + $0x1588] sm:$0xff]  ;;  %1602 = vmatpush.msra.mxu1 %v705_v44 }
 0x164   :  { %v833_v47 = vld [vmem:[#allocation5 + $0x17a8] sm:$0xff]  ;;  %1623 = vmatpush.msra.mxu2 %v765_v45  ;;  %v1337_v45 = vpop.f32.mrf.mxu3 }
 0x165   :  { %v633_v50 = vld [vmem:[#allocation5 + $0x1168] sm:$0xff]  ;;  %1642 = vmatpush.msra.mxu3 %v833_v47  ;;  %v3198_v48 = vadd.f32 %v1337_v45, %v1318_v42 }
 0x166   :  { %v701_v51 = vld [vmem:[#allocation5 + $0x1388] sm:$0xff]  ;;  %1584 = vmatpush.msra.mxu0 %v633_v50  ;;  %v3019_v50 = vld [vmem:[#allocation2 + $0x50] sm:$0xff] }
 0x167   :  { %v761_v52 = vld [vmem:[#allocation5 + $0x1568] sm:$0xff]  ;;  %1603 = vmatpush.msra.mxu1 %v701_v51 }
 0x168   :  { %v829_v54 = vld [vmem:[#allocation5 + $0x1788] sm:$0xff]  ;;  %1624 = vmatpush.msra.mxu2 %v761_v52 }
 0x169   :  { %v629_v56 = vld [vmem:[#allocation5 + $0x1148] sm:$0xff]  ;;  %1643 = vmatpush.msra.mxu3 %v829_v54 }
 0x16a   :  { %v697_v57 = vld [vmem:[#allocation5 + $0x1368] sm:$0xff]  ;;  %1585 = vmatpush.msra.mxu0 %v629_v56  ;;  %v3021_v56 = vld [vmem:[#allocation2 + $0x58] sm:$0xff] }
 0x16b   :  { %v757_v58 = vld [vmem:[#allocation5 + $0x1548] sm:$0xff]  ;;  %1604 = vmatpush.msra.mxu1 %v697_v57 }
 0x16c   :  { %v825_v59 = vld [vmem:[#allocation5 + $0x1768] sm:$0xff]  ;;  %1625 = vmatpush.msra.mxu2 %v757_v58 }
 0x16d   :  { %v3017_v60 = vld [vmem:[#allocation2 + $0x28] sm:$0xff]  ;;  %1644 = vmatpush.msra.mxu3 %v825_v59 }
 0x16e   :  { %1536 = vmatmul.f32.vlgmr.msrb.gmra.mxu1 %v3017_v60  ;;  %v625_v61 = vld [vmem:[#allocation5 + $0x1128] sm:$0xff] }
 0x16f   :  { %v693_v62 = vld [vmem:[#allocation5 + $0x1348] sm:$0xff]  ;;  %1586 = vmatpush.msra.mxu0 %v625_v61 }
 0x170   :  { %v753_v63 = vld [vmem:[#allocation5 + $0x1528] sm:$0xff]  ;;  %1605 = vmatpush.msra.mxu1 %v693_v62 }
 0x171   :  { %v821_v0 = vld [vmem:[#allocation5 + $0x1748] sm:$0xff]  ;;  %1626 = vmatpush.msra.mxu2 %v753_v63 }
 0x172   :  { %v621_v1 = vld [vmem:[#allocation5 + $0x1108] sm:$0xff]  ;;  %1645 = vmatpush.msra.mxu3 %v821_v0 }
 0x173   :  { %v689_v2 = vld [vmem:[#allocation5 + $0x1328] sm:$0xff]  ;;  %1587 = vmatpush.msra.mxu0 %v621_v1 }
 0x174   :  { %v749_v3 = vld [vmem:[#allocation5 + $0x1508] sm:$0xff]  ;;  %1606 = vmatpush.msra.mxu1 %v689_v2 }
 0x175   :  { %v817_v4 = vld [vmem:[#allocation5 + $0x1728] sm:$0xff]  ;;  %1627 = vmatpush.msra.mxu2 %v749_v3 }
 0x176   :  { %v617_v5 = vld [vmem:[#allocation5 + $0x10e8] sm:$0xff]  ;;  %1646 = vmatpush.msra.mxu3 %v817_v4 }
 0x177   :  { %v685_v6 = vld [vmem:[#allocation5 + $0x1308] sm:$0xff]  ;;  %1588 = vmatpush.msra.mxu0 %v617_v5 }
 0x178   :  { %v745_v7 = vld [vmem:[#allocation5 + $0x14e8] sm:$0xff]  ;;  %1607 = vmatpush.msra.mxu1 %v685_v6 }
 0x179   :  { %v813_v8 = vld [vmem:[#allocation5 + $0x1708] sm:$0xff]  ;;  %1628 = vmatpush.msra.mxu2 %v745_v7 }
 0x17a   :  { %v613_v9 = vld [vmem:[#allocation5 + $0x10c8] sm:$0xff]  ;;  %1647 = vmatpush.msra.mxu3 %v813_v8 }
 0x17b   :  { %v681_v10 = vld [vmem:[#allocation5 + $0x12e8] sm:$0xff]  ;;  %1589 = vmatpush.msra.mxu0 %v613_v9 }
 0x17c   :  { %v741_v11 = vld [vmem:[#allocation5 + $0x14c8] sm:$0xff]  ;;  %1608 = vmatpush.msra.mxu1 %v681_v10 }
 0x17d   :  { %v809_v12 = vld [vmem:[#allocation5 + $0x16e8] sm:$0xff]  ;;  %1629 = vmatpush.msra.mxu2 %v741_v11 }
 0x17e   :  { %v609_v13 = vld [vmem:[#allocation5 + $0x10a8] sm:$0xff]  ;;  %1648 = vmatpush.msra.mxu3 %v809_v12 }
 0x17f   :  { %v677_v14 = vld [vmem:[#allocation5 + $0x12c8] sm:$0xff]  ;;  %1590 = vmatpush.msra.mxu0 %v609_v13 }
 0x180   :  { %v737_v15 = vld [vmem:[#allocation5 + $0x14a8] sm:$0xff]  ;;  %1609 = vmatpush.msra.mxu1 %v677_v14 }
 0x181   :  { %v805_v16 = vld [vmem:[#allocation5 + $0x16c8] sm:$0xff]  ;;  %1630 = vmatpush.msra.mxu2 %v737_v15 }
 0x182   :  { %v605_v17 = vld [vmem:[#allocation5 + $0x1088] sm:$0xff]  ;;  %1649 = vmatpush.msra.mxu3 %v805_v16 }
 0x183   :  { %v673_v18 = vld [vmem:[#allocation5 + $0x12a8] sm:$0xff]  ;;  %1591 = vmatpush.msra.mxu0 %v605_v17 }
 0x184   :  { %v733_v19 = vld [vmem:[#allocation5 + $0x1488] sm:$0xff]  ;;  %1610 = vmatpush.msra.mxu1 %v673_v18 }
 0x185   :  { %v801_v20 = vld [vmem:[#allocation5 + $0x16a8] sm:$0xff]  ;;  %1631 = vmatpush.msra.mxu2 %v733_v19 }
 0x186   :  { %v601_v21 = vld [vmem:[#allocation5 + $0x1068] sm:$0xff]  ;;  %1650 = vmatpush.msra.mxu3 %v801_v20 }
 0x187   :  { %v669_v22 = vld [vmem:[#allocation5 + $0x1288] sm:$0xff]  ;;  %1592 = vmatpush.msra.mxu0 %v601_v21 }
 0x188   :  { %v729_v24 = vld [vmem:[#allocation5 + $0x1468] sm:$0xff]  ;;  %1611 = vmatpush.msra.mxu1 %v669_v22 }
 0x189   :  { %v797_v25 = vld [vmem:[#allocation5 + $0x1688] sm:$0xff]  ;;  %1632 = vmatpush.msra.mxu2 %v729_v24 }
 0x18a   :  { %v597_v27 = vld [vmem:[#allocation5 + $0x1048] sm:$0xff]  ;;  %1651 = vmatpush.msra.mxu3 %v797_v25 }
 0x18b   :  { %v665_v28 = vld [vmem:[#allocation5 + $0x1268] sm:$0xff]  ;;  %1593 = vmatpush.msra.mxu0 %v597_v27 }
 0x18c   :  { %v725_v29 = vld [vmem:[#allocation5 + $0x1448] sm:$0xff]  ;;  %1612 = vmatpush.msra.mxu1 %v665_v28 }
 0x18d   :  { %v793_v30 = vld [vmem:[#allocation5 + $0x1668] sm:$0xff]  ;;  %1633 = vmatpush.msra.mxu2 %v725_v29 }
 0x18e   :  { %v593_v32 = vld [vmem:[#allocation5 + $0x1028] sm:$0xff]  ;;  %1652 = vmatpush.msra.mxu3 %v793_v30 }
 0x18f   :  { %v661_v33 = vld [vmem:[#allocation5 + $0x1248] sm:$0xff]  ;;  %1594 = vmatpush.msra.mxu0 %v593_v32 }
 0x190   :  { %v721_v35 = vld [vmem:[#allocation5 + $0x1428] sm:$0xff]  ;;  %1613 = vmatpush.msra.mxu1 %v661_v33 }
 0x191   :  { %v789_v36 = vld [vmem:[#allocation5 + $0x1648] sm:$0xff]  ;;  %1634 = vmatpush.msra.mxu2 %v721_v35  ;;  %v1357_v35 = vpop.f32.mrf.mxu0 }
 0x192   :  { %v589_v37 = vld [vmem:[#allocation5 + $0x1008] sm:$0xff]  ;;  %1653 = vmatpush.msra.mxu3 %v789_v36 }
 0x193   :  { %v657_v38 = vld [vmem:[#allocation5 + $0x1228] sm:$0xff]  ;;  %1595 = vmatpush.msra.mxu0 %v589_v37 }
 0x194   :  { %v717_v40 = vld [vmem:[#allocation5 + $0x1408] sm:$0xff]  ;;  %1614 = vmatpush.msra.mxu1 %v657_v38  ;;  %1596 = vmatmul.f32.vlgmr.msra.gmra.mxu0 %v3018_v49  ;;  %v1358_v38 = vadd.f32 %v1357_v35, %v3198_v48  ;;  %v230_v35 = vld [vmem:[#allocation5 + $0x4d0] sm:$0xff] }
 0x195   :  { %v785_v41 = vld [vmem:[#allocation5 + $0x1628] sm:$0xff]  ;;  %1635 = vmatpush.msra.mxu2 %v717_v40 }
 0x196   :  { %v905_v43 = vld [vmem:[#allocation5 + $0x19e8] sm:$0xff]  ;;  %1654 = vmatpush.msra.mxu3 %v785_v41  ;;  %1636 = vmatmul.f32.vlgmr.msra.gmra.mxu2 %v3019_v50 }
 0x197   :  { %v1033_v44 = vld [vmem:[#allocation5 + $0x1de8] sm:$0xff]  ;;  %1660 = vmatpush.msrb.mxu0 %v905_v43  ;;  %v1377_v43 = vpop.f32.mrf.mxu1 }
 0x198   :  { %v653_v46 = vld [vmem:[#allocation5 + $0x1208] sm:$0xff]  ;;  %1700 = vmatpush.msrb.mxu2 %v1033_v44  ;;  %v1378_v49 = vadd.f32 %v1377_v43, %v1358_v38  ;;  %v166_v38 = vld [vmem:[#allocation5 + $0x2d0] sm:$0xff] }
 0x199   :  { %v781_v47 = vld [vmem:[#allocation5 + $0x1608] sm:$0xff]  ;;  %1615 = vmatpush.msra.mxu1 %v653_v46  ;;  %v222_v43 = vld [vmem:[#allocation5 + $0x490] sm:$0xff] }
 0x19a   :  { %v901_v51 = vld [vmem:[#allocation5 + $0x19c8] sm:$0xff]  ;;  %1655 = vmatpush.msra.mxu3 %v781_v47 }
 0x19b   :  { %v969_v52 = vld [vmem:[#allocation5 + $0x1be8] sm:$0xff]  ;;  %1656 = vmatmul.f32.vlgmr.msra.gmra.mxu3 %v3021_v56  ;;  %1661 = vmatpush.msrb.mxu0 %v901_v51  ;;  %v1397_v51 = vpop.f32.mrf.mxu2  ;;  %v266_v56 = vld [vmem:[#allocation5 + $0x5f0] sm:$0xff] }
 0x19c   :  { %v1029_v53 = vld [vmem:[#allocation5 + $0x1dc8] sm:$0xff]  ;;  %1680 = vmatpush.msrb.mxu1 %v969_v52 }
 0x19d   :  { %v1097_v54 = vld [vmem:[#allocation5 + $0x1fe8] sm:$0xff]  ;;  %1701 = vmatpush.msrb.mxu2 %v1029_v53 }
 0x19e   :  { %v3020_v55 = vld [vmem:[#allocation2 + $0x48] sm:$0xff]  ;;  %1720 = vmatpush.msrb.mxu3 %v1097_v54  ;;  %v1398_v54 = vadd.f32 %v1397_v51, %v1378_v49  ;;  %v286_v49 = vld [vmem:[#allocation5 + $0x690] sm:$0xff] }
 0x19f   :  { %1616 = vmatmul.f32.vlgmr.msra.gmra.mxu1 %v3020_v55  ;;  %v897_v57 = vld [vmem:[#allocation5 + $0x19a8] sm:$0xff]  ;;  %v138_v55 = vld [vmem:[#allocation5 + $0x1f0] sm:$0xff] }
 0x1a0   :  { %v965_v58 = vld [vmem:[#allocation5 + $0x1bc8] sm:$0xff]  ;;  %1662 = vmatpush.msrb.mxu0 %v897_v57  ;;  %v1417_v57 = vpop.f32.mrf.mxu3  ;;  %v214_v51 = vld [vmem:[#allocation5 + $0x450] sm:$0xff] }
 0x1a1   :  { %v1025_v59 = vld [vmem:[#allocation5 + $0x1da8] sm:$0xff]  ;;  %1681 = vmatpush.msrb.mxu1 %v965_v58 }
 0x1a2   :  { %v1093_v60 = vld [vmem:[#allocation5 + $0x1fc8] sm:$0xff]  ;;  %1702 = vmatpush.msrb.mxu2 %v1025_v59 }
 0x1a3   :  { %v893_v61 = vld [vmem:[#allocation5 + $0x1988] sm:$0xff]  ;;  %1721 = vmatpush.msrb.mxu3 %v1093_v60  ;;  %v3201_v60 = vadd.f32 %v1417_v57, %v1398_v54  ;;  %v150_v54 = vld [vmem:[#allocation5 + $0x250] sm:$0xff] }
 0x1a4   :  { %v961_v62 = vld [vmem:[#allocation5 + $0x1ba8] sm:$0xff]  ;;  %1663 = vmatpush.msrb.mxu0 %v893_v61  ;;  %v3022_v61 = vld [vmem:[#allocation2 + $0x60] sm:$0xff]  ;;  %v78_v57 = vld [vmem:[#allocation5 + $0x10] sm:$0xff] }
 0x1a5   :  { %v1021_v63 = vld [vmem:[#allocation5 + $0x1d88] sm:$0xff]  ;;  %1682 = vmatpush.msrb.mxu1 %v961_v62  ;;  %v3023_v62 = vld [vmem:[#allocation2 + $0x70] sm:$0xff] }
 0x1a6   :  { %v1089_v0 = vld [vmem:[#allocation5 + $0x1fa8] sm:$0xff]  ;;  %1703 = vmatpush.msrb.mxu2 %v1021_v63  ;;  %v134_v63 = vld [vmem:[#allocation5 + $0x1d0] sm:$0xff] }
 0x1a7   :  { %v889_v1 = vld [vmem:[#allocation5 + $0x1968] sm:$0xff]  ;;  %1722 = vmatpush.msrb.mxu3 %v1089_v0  ;;  %v202_v0 = vld [vmem:[#allocation5 + $0x3f0] sm:$0xff] }
 0x1a8   :  { %v957_v2 = vld [vmem:[#allocation5 + $0x1b88] sm:$0xff]  ;;  %1664 = vmatpush.msrb.mxu0 %v889_v1  ;;  %v262_v1 = vld [vmem:[#allocation5 + $0x5d0] sm:$0xff] }
 0x1a9   :  { %v1017_v3 = vld [vmem:[#allocation5 + $0x1d68] sm:$0xff]  ;;  %1683 = vmatpush.msrb.mxu1 %v957_v2  ;;  %v330_v2 = vld [vmem:[#allocation5 + $0x7f0] sm:$0xff] }
 0x1aa   :  { %v1085_v4 = vld [vmem:[#allocation5 + $0x1f88] sm:$0xff]  ;;  %1704 = vmatpush.msrb.mxu2 %v1017_v3 }
 0x1ab   :  { %v885_v5 = vld [vmem:[#allocation5 + $0x1948] sm:$0xff]  ;;  %1723 = vmatpush.msrb.mxu3 %v1085_v4  ;;  %v3025_v4 = vld [vmem:[#allocation2 + $0x78] sm:$0xff] }
 0x1ac   :  { %v953_v6 = vld [vmem:[#allocation5 + $0x1b68] sm:$0xff]  ;;  %1665 = vmatpush.msrb.mxu0 %v885_v5  ;;  %v130_v5 = vld [vmem:[#allocation5 + $0x1b0] sm:$0xff] }
 0x1ad   :  { %v1013_v7 = vld [vmem:[#allocation5 + $0x1d48] sm:$0xff]  ;;  %1684 = vmatpush.msrb.mxu1 %v953_v6  ;;  %v198_v6 = vld [vmem:[#allocation5 + $0x3d0] sm:$0xff] }
 0x1ae   :  { %v1081_v8 = vld [vmem:[#allocation5 + $0x1f68] sm:$0xff]  ;;  %1705 = vmatpush.msrb.mxu2 %v1013_v7  ;;  %v258_v7 = vld [vmem:[#allocation5 + $0x5b0] sm:$0xff] }
 0x1af   :  { %v881_v9 = vld [vmem:[#allocation5 + $0x1928] sm:$0xff]  ;;  %1724 = vmatpush.msrb.mxu3 %v1081_v8  ;;  %v326_v8 = vld [vmem:[#allocation5 + $0x7d0] sm:$0xff] }
 0x1b0   :  { %v949_v10 = vld [vmem:[#allocation5 + $0x1b48] sm:$0xff]  ;;  %1666 = vmatpush.msrb.mxu0 %v881_v9  ;;  %v126_v9 = vld [vmem:[#allocation5 + $0x190] sm:$0xff] }
 0x1b1   :  { %v1009_v11 = vld [vmem:[#allocation5 + $0x1d28] sm:$0xff]  ;;  %1685 = vmatpush.msrb.mxu1 %v949_v10  ;;  %v194_v10 = vld [vmem:[#allocation5 + $0x3b0] sm:$0xff] }
 0x1b2   :  { %v1077_v12 = vld [vmem:[#allocation5 + $0x1f48] sm:$0xff]  ;;  %1706 = vmatpush.msrb.mxu2 %v1009_v11  ;;  %v254_v11 = vld [vmem:[#allocation5 + $0x590] sm:$0xff] }
 0x1b3   :  { %v877_v13 = vld [vmem:[#allocation5 + $0x1908] sm:$0xff]  ;;  %1725 = vmatpush.msrb.mxu3 %v1077_v12  ;;  %v322_v12 = vld [vmem:[#allocation5 + $0x7b0] sm:$0xff] }
 0x1b4   :  { %v945_v14 = vld [vmem:[#allocation5 + $0x1b28] sm:$0xff]  ;;  %1667 = vmatpush.msrb.mxu0 %v877_v13  ;;  %v122_v13 = vld [vmem:[#allocation5 + $0x170] sm:$0xff] }
 0x1b5   :  { %v1005_v15 = vld [vmem:[#allocation5 + $0x1d08] sm:$0xff]  ;;  %1686 = vmatpush.msrb.mxu1 %v945_v14  ;;  %v190_v14 = vld [vmem:[#allocation5 + $0x390] sm:$0xff] }
 0x1b6   :  { %v1073_v16 = vld [vmem:[#allocation5 + $0x1f28] sm:$0xff]  ;;  %1707 = vmatpush.msrb.mxu2 %v1005_v15  ;;  %v250_v15 = vld [vmem:[#allocation5 + $0x570] sm:$0xff] }
 0x1b7   :  { %v873_v17 = vld [vmem:[#allocation5 + $0x18e8] sm:$0xff]  ;;  %1726 = vmatpush.msrb.mxu3 %v1073_v16  ;;  %v318_v16 = vld [vmem:[#allocation5 + $0x790] sm:$0xff] }
 0x1b8   :  { %v941_v18 = vld [vmem:[#allocation5 + $0x1b08] sm:$0xff]  ;;  %1668 = vmatpush.msrb.mxu0 %v873_v17  ;;  %v118_v17 = vld [vmem:[#allocation5 + $0x150] sm:$0xff] }
 0x1b9   :  { %v1001_v19 = vld [vmem:[#allocation5 + $0x1ce8] sm:$0xff]  ;;  %1687 = vmatpush.msrb.mxu1 %v941_v18  ;;  %v186_v18 = vld [vmem:[#allocation5 + $0x370] sm:$0xff] }
 0x1ba   :  { %v1069_v20 = vld [vmem:[#allocation5 + $0x1f08] sm:$0xff]  ;;  %1708 = vmatpush.msrb.mxu2 %v1001_v19  ;;  %v246_v19 = vld [vmem:[#allocation5 + $0x550] sm:$0xff] }
 0x1bb   :  { %v869_v21 = vld [vmem:[#allocation5 + $0x18c8] sm:$0xff]  ;;  %1727 = vmatpush.msrb.mxu3 %v1069_v20  ;;  %v314_v20 = vld [vmem:[#allocation5 + $0x770] sm:$0xff] }
 0x1bc   :  { %v937_v22 = vld [vmem:[#allocation5 + $0x1ae8] sm:$0xff]  ;;  %1669 = vmatpush.msrb.mxu0 %v869_v21  ;;  %v114_v21 = vld [vmem:[#allocation5 + $0x130] sm:$0xff] }
 0x1bd   :  { %v997_v23 = vld [vmem:[#allocation5 + $0x1cc8] sm:$0xff]  ;;  %1688 = vmatpush.msrb.mxu1 %v937_v22  ;;  %v182_v22 = vld [vmem:[#allocation5 + $0x350] sm:$0xff] }
 0x1be   :  { %v1065_v24 = vld [vmem:[#allocation5 + $0x1ee8] sm:$0xff]  ;;  %1709 = vmatpush.msrb.mxu2 %v997_v23  ;;  %v242_v23 = vld [vmem:[#allocation5 + $0x530] sm:$0xff] }
 0x1bf   :  { %v865_v25 = vld [vmem:[#allocation5 + $0x18a8] sm:$0xff]  ;;  %1728 = vmatpush.msrb.mxu3 %v1065_v24  ;;  %v310_v24 = vld [vmem:[#allocation5 + $0x750] sm:$0xff] }
 0x1c0   :  { %v933_v26 = vld [vmem:[#allocation5 + $0x1ac8] sm:$0xff]  ;;  %1670 = vmatpush.msrb.mxu0 %v865_v25  ;;  %v110_v25 = vld [vmem:[#allocation5 + $0x110] sm:$0xff] }
 0x1c1   :  { %v993_v27 = vld [vmem:[#allocation5 + $0x1ca8] sm:$0xff]  ;;  %1689 = vmatpush.msrb.mxu1 %v933_v26  ;;  %v178_v26 = vld [vmem:[#allocation5 + $0x330] sm:$0xff] }
 0x1c2   :  { %v1061_v28 = vld [vmem:[#allocation5 + $0x1ec8] sm:$0xff]  ;;  %1710 = vmatpush.msrb.mxu2 %v993_v27  ;;  %v238_v27 = vld [vmem:[#allocation5 + $0x510] sm:$0xff] }
 0x1c3   :  { %v861_v29 = vld [vmem:[#allocation5 + $0x1888] sm:$0xff]  ;;  %1729 = vmatpush.msrb.mxu3 %v1061_v28  ;;  %v306_v28 = vld [vmem:[#allocation5 + $0x730] sm:$0xff] }
 0x1c4   :  { %v929_v30 = vld [vmem:[#allocation5 + $0x1aa8] sm:$0xff]  ;;  %1671 = vmatpush.msrb.mxu0 %v861_v29  ;;  %v106_v29 = vld [vmem:[#allocation5 + $0xf0] sm:$0xff] }
 0x1c5   :  { %v989_v31 = vld [vmem:[#allocation5 + $0x1c88] sm:$0xff]  ;;  %1690 = vmatpush.msrb.mxu1 %v929_v30  ;;  %v174_v30 = vld [vmem:[#allocation5 + $0x310] sm:$0xff] }
 0x1c6   :  { %v1057_v32 = vld [vmem:[#allocation5 + $0x1ea8] sm:$0xff]  ;;  %1711 = vmatpush.msrb.mxu2 %v989_v31  ;;  %v234_v31 = vld [vmem:[#allocation5 + $0x4f0] sm:$0xff] }
 0x1c7   :  { %v857_v33 = vld [vmem:[#allocation5 + $0x1868] sm:$0xff]  ;;  %1730 = vmatpush.msrb.mxu3 %v1057_v32  ;;  %v302_v32 = vld [vmem:[#allocation5 + $0x710] sm:$0xff] }
 0x1c8   :  { %v925_v34 = vld [vmem:[#allocation5 + $0x1a88] sm:$0xff]  ;;  %1672 = vmatpush.msrb.mxu0 %v857_v33  ;;  %v102_v33 = vld [vmem:[#allocation5 + $0xd0] sm:$0xff] }
 0x1c9   :  { %v985_v36 = vld [vmem:[#allocation5 + $0x1c68] sm:$0xff]  ;;  %1691 = vmatpush.msrb.mxu1 %v925_v34  ;;  %v170_v34 = vld [vmem:[#allocation5 + $0x2f0] sm:$0xff] }
 0x1ca   :  { %v1053_v37 = vld [vmem:[#allocation5 + $0x1e88] sm:$0xff]  ;;  %1712 = vmatpush.msrb.mxu2 %v985_v36  ;;  %v298_v36 = vld [vmem:[#allocation5 + $0x6f0] sm:$0xff] }
 0x1cb   :  { %v853_v39 = vld [vmem:[#allocation5 + $0x1848] sm:$0xff]  ;;  %1731 = vmatpush.msrb.mxu3 %v1053_v37  ;;  %v98_v37 = vld [vmem:[#allocation5 + $0xb0] sm:$0xff] }
 0x1cc   :  { %v921_v40 = vld [vmem:[#allocation5 + $0x1a68] sm:$0xff]  ;;  %1673 = vmatpush.msrb.mxu0 %v853_v39  ;;  %v226_v39 = vld [vmem:[#allocation5 + $0x4b0] sm:$0xff] }
 0x1cd   :  { %v981_v41 = vld [vmem:[#allocation5 + $0x1c48] sm:$0xff]  ;;  %1692 = vmatpush.msrb.mxu1 %v921_v40  ;;  %v294_v40 = vld [vmem:[#allocation5 + $0x6d0] sm:$0xff] }
 0x1ce   :  { %v1049_v42 = vld [vmem:[#allocation5 + $0x1e68] sm:$0xff]  ;;  %1713 = vmatpush.msrb.mxu2 %v981_v41  ;;  %v94_v41 = vld [vmem:[#allocation5 + $0x90] sm:$0xff] }
 0x1cf   :  { %v849_v44 = vld [vmem:[#allocation5 + $0x1828] sm:$0xff]  ;;  %1732 = vmatpush.msrb.mxu3 %v1049_v42  ;;  %v162_v42 = vld [vmem:[#allocation5 + $0x2b0] sm:$0xff] }
 0x1d0   :  { %v917_v45 = vld [vmem:[#allocation5 + $0x1a48] sm:$0xff]  ;;  %1674 = vmatpush.msrb.mxu0 %v849_v44  ;;  %v290_v44 = vld [vmem:[#allocation5 + $0x6b0] sm:$0xff] }
 0x1d1   :  { %v977_v46 = vld [vmem:[#allocation5 + $0x1c28] sm:$0xff]  ;;  %1693 = vmatpush.msrb.mxu1 %v917_v45  ;;  %v90_v45 = vld [vmem:[#allocation5 + $0x70] sm:$0xff] }
 0x1d2   :  { %v1045_v47 = vld [vmem:[#allocation5 + $0x1e48] sm:$0xff]  ;;  %1714 = vmatpush.msrb.mxu2 %v977_v46  ;;  %v158_v46 = vld [vmem:[#allocation5 + $0x290] sm:$0xff] }
 0x1d3   :  { %v845_v48 = vld [vmem:[#allocation5 + $0x1808] sm:$0xff]  ;;  %1733 = vmatpush.msrb.mxu3 %v1045_v47  ;;  %v218_v47 = vld [vmem:[#allocation5 + $0x470] sm:$0xff] }
 0x1d4   :  { %v913_v50 = vld [vmem:[#allocation5 + $0x1a28] sm:$0xff]  ;;  %1675 = vmatpush.msrb.mxu0 %v845_v48  ;;  %v86_v48 = vld [vmem:[#allocation5 + $0x50] sm:$0xff] }
 0x1d5   :  { %v973_v52 = vld [vmem:[#allocation5 + $0x1c08] sm:$0xff]  ;;  %1694 = vmatpush.msrb.mxu1 %v913_v50  ;;  %1676 = vmatmul.f32.vlgmr.msrb.gmra.mxu0 %v3022_v61  ;;  %v154_v50 = vld [vmem:[#allocation5 + $0x270] sm:$0xff] }
 0x1d6   :  { %v1041_v53 = vld [vmem:[#allocation5 + $0x1e28] sm:$0xff]  ;;  %1715 = vmatpush.msrb.mxu2 %v973_v52  ;;  %1740 = vmatpush.msra.mxu0 %v138_v55  ;;  %v282_v52 = vld [vmem:[#allocation5 + $0x670] sm:$0xff] }
 0x1d7   :  { %1734 = vmatpush.msrb.mxu3 %v1041_v53  ;;  %v909_v58 = vld [vmem:[#allocation5 + $0x1a08] sm:$0xff]  ;;  %1716 = vmatmul.f32.vlgmr.msrb.gmra.mxu2 %v3023_v62  ;;  %v82_v53 = vld [vmem:[#allocation5 + $0x30] sm:$0xff] }
 0x1d8   :  { %v1037_v59 = vld [vmem:[#allocation5 + $0x1e08] sm:$0xff]  ;;  %1780 = vmatpush.msra.mxu2 %v266_v56  ;;  %1695 = vmatpush.msrb.mxu1 %v909_v58  ;;  %v210_v55 = vld [vmem:[#allocation5 + $0x430] sm:$0xff] }
 0x1d9   :  { %1735 = vmatpush.msrb.mxu3 %v1037_v59  ;;  %v3024_v3 = vld [vmem:[#allocation2 + $0x68] sm:$0xff]  ;;  %1741 = vmatpush.msra.mxu0 %v134_v63  ;;  %v278_v56 = vld [vmem:[#allocation5 + $0x650] sm:$0xff] }
 0x1da   :  { %1696 = vmatmul.f32.vlgmr.msrb.gmra.mxu1 %v3024_v3  ;;  %1736 = vmatmul.f32.vlgmr.msrb.gmra.mxu3 %v3025_v4  ;;  %v146_v58 = vld [vmem:[#allocation5 + $0x230] sm:$0xff] }
 0x1db   :  { %1760 = vmatpush.msra.mxu1 %v202_v0  ;;  %1781 = vmatpush.msra.mxu2 %v262_v1  ;;  %v206_v59 = vld [vmem:[#allocation5 + $0x410] sm:$0xff] }
 0x1dc   :  { %1800 = vmatpush.msra.mxu3 %v330_v2  ;;  %1742 = vmatpush.msra.mxu0 %v130_v5  ;;  %v274_v61 = vld [vmem:[#allocation5 + $0x630] sm:$0xff] }
 0x1dd   :  { %1761 = vmatpush.msra.mxu1 %v198_v6  ;;  %1782 = vmatpush.msra.mxu2 %v258_v7  ;;  %v394_v62 = vld [vmem:[#allocation5 + $0x9f0] sm:$0xff] }
 0x1de   :  { %1801 = vmatpush.msra.mxu3 %v326_v8  ;;  %1743 = vmatpush.msra.mxu0 %v126_v9  ;;  %v522_v63 = vld [vmem:[#allocation5 + $0xdf0] sm:$0xff] }
 0x1df   :  { %1762 = vmatpush.msra.mxu1 %v194_v10  ;;  %1783 = vmatpush.msra.mxu2 %v254_v11  ;;  %v142_v0 = vld [vmem:[#allocation5 + $0x210] sm:$0xff] }
 0x1e0   :  { %1802 = vmatpush.msra.mxu3 %v322_v12  ;;  %1744 = vmatpush.msra.mxu0 %v122_v13  ;;  %v270_v1 = vld [vmem:[#allocation5 + $0x610] sm:$0xff] }
 0x1e1   :  { %1763 = vmatpush.msra.mxu1 %v190_v14  ;;  %1784 = vmatpush.msra.mxu2 %v250_v15  ;;  %v390_v2 = vld [vmem:[#allocation5 + $0x9d0] sm:$0xff] }
 0x1e2   :  { %1803 = vmatpush.msra.mxu3 %v318_v16  ;;  %1745 = vmatpush.msra.mxu0 %v118_v17  ;;  %v458_v3 = vld [vmem:[#allocation5 + $0xbf0] sm:$0xff] }
 0x1e3   :  { %1764 = vmatpush.msra.mxu1 %v186_v18  ;;  %1785 = vmatpush.msra.mxu2 %v246_v19  ;;  %v518_v4 = vld [vmem:[#allocation5 + $0xdd0] sm:$0xff] }
 0x1e4   :  { %1804 = vmatpush.msra.mxu3 %v314_v20  ;;  %1746 = vmatpush.msra.mxu0 %v114_v21  ;;  %v586_v5 = vld [vmem:[#allocation5 + $0xff0] sm:$0xff] }
 0x1e5   :  { %1765 = vmatpush.msra.mxu1 %v182_v22  ;;  %1786 = vmatpush.msra.mxu2 %v242_v23  ;;  %v386_v6 = vld [vmem:[#allocation5 + $0x9b0] sm:$0xff] }
 0x1e6   :  { %1805 = vmatpush.msra.mxu3 %v310_v24  ;;  %1747 = vmatpush.msra.mxu0 %v110_v25  ;;  %v454_v7 = vld [vmem:[#allocation5 + $0xbd0] sm:$0xff] }
 0x1e7   :  { %1766 = vmatpush.msra.mxu1 %v178_v26  ;;  %1787 = vmatpush.msra.mxu2 %v238_v27  ;;  %v514_v8 = vld [vmem:[#allocation5 + $0xdb0] sm:$0xff] }
 0x1e8   :  { %1806 = vmatpush.msra.mxu3 %v306_v28  ;;  %1748 = vmatpush.msra.mxu0 %v106_v29  ;;  %v582_v9 = vld [vmem:[#allocation5 + $0xfd0] sm:$0xff] }
 0x1e9   :  { %1767 = vmatpush.msra.mxu1 %v174_v30  ;;  %1788 = vmatpush.msra.mxu2 %v234_v31  ;;  %v382_v10 = vld [vmem:[#allocation5 + $0x990] sm:$0xff] }
 0x1ea   :  { %1807 = vmatpush.msra.mxu3 %v302_v32  ;;  %1749 = vmatpush.msra.mxu0 %v102_v33  ;;  %v450_v11 = vld [vmem:[#allocation5 + $0xbb0] sm:$0xff] }
 0x1eb   :  { %1768 = vmatpush.msra.mxu1 %v170_v34  ;;  %1789 = vmatpush.msra.mxu2 %v230_v35  ;;  %v510_v12 = vld [vmem:[#allocation5 + $0xd90] sm:$0xff] }
 0x1ec   :  { %1808 = vmatpush.msra.mxu3 %v298_v36  ;;  %1750 = vmatpush.msra.mxu0 %v98_v37  ;;  %v578_v13 = vld [vmem:[#allocation5 + $0xfb0] sm:$0xff] }
 0x1ed   :  { %1769 = vmatpush.msra.mxu1 %v166_v38  ;;  %1790 = vmatpush.msra.mxu2 %v226_v39  ;;  %v378_v14 = vld [vmem:[#allocation5 + $0x970] sm:$0xff] }
 0x1ee   :  { %1809 = vmatpush.msra.mxu3 %v294_v40  ;;  %1751 = vmatpush.msra.mxu0 %v94_v41  ;;  %v446_v15 = vld [vmem:[#allocation5 + $0xb90] sm:$0xff] }
 0x1ef   :  { %1770 = vmatpush.msra.mxu1 %v162_v42  ;;  %1791 = vmatpush.msra.mxu2 %v222_v43  ;;  %v506_v16 = vld [vmem:[#allocation5 + $0xd70] sm:$0xff] }
 0x1f0   :  { %1810 = vmatpush.msra.mxu3 %v290_v44  ;;  %1752 = vmatpush.msra.mxu0 %v90_v45  ;;  %v574_v17 = vld [vmem:[#allocation5 + $0xf90] sm:$0xff] }
 0x1f1   :  { %1771 = vmatpush.msra.mxu1 %v158_v46  ;;  %1792 = vmatpush.msra.mxu2 %v218_v47  ;;  %v374_v18 = vld [vmem:[#allocation5 + $0x950] sm:$0xff] }
 0x1f2   :  { %1811 = vmatpush.msra.mxu3 %v286_v49  ;;  %1753 = vmatpush.msra.mxu0 %v86_v48  ;;  %v442_v19 = vld [vmem:[#allocation5 + $0xb70] sm:$0xff] }
 0x1f3   :  { %1772 = vmatpush.msra.mxu1 %v154_v50  ;;  %1793 = vmatpush.msra.mxu2 %v214_v51  ;;  %v502_v20 = vld [vmem:[#allocation5 + $0xd50] sm:$0xff] }
 0x1f4   :  { %1812 = vmatpush.msra.mxu3 %v282_v52  ;;  %1754 = vmatpush.msra.mxu0 %v82_v53  ;;  %v570_v21 = vld [vmem:[#allocation5 + $0xf70] sm:$0xff] }
 0x1f5   :  { %1773 = vmatpush.msra.mxu1 %v150_v54  ;;  %1794 = vmatpush.msra.mxu2 %v210_v55  ;;  %v370_v22 = vld [vmem:[#allocation5 + $0x930] sm:$0xff] }
 0x1f6   :  { %1813 = vmatpush.msra.mxu3 %v278_v56  ;;  %1755 = vmatpush.msra.mxu0 %v78_v57  ;;  %v438_v23 = vld [vmem:[#allocation5 + $0xb50] sm:$0xff] }
 0x1f7   :  { %1774 = vmatpush.msra.mxu1 %v146_v58  ;;  %1795 = vmatpush.msra.mxu2 %v206_v59  ;;  %v498_v24 = vld [vmem:[#allocation5 + $0xd30] sm:$0xff] }
 0x1f8   :  { %1814 = vmatpush.msra.mxu3 %v274_v61  ;;  %1820 = vmatpush.msrb.mxu0 %v394_v62  ;;  %v566_v25 = vld [vmem:[#allocation5 + $0xf50] sm:$0xff] }
 0x1f9   :  { %1860 = vmatpush.msrb.mxu2 %v522_v63  ;;  %1775 = vmatpush.msra.mxu1 %v142_v0  ;;  %v366_v26 = vld [vmem:[#allocation5 + $0x910] sm:$0xff] }
 0x1fa   :  { %1815 = vmatpush.msra.mxu3 %v270_v1  ;;  %1821 = vmatpush.msrb.mxu0 %v390_v2  ;;  %v434_v27 = vld [vmem:[#allocation5 + $0xb30] sm:$0xff] }
 0x1fb   :  { %1840 = vmatpush.msrb.mxu1 %v458_v3  ;;  %1861 = vmatpush.msrb.mxu2 %v518_v4  ;;  %v494_v28 = vld [vmem:[#allocation5 + $0xd10] sm:$0xff]  ;;  %v3027_v3 = vld [vmem:[#allocation2] sm:$0xff] }
 0x1fc   :  { %1880 = vmatpush.msrb.mxu3 %v586_v5  ;;  %1822 = vmatpush.msrb.mxu0 %v386_v6  ;;  %v562_v29 = vld [vmem:[#allocation5 + $0xf30] sm:$0xff]  ;;  %v3028_v5 = vld [vmem:[#allocation2 + $0x18] sm:$0xff] }
 0x1fd   :  { %1841 = vmatpush.msrb.mxu1 %v454_v7  ;;  %1862 = vmatpush.msrb.mxu2 %v514_v8  ;;  %v362_v30 = vld [vmem:[#allocation5 + $0x8f0] sm:$0xff] }
 0x1fe   :  { %1881 = vmatpush.msrb.mxu3 %v582_v9  ;;  %1823 = vmatpush.msrb.mxu0 %v382_v10  ;;  %v430_v31 = vld [vmem:[#allocation5 + $0xb10] sm:$0xff]  ;;  %v3029_v10 = vld [vmem:[#allocation2 + $0x8] sm:$0xff] }
 0x1ff   :  { %1842 = vmatpush.msrb.mxu1 %v450_v11  ;;  %1863 = vmatpush.msrb.mxu2 %v510_v12  ;;  %v490_v32 = vld [vmem:[#allocation5 + $0xcf0] sm:$0xff] }
 0x200   :  { %1882 = vmatpush.msrb.mxu3 %v578_v13  ;;  %1824 = vmatpush.msrb.mxu0 %v378_v14  ;;  %v558_v33 = vld [vmem:[#allocation5 + $0xf10] sm:$0xff] }
 0x201   :  { %1843 = vmatpush.msrb.mxu1 %v446_v15  ;;  %1864 = vmatpush.msrb.mxu2 %v506_v16  ;;  %v358_v34 = vld [vmem:[#allocation5 + $0x8d0] sm:$0xff] }
 0x202   :  { %1883 = vmatpush.msrb.mxu3 %v574_v17  ;;  %1825 = vmatpush.msrb.mxu0 %v374_v18  ;;  %v426_v35 = vld [vmem:[#allocation5 + $0xaf0] sm:$0xff] }
 0x203   :  { %1844 = vmatpush.msrb.mxu1 %v442_v19  ;;  %1865 = vmatpush.msrb.mxu2 %v502_v20  ;;  %v486_v36 = vld [vmem:[#allocation5 + $0xcd0] sm:$0xff] }
 0x204   :  { %1884 = vmatpush.msrb.mxu3 %v570_v21  ;;  %1826 = vmatpush.msrb.mxu0 %v370_v22  ;;  %v554_v37 = vld [vmem:[#allocation5 + $0xef0] sm:$0xff] }
 0x205   :  { %1845 = vmatpush.msrb.mxu1 %v438_v23  ;;  %1866 = vmatpush.msrb.mxu2 %v498_v24  ;;  %v354_v38 = vld [vmem:[#allocation5 + $0x8b0] sm:$0xff]  ;;  %v3031_v23 = vld [vmem:[#allocation2 + $0x20] sm:$0xff] }
 0x206   :  { %1885 = vmatpush.msrb.mxu3 %v566_v25  ;;  %1827 = vmatpush.msrb.mxu0 %v366_v26  ;;  %v422_v39 = vld [vmem:[#allocation5 + $0xad0] sm:$0xff]  ;;  %v3032_v25 = vld [vmem:[#allocation2 + $0x38] sm:$0xff] }
 0x207   :  { %1846 = vmatpush.msrb.mxu1 %v434_v27  ;;  %1867 = vmatpush.msrb.mxu2 %v494_v28  ;;  %v482_v40 = vld [vmem:[#allocation5 + $0xcb0] sm:$0xff] }
 0x208   :  { %1886 = vmatpush.msrb.mxu3 %v562_v29  ;;  %1828 = vmatpush.msrb.mxu0 %v362_v30  ;;  %v550_v41 = vld [vmem:[#allocation5 + $0xed0] sm:$0xff]  ;;  %v3033_v30 = vld [vmem:[#allocation2 + $0x28] sm:$0xff] }
 0x209   :  { %1847 = vmatpush.msrb.mxu1 %v430_v31  ;;  %1868 = vmatpush.msrb.mxu2 %v490_v32  ;;  %v350_v42 = vld [vmem:[#allocation5 + $0x890] sm:$0xff] }
 0x20a   :  { %1887 = vmatpush.msrb.mxu3 %v558_v33  ;;  %1829 = vmatpush.msrb.mxu0 %v358_v34  ;;  %v418_v43 = vld [vmem:[#allocation5 + $0xab0] sm:$0xff] }
 0x20b   :  { %1848 = vmatpush.msrb.mxu1 %v426_v35  ;;  %1869 = vmatpush.msrb.mxu2 %v486_v36  ;;  %v478_v44 = vld [vmem:[#allocation5 + $0xc90] sm:$0xff] }
 0x20c   :  { %1888 = vmatpush.msrb.mxu3 %v554_v37  ;;  %1830 = vmatpush.msrb.mxu0 %v354_v38  ;;  %v546_v45 = vld [vmem:[#allocation5 + $0xeb0] sm:$0xff] }
 0x20d   :  { %1849 = vmatpush.msrb.mxu1 %v422_v39  ;;  %1870 = vmatpush.msrb.mxu2 %v482_v40  ;;  %v346_v46 = vld [vmem:[#allocation5 + $0x870] sm:$0xff] }
 0x20e   :  { %1889 = vmatpush.msrb.mxu3 %v550_v41  ;;  %v414_v47 = vld [vmem:[#allocation5 + $0xa90] sm:$0xff]  ;;  %1831 = vmatpush.msrb.mxu0 %v350_v42 }
 0x20f   :  { %1850 = vmatpush.msrb.mxu1 %v418_v43  ;;  %v474_v49 = vld [vmem:[#allocation5 + $0xc70] sm:$0xff]  ;;  %1871 = vmatpush.msrb.mxu2 %v478_v44 }
 0x210   :  { %v542_v48 = vld [vmem:[#allocation5 + $0xe90] sm:$0xff]  ;;  %1890 = vmatpush.msrb.mxu3 %v546_v45  ;;  %1832 = vmatpush.msrb.mxu0 %v346_v46 }
 0x211   :  { %v342_v50 = vld [vmem:[#allocation5 + $0x850] sm:$0xff]  ;;  %1851 = vmatpush.msrb.mxu1 %v414_v47  ;;  %1872 = vmatpush.msrb.mxu2 %v474_v49 }
 0x212   :  { %v410_v51 = vld [vmem:[#allocation5 + $0xa70] sm:$0xff]  ;;  %1891 = vmatpush.msrb.mxu3 %v542_v48  ;;  %1833 = vmatpush.msrb.mxu0 %v342_v50 }
 0x213   :  { %v470_v52 = vld [vmem:[#allocation5 + $0xc50] sm:$0xff]  ;;  %1852 = vmatpush.msrb.mxu1 %v410_v51  ;;  %1756 = vmatmul.f32.vlgmr.msra.gmra.mxu0 %v3027_v3 }
 0x214   :  { %v538_v53 = vld [vmem:[#allocation5 + $0xe70] sm:$0xff]  ;;  %1873 = vmatpush.msrb.mxu2 %v470_v52  ;;  %1816 = vmatmul.f32.vlgmr.msra.gmra.mxu3 %v3028_v5 }
 0x215   :  { %v338_v54 = vld [vmem:[#allocation5 + $0x830] sm:$0xff]  ;;  %1892 = vmatpush.msrb.mxu3 %v538_v53  ;;  %1776 = vmatmul.f32.vlgmr.msra.gmra.mxu1 %v3029_v10 }
 0x216   :  { %v406_v55 = vld [vmem:[#allocation5 + $0xa50] sm:$0xff]  ;;  %1834 = vmatpush.msrb.mxu0 %v338_v54 }
 0x217   :  { %v466_v56 = vld [vmem:[#allocation5 + $0xc30] sm:$0xff]  ;;  %1853 = vmatpush.msrb.mxu1 %v406_v55 }
 0x218   :  { %v534_v57 = vld [vmem:[#allocation5 + $0xe50] sm:$0xff]  ;;  %1874 = vmatpush.msrb.mxu2 %v466_v56 }
 0x219   :  { %v334_v58 = vld [vmem:[#allocation5 + $0x810] sm:$0xff]  ;;  %1893 = vmatpush.msrb.mxu3 %v534_v57 }
 0x21a   :  { %v402_v59 = vld [vmem:[#allocation5 + $0xa30] sm:$0xff]  ;;  %1835 = vmatpush.msrb.mxu0 %v334_v58 }
 0x21b   :  { %v462_v61 = vld [vmem:[#allocation5 + $0xc10] sm:$0xff]  ;;  %1854 = vmatpush.msrb.mxu1 %v402_v59  ;;  %1836 = vmatmul.f32.vlgmr.msrb.gmra.mxu0 %v3031_v23 }
 0x21c   :  { %v530_v62 = vld [vmem:[#allocation5 + $0xe30] sm:$0xff]  ;;  %1875 = vmatpush.msrb.mxu2 %v462_v61 }
 0x21d   :  { %v3026_v63 = vld [vmem:[#allocation2 + $0x10] sm:$0xff]  ;;  %1894 = vmatpush.msrb.mxu3 %v530_v62 }
 0x21e   :  { %1796 = vmatmul.f32.vlgmr.msra.gmra.mxu2 %v3026_v63  ;;  %v650_v0 = vld [vmem:[#allocation5 + $0x11f0] sm:$0xff] }
 0x21f   :  { %v778_v1 = vld [vmem:[#allocation5 + $0x15f0] sm:$0xff]  ;;  %1900 = vmatpush.msra.mxu0 %v650_v0 }
 0x220   :  { %v398_v2 = vld [vmem:[#allocation5 + $0xa10] sm:$0xff]  ;;  %1940 = vmatpush.msra.mxu2 %v778_v1 }
 0x221   :  { %v526_v4 = vld [vmem:[#allocation5 + $0xe10] sm:$0xff]  ;;  %1855 = vmatpush.msrb.mxu1 %v398_v2 }
 0x222   :  { %v646_v6 = vld [vmem:[#allocation5 + $0x11d0] sm:$0xff]  ;;  %1895 = vmatpush.msrb.mxu3 %v526_v4  ;;  %1856 = vmatmul.f32.vlgmr.msrb.gmra.mxu1 %v3033_v30 }
 0x223   :  { %v714_v7 = vld [vmem:[#allocation5 + $0x13f0] sm:$0xff]  ;;  %1901 = vmatpush.msra.mxu0 %v646_v6  ;;  %1896 = vmatmul.f32.vlgmr.msrb.gmra.mxu3 %v3032_v25 }
 0x224   :  { %v774_v8 = vld [vmem:[#allocation5 + $0x15d0] sm:$0xff]  ;;  %1920 = vmatpush.msra.mxu1 %v714_v7 }
 0x225   :  { %v842_v9 = vld [vmem:[#allocation5 + $0x17f0] sm:$0xff]  ;;  %1941 = vmatpush.msra.mxu2 %v774_v8 }
 0x226   :  { %v642_v11 = vld [vmem:[#allocation5 + $0x11b0] sm:$0xff]  ;;  %1960 = vmatpush.msra.mxu3 %v842_v9 }
 0x227   :  { %v710_v12 = vld [vmem:[#allocation5 + $0x13d0] sm:$0xff]  ;;  %1902 = vmatpush.msra.mxu0 %v642_v11 }
 0x228   :  { %v770_v13 = vld [vmem:[#allocation5 + $0x15b0] sm:$0xff]  ;;  %1921 = vmatpush.msra.mxu1 %v710_v12  ;;  %v3034_v12 = vld [vmem:[#allocation2 + $0x40] sm:$0xff] }
 0x229   :  { %v838_v14 = vld [vmem:[#allocation5 + $0x17d0] sm:$0xff]  ;;  %1942 = vmatpush.msra.mxu2 %v770_v13 }
 0x22a   :  { %v638_v15 = vld [vmem:[#allocation5 + $0x1190] sm:$0xff]  ;;  %1961 = vmatpush.msra.mxu3 %v838_v14 }
 0x22b   :  { %v706_v16 = vld [vmem:[#allocation5 + $0x13b0] sm:$0xff]  ;;  %1903 = vmatpush.msra.mxu0 %v638_v15 }
 0x22c   :  { %v766_v17 = vld [vmem:[#allocation5 + $0x1590] sm:$0xff]  ;;  %1922 = vmatpush.msra.mxu1 %v706_v16 }
 0x22d   :  { %v834_v18 = vld [vmem:[#allocation5 + $0x17b0] sm:$0xff]  ;;  %1943 = vmatpush.msra.mxu2 %v766_v17 }
 0x22e   :  { %v3030_v19 = vld [vmem:[#allocation2 + $0x30] sm:$0xff]  ;;  %1962 = vmatpush.msra.mxu3 %v834_v18  ;;  %v3036_v18 = vld [vmem:[#allocation2 + $0x48] sm:$0xff] }
 0x22f   :  { %1876 = vmatmul.f32.vlgmr.msrb.gmra.mxu2 %v3030_v19  ;;  %v634_v20 = vld [vmem:[#allocation5 + $0x1170] sm:$0xff]  ;;  %v3037_v19 = vld [vmem:[#allocation2 + $0x58] sm:$0xff] }
 0x230   :  { %v702_v21 = vld [vmem:[#allocation5 + $0x1390] sm:$0xff]  ;;  %1904 = vmatpush.msra.mxu0 %v634_v20 }
 0x231   :  { %v762_v22 = vld [vmem:[#allocation5 + $0x1570] sm:$0xff]  ;;  %1923 = vmatpush.msra.mxu1 %v702_v21 }
 0x232   :  { %v830_v24 = vld [vmem:[#allocation5 + $0x1790] sm:$0xff]  ;;  %1944 = vmatpush.msra.mxu2 %v762_v22 }
 0x233   :  { %v630_v26 = vld [vmem:[#allocation5 + $0x1150] sm:$0xff]  ;;  %1963 = vmatpush.msra.mxu3 %v830_v24 }
 0x234   :  { %v698_v27 = vld [vmem:[#allocation5 + $0x1370] sm:$0xff]  ;;  %1905 = vmatpush.msra.mxu0 %v630_v26 }
 0x235   :  { %v758_v28 = vld [vmem:[#allocation5 + $0x1550] sm:$0xff]  ;;  %1924 = vmatpush.msra.mxu1 %v698_v27 }
 0x236   :  { %v826_v29 = vld [vmem:[#allocation5 + $0x1770] sm:$0xff]  ;;  %1945 = vmatpush.msra.mxu2 %v758_v28 }
 0x237   :  { %v626_v31 = vld [vmem:[#allocation5 + $0x1130] sm:$0xff]  ;;  %1964 = vmatpush.msra.mxu3 %v826_v29 }
 0x238   :  { %v694_v32 = vld [vmem:[#allocation5 + $0x1350] sm:$0xff]  ;;  %1906 = vmatpush.msra.mxu0 %v626_v31 }
 0x239   :  { %v754_v33 = vld [vmem:[#allocation5 + $0x1530] sm:$0xff]  ;;  %1925 = vmatpush.msra.mxu1 %v694_v32 }
 0x23a   :  { %v822_v34 = vld [vmem:[#allocation5 + $0x1750] sm:$0xff]  ;;  %1946 = vmatpush.msra.mxu2 %v754_v33 }
 0x23b   :  { %v622_v35 = vld [vmem:[#allocation5 + $0x1110] sm:$0xff]  ;;  %1965 = vmatpush.msra.mxu3 %v822_v34 }
 0x23c   :  { %v690_v36 = vld [vmem:[#allocation5 + $0x1330] sm:$0xff]  ;;  %1907 = vmatpush.msra.mxu0 %v622_v35 }
 0x23d   :  { %v750_v37 = vld [vmem:[#allocation5 + $0x1510] sm:$0xff]  ;;  %1926 = vmatpush.msra.mxu1 %v690_v36 }
 0x23e   :  { %v818_v38 = vld [vmem:[#allocation5 + $0x1730] sm:$0xff]  ;;  %1947 = vmatpush.msra.mxu2 %v750_v37 }
 0x23f   :  { %v618_v39 = vld [vmem:[#allocation5 + $0x10f0] sm:$0xff]  ;;  %1966 = vmatpush.msra.mxu3 %v818_v38 }
 0x240   :  { %v686_v40 = vld [vmem:[#allocation5 + $0x1310] sm:$0xff]  ;;  %1908 = vmatpush.msra.mxu0 %v618_v39 }
 0x241   :  { %v746_v41 = vld [vmem:[#allocation5 + $0x14f0] sm:$0xff]  ;;  %1927 = vmatpush.msra.mxu1 %v686_v40 }
 0x242   :  { %v814_v42 = vld [vmem:[#allocation5 + $0x1710] sm:$0xff]  ;;  %1948 = vmatpush.msra.mxu2 %v746_v41 }
 0x243   :  { %v614_v43 = vld [vmem:[#allocation5 + $0x10d0] sm:$0xff]  ;;  %1967 = vmatpush.msra.mxu3 %v814_v42 }
 0x244   :  { %v682_v44 = vld [vmem:[#allocation5 + $0x12f0] sm:$0xff]  ;;  %1909 = vmatpush.msra.mxu0 %v614_v43 }
 0x245   :  { %v742_v45 = vld [vmem:[#allocation5 + $0x14d0] sm:$0xff]  ;;  %1928 = vmatpush.msra.mxu1 %v682_v44 }
 0x246   :  { %v810_v46 = vld [vmem:[#allocation5 + $0x16f0] sm:$0xff]  ;;  %1949 = vmatpush.msra.mxu2 %v742_v45 }
 0x247   :  { %v610_v47 = vld [vmem:[#allocation5 + $0x10b0] sm:$0xff]  ;;  %1968 = vmatpush.msra.mxu3 %v810_v46 }
 0x248   :  { %v678_v49 = vld [vmem:[#allocation5 + $0x12d0] sm:$0xff]  ;;  %1910 = vmatpush.msra.mxu0 %v610_v47 }
 0x249   :  { %v738_v48 = vld [vmem:[#allocation5 + $0x14b0] sm:$0xff]  ;;  %1929 = vmatpush.msra.mxu1 %v678_v49 }
 0x24a   :  { %v806_v50 = vld [vmem:[#allocation5 + $0x16d0] sm:$0xff]  ;;  %1950 = vmatpush.msra.mxu2 %v738_v48 }
 0x24b   :  { %v606_v51 = vld [vmem:[#allocation5 + $0x1090] sm:$0xff]  ;;  %1969 = vmatpush.msra.mxu3 %v806_v50 }
 0x24c   :  { %v674_v52 = vld [vmem:[#allocation5 + $0x12b0] sm:$0xff]  ;;  %1911 = vmatpush.msra.mxu0 %v606_v51 }
 0x24d   :  { %v734_v53 = vld [vmem:[#allocation5 + $0x1490] sm:$0xff]  ;;  %1930 = vmatpush.msra.mxu1 %v674_v52 }
 0x24e   :  { %v802_v54 = vld [vmem:[#allocation5 + $0x16b0] sm:$0xff]  ;;  %1951 = vmatpush.msra.mxu2 %v734_v53 }
 0x24f   :  { %v602_v55 = vld [vmem:[#allocation5 + $0x1070] sm:$0xff]  ;;  %1970 = vmatpush.msra.mxu3 %v802_v54 }
 0x250   :  { %v670_v56 = vld [vmem:[#allocation5 + $0x1290] sm:$0xff]  ;;  %1912 = vmatpush.msra.mxu0 %v602_v55 }
 0x251   :  { %v730_v57 = vld [vmem:[#allocation5 + $0x1470] sm:$0xff]  ;;  %1931 = vmatpush.msra.mxu1 %v670_v56 }
 0x252   :  { %v798_v58 = vld [vmem:[#allocation5 + $0x1690] sm:$0xff]  ;;  %1952 = vmatpush.msra.mxu2 %v730_v57 }
 0x253   :  { %v598_v59 = vld [vmem:[#allocation5 + $0x1050] sm:$0xff]  ;;  %1971 = vmatpush.msra.mxu3 %v798_v58 }
 0x254   :  { %v666_v61 = vld [vmem:[#allocation5 + $0x1270] sm:$0xff]  ;;  %1913 = vmatpush.msra.mxu0 %v598_v59 }
 0x255   :  { %v726_v62 = vld [vmem:[#allocation5 + $0x1450] sm:$0xff]  ;;  %1932 = vmatpush.msra.mxu1 %v666_v61 }
 0x256   :  { %v794_v63 = vld [vmem:[#allocation5 + $0x1670] sm:$0xff]  ;;  %1953 = vmatpush.msra.mxu2 %v726_v62 }
 0x257   :  { %v594_v0 = vld [vmem:[#allocation5 + $0x1030] sm:$0xff]  ;;  %1972 = vmatpush.msra.mxu3 %v794_v63 }
 0x258   :  { %v662_v1 = vld [vmem:[#allocation5 + $0x1250] sm:$0xff]  ;;  %1914 = vmatpush.msra.mxu0 %v594_v0 }
 0x259   :  { %v722_v2 = vld [vmem:[#allocation5 + $0x1430] sm:$0xff]  ;;  %1933 = vmatpush.msra.mxu1 %v662_v1 }
 0x25a   :  { %v790_v3 = vld [vmem:[#allocation5 + $0x1650] sm:$0xff]  ;;  %1954 = vmatpush.msra.mxu2 %v722_v2 }
 0x25b   :  { %v590_v4 = vld [vmem:[#allocation5 + $0x1010] sm:$0xff]  ;;  %1973 = vmatpush.msra.mxu3 %v790_v3 }
 0x25c   :  { %v658_v5 = vld [vmem:[#allocation5 + $0x1230] sm:$0xff]  ;;  %1915 = vmatpush.msra.mxu0 %v590_v4 }
 0x25d   :  { %v718_v6 = vld [vmem:[#allocation5 + $0x1410] sm:$0xff]  ;;  %1934 = vmatpush.msra.mxu1 %v658_v5  ;;  %1916 = vmatmul.f32.vlgmr.msra.gmra.mxu0 %v3034_v12 }
 0x25e   :  { %v786_v7 = vld [vmem:[#allocation5 + $0x1630] sm:$0xff]  ;;  %1955 = vmatpush.msra.mxu2 %v718_v6 }
 0x25f   :  { %v906_v8 = vld [vmem:[#allocation5 + $0x19f0] sm:$0xff]  ;;  %1974 = vmatpush.msra.mxu3 %v786_v7 }
 0x260   :  { %v1034_v9 = vld [vmem:[#allocation5 + $0x1df0] sm:$0xff]  ;;  %1980 = vmatpush.msrb.mxu0 %v906_v8 }
 0x261   :  { %v654_v10 = vld [vmem:[#allocation5 + $0x1210] sm:$0xff]  ;;  %2020 = vmatpush.msrb.mxu2 %v1034_v9 }
 0x262   :  { %v782_v11 = vld [vmem:[#allocation5 + $0x1610] sm:$0xff]  ;;  %1935 = vmatpush.msra.mxu1 %v654_v10 }
 0x263   :  { %v3035_v13 = vld [vmem:[#allocation2 + $0x50] sm:$0xff]  ;;  %1975 = vmatpush.msra.mxu3 %v782_v11  ;;  %1936 = vmatmul.f32.vlgmr.msra.gmra.mxu1 %v3036_v18 }
 0x264   :  { %1956 = vmatmul.f32.vlgmr.msra.gmra.mxu2 %v3035_v13  ;;  %v902_v14 = vld [vmem:[#allocation5 + $0x19d0] sm:$0xff]  ;;  %1976 = vmatmul.f32.vlgmr.msra.gmra.mxu3 %v3037_v19  ;;  %v139_v13 = vld [vmem:[#allocation5 + $0x1f8] sm:$0xff] }
 0x265   :  { %v970_v15 = vld [vmem:[#allocation5 + $0x1bf0] sm:$0xff]  ;;  %1981 = vmatpush.msrb.mxu0 %v902_v14  ;;  %v267_v14 = vld [vmem:[#allocation5 + $0x5f8] sm:$0xff] }
 0x266   :  { %v1030_v16 = vld [vmem:[#allocation5 + $0x1dd0] sm:$0xff]  ;;  %2000 = vmatpush.msrb.mxu1 %v970_v15  ;;  %v135_v19 = vld [vmem:[#allocation5 + $0x1d8] sm:$0xff] }
 0x267   :  { %v1098_v17 = vld [vmem:[#allocation5 + $0x1ff0] sm:$0xff]  ;;  %2021 = vmatpush.msrb.mxu2 %v1030_v16 }
 0x268   :  { %v898_v20 = vld [vmem:[#allocation5 + $0x19b0] sm:$0xff]  ;;  %2040 = vmatpush.msrb.mxu3 %v1098_v17  ;;  %v3038_v17 = vld [vmem:[#allocation2 + $0x60] sm:$0xff] }
 0x269   :  { %v966_v21 = vld [vmem:[#allocation5 + $0x1bd0] sm:$0xff]  ;;  %1982 = vmatpush.msrb.mxu0 %v898_v20  ;;  %v203_v20 = vld [vmem:[#allocation5 + $0x3f8] sm:$0xff] }
 0x26a   :  { %v1026_v22 = vld [vmem:[#allocation5 + $0x1db0] sm:$0xff]  ;;  %2001 = vmatpush.msrb.mxu1 %v966_v21  ;;  %v263_v21 = vld [vmem:[#allocation5 + $0x5d8] sm:$0xff] }
 0x26b   :  { %v1094_v23 = vld [vmem:[#allocation5 + $0x1fd0] sm:$0xff]  ;;  %2022 = vmatpush.msrb.mxu2 %v1026_v22  ;;  %v331_v22 = vld [vmem:[#allocation5 + $0x7f8] sm:$0xff] }
 0x26c   :  { %v894_v24 = vld [vmem:[#allocation5 + $0x1990] sm:$0xff]  ;;  %2041 = vmatpush.msrb.mxu3 %v1094_v23  ;;  %v3040_v23 = vld [vmem:[#allocation2 + $0x68] sm:$0xff] }
 0x26d   :  { %v962_v25 = vld [vmem:[#allocation5 + $0x1bb0] sm:$0xff]  ;;  %1983 = vmatpush.msrb.mxu0 %v894_v24  ;;  %v3041_v24 = vld [vmem:[#allocation2 + $0x78] sm:$0xff] }
 0x26e   :  { %v1022_v26 = vld [vmem:[#allocation5 + $0x1d90] sm:$0xff]  ;;  %2002 = vmatpush.msrb.mxu1 %v962_v25  ;;  %v131_v25 = vld [vmem:[#allocation5 + $0x1b8] sm:$0xff] }
 0x26f   :  { %v1090_v27 = vld [vmem:[#allocation5 + $0x1fb0] sm:$0xff]  ;;  %2023 = vmatpush.msrb.mxu2 %v1022_v26  ;;  %v199_v26 = vld [vmem:[#allocation5 + $0x3d8] sm:$0xff] }
 0x270   :  { %v890_v28 = vld [vmem:[#allocation5 + $0x1970] sm:$0xff]  ;;  %2042 = vmatpush.msrb.mxu3 %v1090_v27  ;;  %v259_v27 = vld [vmem:[#allocation5 + $0x5b8] sm:$0xff] }
 0x271   :  { %v958_v29 = vld [vmem:[#allocation5 + $0x1b90] sm:$0xff]  ;;  %1984 = vmatpush.msrb.mxu0 %v890_v28  ;;  %v327_v28 = vld [vmem:[#allocation5 + $0x7d8] sm:$0xff] }
 0x272   :  { %v1018_v30 = vld [vmem:[#allocation5 + $0x1d70] sm:$0xff]  ;;  %2003 = vmatpush.msrb.mxu1 %v958_v29  ;;  %v127_v29 = vld [vmem:[#allocation5 + $0x198] sm:$0xff] }
 0x273   :  { %v1086_v31 = vld [vmem:[#allocation5 + $0x1f90] sm:$0xff]  ;;  %2024 = vmatpush.msrb.mxu2 %v1018_v30  ;;  %v195_v30 = vld [vmem:[#allocation5 + $0x3b8] sm:$0xff] }
 0x274   :  { %v886_v32 = vld [vmem:[#allocation5 + $0x1950] sm:$0xff]  ;;  %2043 = vmatpush.msrb.mxu3 %v1086_v31  ;;  %v255_v31 = vld [vmem:[#allocation5 + $0x598] sm:$0xff] }
 0x275   :  { %v954_v33 = vld [vmem:[#allocation5 + $0x1b70] sm:$0xff]  ;;  %1985 = vmatpush.msrb.mxu0 %v886_v32  ;;  %v323_v32 = vld [vmem:[#allocation5 + $0x7b8] sm:$0xff] }
 0x276   :  { %v1014_v34 = vld [vmem:[#allocation5 + $0x1d50] sm:$0xff]  ;;  %2004 = vmatpush.msrb.mxu1 %v954_v33  ;;  %v123_v33 = vld [vmem:[#allocation5 + $0x178] sm:$0xff] }
 0x277   :  { %v1082_v35 = vld [vmem:[#allocation5 + $0x1f70] sm:$0xff]  ;;  %2025 = vmatpush.msrb.mxu2 %v1014_v34  ;;  %v191_v34 = vld [vmem:[#allocation5 + $0x398] sm:$0xff] }
 0x278   :  { %v882_v36 = vld [vmem:[#allocation5 + $0x1930] sm:$0xff]  ;;  %2044 = vmatpush.msrb.mxu3 %v1082_v35  ;;  %v251_v35 = vld [vmem:[#allocation5 + $0x578] sm:$0xff] }
 0x279   :  { %v950_v37 = vld [vmem:[#allocation5 + $0x1b50] sm:$0xff]  ;;  %1986 = vmatpush.msrb.mxu0 %v882_v36  ;;  %v319_v36 = vld [vmem:[#allocation5 + $0x798] sm:$0xff] }
 0x27a   :  { %v1010_v38 = vld [vmem:[#allocation5 + $0x1d30] sm:$0xff]  ;;  %2005 = vmatpush.msrb.mxu1 %v950_v37  ;;  %v119_v37 = vld [vmem:[#allocation5 + $0x158] sm:$0xff] }
 0x27b   :  { %v1078_v39 = vld [vmem:[#allocation5 + $0x1f50] sm:$0xff]  ;;  %2026 = vmatpush.msrb.mxu2 %v1010_v38  ;;  %v187_v38 = vld [vmem:[#allocation5 + $0x378] sm:$0xff] }
 0x27c   :  { %v878_v40 = vld [vmem:[#allocation5 + $0x1910] sm:$0xff]  ;;  %2045 = vmatpush.msrb.mxu3 %v1078_v39  ;;  %v247_v39 = vld [vmem:[#allocation5 + $0x558] sm:$0xff] }
 0x27d   :  { %v946_v41 = vld [vmem:[#allocation5 + $0x1b30] sm:$0xff]  ;;  %1987 = vmatpush.msrb.mxu0 %v878_v40  ;;  %v315_v40 = vld [vmem:[#allocation5 + $0x778] sm:$0xff] }
 0x27e   :  { %v1006_v42 = vld [vmem:[#allocation5 + $0x1d10] sm:$0xff]  ;;  %2006 = vmatpush.msrb.mxu1 %v946_v41  ;;  %v115_v41 = vld [vmem:[#allocation5 + $0x138] sm:$0xff] }
 0x27f   :  { %v1074_v43 = vld [vmem:[#allocation5 + $0x1f30] sm:$0xff]  ;;  %2027 = vmatpush.msrb.mxu2 %v1006_v42  ;;  %v183_v42 = vld [vmem:[#allocation5 + $0x358] sm:$0xff] }
 0x280   :  { %v874_v44 = vld [vmem:[#allocation5 + $0x18f0] sm:$0xff]  ;;  %2046 = vmatpush.msrb.mxu3 %v1074_v43  ;;  %v243_v43 = vld [vmem:[#allocation5 + $0x538] sm:$0xff] }
 0x281   :  { %v942_v45 = vld [vmem:[#allocation5 + $0x1b10] sm:$0xff]  ;;  %1988 = vmatpush.msrb.mxu0 %v874_v44  ;;  %v311_v44 = vld [vmem:[#allocation5 + $0x758] sm:$0xff] }
 0x282   :  { %v1002_v46 = vld [vmem:[#allocation5 + $0x1cf0] sm:$0xff]  ;;  %2007 = vmatpush.msrb.mxu1 %v942_v45  ;;  %v111_v45 = vld [vmem:[#allocation5 + $0x118] sm:$0xff] }
 0x283   :  { %v1070_v47 = vld [vmem:[#allocation5 + $0x1f10] sm:$0xff]  ;;  %2028 = vmatpush.msrb.mxu2 %v1002_v46  ;;  %v179_v46 = vld [vmem:[#allocation5 + $0x338] sm:$0xff] }
 0x284   :  { %v870_v49 = vld [vmem:[#allocation5 + $0x18d0] sm:$0xff]  ;;  %2047 = vmatpush.msrb.mxu3 %v1070_v47  ;;  %v239_v47 = vld [vmem:[#allocation5 + $0x518] sm:$0xff] }
 0x285   :  { %v938_v48 = vld [vmem:[#allocation5 + $0x1af0] sm:$0xff]  ;;  %1989 = vmatpush.msrb.mxu0 %v870_v49  ;;  %v307_v49 = vld [vmem:[#allocation5 + $0x738] sm:$0xff] }
 0x286   :  { %v998_v50 = vld [vmem:[#allocation5 + $0x1cd0] sm:$0xff]  ;;  %2008 = vmatpush.msrb.mxu1 %v938_v48  ;;  %v107_v48 = vld [vmem:[#allocation5 + $0xf8] sm:$0xff] }
 0x287   :  { %v1066_v51 = vld [vmem:[#allocation5 + $0x1ef0] sm:$0xff]  ;;  %2029 = vmatpush.msrb.mxu2 %v998_v50  ;;  %v175_v50 = vld [vmem:[#allocation5 + $0x318] sm:$0xff] }
 0x288   :  { %v866_v52 = vld [vmem:[#allocation5 + $0x18b0] sm:$0xff]  ;;  %2048 = vmatpush.msrb.mxu3 %v1066_v51  ;;  %v235_v51 = vld [vmem:[#allocation5 + $0x4f8] sm:$0xff] }
 0x289   :  { %v934_v53 = vld [vmem:[#allocation5 + $0x1ad0] sm:$0xff]  ;;  %1990 = vmatpush.msrb.mxu0 %v866_v52  ;;  %v303_v52 = vld [vmem:[#allocation5 + $0x718] sm:$0xff] }
 0x28a   :  { %v994_v54 = vld [vmem:[#allocation5 + $0x1cb0] sm:$0xff]  ;;  %2009 = vmatpush.msrb.mxu1 %v934_v53  ;;  %v103_v53 = vld [vmem:[#allocation5 + $0xd8] sm:$0xff] }
 0x28b   :  { %v1062_v55 = vld [vmem:[#allocation5 + $0x1ed0] sm:$0xff]  ;;  %2030 = vmatpush.msrb.mxu2 %v994_v54  ;;  %v171_v54 = vld [vmem:[#allocation5 + $0x2f8] sm:$0xff] }
 0x28c   :  { %v862_v56 = vld [vmem:[#allocation5 + $0x1890] sm:$0xff]  ;;  %2049 = vmatpush.msrb.mxu3 %v1062_v55  ;;  %v231_v55 = vld [vmem:[#allocation5 + $0x4d8] sm:$0xff] }
 0x28d   :  { %v930_v57 = vld [vmem:[#allocation5 + $0x1ab0] sm:$0xff]  ;;  %1991 = vmatpush.msrb.mxu0 %v862_v56  ;;  %v299_v56 = vld [vmem:[#allocation5 + $0x6f8] sm:$0xff] }
 0x28e   :  { %v990_v58 = vld [vmem:[#allocation5 + $0x1c90] sm:$0xff]  ;;  %2010 = vmatpush.msrb.mxu1 %v930_v57  ;;  %v99_v57 = vld [vmem:[#allocation5 + $0xb8] sm:$0xff] }
 0x28f   :  { %v1058_v59 = vld [vmem:[#allocation5 + $0x1eb0] sm:$0xff]  ;;  %2031 = vmatpush.msrb.mxu2 %v990_v58  ;;  %v167_v58 = vld [vmem:[#allocation5 + $0x2d8] sm:$0xff] }
 0x290   :  { %v858_v61 = vld [vmem:[#allocation5 + $0x1870] sm:$0xff]  ;;  %2050 = vmatpush.msrb.mxu3 %v1058_v59  ;;  %v227_v59 = vld [vmem:[#allocation5 + $0x4b8] sm:$0xff] }
 0x291   :  { %v926_v62 = vld [vmem:[#allocation5 + $0x1a90] sm:$0xff]  ;;  %1992 = vmatpush.msrb.mxu0 %v858_v61  ;;  %v295_v61 = vld [vmem:[#allocation5 + $0x6d8] sm:$0xff] }
 0x292   :  { %v986_v63 = vld [vmem:[#allocation5 + $0x1c70] sm:$0xff]  ;;  %2011 = vmatpush.msrb.mxu1 %v926_v62  ;;  %v95_v62 = vld [vmem:[#allocation5 + $0x98] sm:$0xff] }
 0x293   :  { %v1054_v0 = vld [vmem:[#allocation5 + $0x1e90] sm:$0xff]  ;;  %2032 = vmatpush.msrb.mxu2 %v986_v63  ;;  %v163_v63 = vld [vmem:[#allocation5 + $0x2b8] sm:$0xff] }
 0x294   :  { %v854_v1 = vld [vmem:[#allocation5 + $0x1850] sm:$0xff]  ;;  %2051 = vmatpush.msrb.mxu3 %v1054_v0  ;;  %v223_v0 = vld [vmem:[#allocation5 + $0x498] sm:$0xff] }
 0x295   :  { %v922_v2 = vld [vmem:[#allocation5 + $0x1a70] sm:$0xff]  ;;  %1993 = vmatpush.msrb.mxu0 %v854_v1  ;;  %v291_v1 = vld [vmem:[#allocation5 + $0x6b8] sm:$0xff] }
 0x296   :  { %v982_v3 = vld [vmem:[#allocation5 + $0x1c50] sm:$0xff]  ;;  %2012 = vmatpush.msrb.mxu1 %v922_v2  ;;  %v91_v2 = vld [vmem:[#allocation5 + $0x78] sm:$0xff] }
 0x297   :  { %v1050_v4 = vld [vmem:[#allocation5 + $0x1e70] sm:$0xff]  ;;  %2033 = vmatpush.msrb.mxu2 %v982_v3  ;;  %v159_v3 = vld [vmem:[#allocation5 + $0x298] sm:$0xff] }
 0x298   :  { %v850_v5 = vld [vmem:[#allocation5 + $0x1830] sm:$0xff]  ;;  %2052 = vmatpush.msrb.mxu3 %v1050_v4  ;;  %v219_v4 = vld [vmem:[#allocation5 + $0x478] sm:$0xff] }
 0x299   :  { %v918_v6 = vld [vmem:[#allocation5 + $0x1a50] sm:$0xff]  ;;  %1994 = vmatpush.msrb.mxu0 %v850_v5  ;;  %v287_v5 = vld [vmem:[#allocation5 + $0x698] sm:$0xff] }
 0x29a   :  { %v978_v7 = vld [vmem:[#allocation5 + $0x1c30] sm:$0xff]  ;;  %2013 = vmatpush.msrb.mxu1 %v918_v6  ;;  %v87_v6 = vld [vmem:[#allocation5 + $0x58] sm:$0xff] }
 0x29b   :  { %v1046_v8 = vld [vmem:[#allocation5 + $0x1e50] sm:$0xff]  ;;  %2034 = vmatpush.msrb.mxu2 %v978_v7  ;;  %v155_v7 = vld [vmem:[#allocation5 + $0x278] sm:$0xff] }
 0x29c   :  { %v846_v9 = vld [vmem:[#allocation5 + $0x1810] sm:$0xff]  ;;  %2053 = vmatpush.msrb.mxu3 %v1046_v8  ;;  %v215_v8 = vld [vmem:[#allocation5 + $0x458] sm:$0xff] }
 0x29d   :  { %v914_v10 = vld [vmem:[#allocation5 + $0x1a30] sm:$0xff]  ;;  %1995 = vmatpush.msrb.mxu0 %v846_v9  ;;  %v283_v9 = vld [vmem:[#allocation5 + $0x678] sm:$0xff] }
 0x29e   :  { %v974_v11 = vld [vmem:[#allocation5 + $0x1c10] sm:$0xff]  ;;  %2014 = vmatpush.msrb.mxu1 %v914_v10  ;;  %1996 = vmatmul.f32.vlgmr.msrb.gmra.mxu0 %v3038_v17  ;;  %v83_v10 = vld [vmem:[#allocation5 + $0x38] sm:$0xff] }
 0x29f   :  { %v1042_v12 = vld [vmem:[#allocation5 + $0x1e30] sm:$0xff]  ;;  %2035 = vmatpush.msrb.mxu2 %v974_v11  ;;  %2060 = vmatpush.msra.mxu0 %v139_v13  ;;  %v151_v11 = vld [vmem:[#allocation5 + $0x258] sm:$0xff] }
 0x2a0   :  { %2054 = vmatpush.msrb.mxu3 %v1042_v12  ;;  %v910_v15 = vld [vmem:[#allocation5 + $0x1a10] sm:$0xff]  ;;  %v211_v12 = vld [vmem:[#allocation5 + $0x438] sm:$0xff] }
 0x2a1   :  { %v1038_v16 = vld [vmem:[#allocation5 + $0x1e10] sm:$0xff]  ;;  %2100 = vmatpush.msra.mxu2 %v267_v14  ;;  %2015 = vmatpush.msrb.mxu1 %v910_v15  ;;  %v279_v13 = vld [vmem:[#allocation5 + $0x658] sm:$0xff] }
 0x2a2   :  { %v3039_v18 = vld [vmem:[#allocation2 + $0x70] sm:$0xff]  ;;  %2055 = vmatpush.msrb.mxu3 %v1038_v16  ;;  %2016 = vmatmul.f32.vlgmr.msrb.gmra.mxu1 %v3040_v23  ;;  %v79_v14 = vld [vmem:[#allocation5 + $0x18] sm:$0xff] }
 0x2a3   :  { %2036 = vmatmul.f32.vlgmr.msrb.gmra.mxu2 %v3039_v18  ;;  %2056 = vmatmul.f32.vlgmr.msrb.gmra.mxu3 %v3041_v24  ;;  %v147_v15 = vld [vmem:[#allocation5 + $0x238] sm:$0xff] }
 0x2a4   :  { %2061 = vmatpush.msra.mxu0 %v135_v19  ;;  %2080 = vmatpush.msra.mxu1 %v203_v20  ;;  %v207_v16 = vld [vmem:[#allocation5 + $0x418] sm:$0xff] }
 0x2a5   :  { %2101 = vmatpush.msra.mxu2 %v263_v21  ;;  %2120 = vmatpush.msra.mxu3 %v331_v22  ;;  %v275_v17 = vld [vmem:[#allocation5 + $0x638] sm:$0xff] }
 0x2a6   :  { %2062 = vmatpush.msra.mxu0 %v131_v25  ;;  %2081 = vmatpush.msra.mxu1 %v199_v26  ;;  %v395_v18 = vld [vmem:[#allocation5 + $0x9f8] sm:$0xff] }
 0x2a7   :  { %2102 = vmatpush.msra.mxu2 %v259_v27  ;;  %2121 = vmatpush.msra.mxu3 %v327_v28  ;;  %v523_v19 = vld [vmem:[#allocation5 + $0xdf8] sm:$0xff] }
 0x2a8   :  { %2063 = vmatpush.msra.mxu0 %v127_v29  ;;  %2082 = vmatpush.msra.mxu1 %v195_v30  ;;  %v143_v20 = vld [vmem:[#allocation5 + $0x218] sm:$0xff] }
 0x2a9   :  { %2103 = vmatpush.msra.mxu2 %v255_v31  ;;  %2122 = vmatpush.msra.mxu3 %v323_v32  ;;  %v271_v21 = vld [vmem:[#allocation5 + $0x618] sm:$0xff] }
 0x2aa   :  { %2064 = vmatpush.msra.mxu0 %v123_v33  ;;  %2083 = vmatpush.msra.mxu1 %v191_v34  ;;  %v391_v22 = vld [vmem:[#allocation5 + $0x9d8] sm:$0xff] }
 0x2ab   :  { %2104 = vmatpush.msra.mxu2 %v251_v35  ;;  %2123 = vmatpush.msra.mxu3 %v319_v36  ;;  %v459_v23 = vld [vmem:[#allocation5 + $0xbf8] sm:$0xff] }
 0x2ac   :  { %2065 = vmatpush.msra.mxu0 %v119_v37  ;;  %2084 = vmatpush.msra.mxu1 %v187_v38  ;;  %v519_v24 = vld [vmem:[#allocation5 + $0xdd8] sm:$0xff] }
 0x2ad   :  { %2105 = vmatpush.msra.mxu2 %v247_v39  ;;  %2124 = vmatpush.msra.mxu3 %v315_v40  ;;  %v587_v25 = vld [vmem:[#allocation5 + $0xff8] sm:$0xff] }
 0x2ae   :  { %2066 = vmatpush.msra.mxu0 %v115_v41  ;;  %2085 = vmatpush.msra.mxu1 %v183_v42  ;;  %v387_v26 = vld [vmem:[#allocation5 + $0x9b8] sm:$0xff] }
 0x2af   :  { %2106 = vmatpush.msra.mxu2 %v243_v43  ;;  %2125 = vmatpush.msra.mxu3 %v311_v44  ;;  %v455_v27 = vld [vmem:[#allocation5 + $0xbd8] sm:$0xff] }
 0x2b0   :  { %2067 = vmatpush.msra.mxu0 %v111_v45  ;;  %2086 = vmatpush.msra.mxu1 %v179_v46  ;;  %v515_v28 = vld [vmem:[#allocation5 + $0xdb8] sm:$0xff] }
 0x2b1   :  { %2107 = vmatpush.msra.mxu2 %v239_v47  ;;  %2126 = vmatpush.msra.mxu3 %v307_v49  ;;  %v583_v29 = vld [vmem:[#allocation5 + $0xfd8] sm:$0xff] }
 0x2b2   :  { %2068 = vmatpush.msra.mxu0 %v107_v48  ;;  %2087 = vmatpush.msra.mxu1 %v175_v50  ;;  %v383_v30 = vld [vmem:[#allocation5 + $0x998] sm:$0xff] }
 0x2b3   :  { %2108 = vmatpush.msra.mxu2 %v235_v51  ;;  %2127 = vmatpush.msra.mxu3 %v303_v52  ;;  %v451_v31 = vld [vmem:[#allocation5 + $0xbb8] sm:$0xff] }
 0x2b4   :  { %2069 = vmatpush.msra.mxu0 %v103_v53  ;;  %2088 = vmatpush.msra.mxu1 %v171_v54  ;;  %v511_v32 = vld [vmem:[#allocation5 + $0xd98] sm:$0xff] }
 0x2b5   :  { %2109 = vmatpush.msra.mxu2 %v231_v55  ;;  %2128 = vmatpush.msra.mxu3 %v299_v56  ;;  %v579_v33 = vld [vmem:[#allocation5 + $0xfb8] sm:$0xff] }
 0x2b6   :  { %2070 = vmatpush.msra.mxu0 %v99_v57  ;;  %2089 = vmatpush.msra.mxu1 %v167_v58  ;;  %v379_v34 = vld [vmem:[#allocation5 + $0x978] sm:$0xff] }
 0x2b7   :  { %2110 = vmatpush.msra.mxu2 %v227_v59  ;;  %2129 = vmatpush.msra.mxu3 %v295_v61  ;;  %v447_v35 = vld [vmem:[#allocation5 + $0xb98] sm:$0xff] }
 0x2b8   :  { %2071 = vmatpush.msra.mxu0 %v95_v62  ;;  %2090 = vmatpush.msra.mxu1 %v163_v63  ;;  %v507_v36 = vld [vmem:[#allocation5 + $0xd78] sm:$0xff] }
 0x2b9   :  { %2111 = vmatpush.msra.mxu2 %v223_v0  ;;  %2130 = vmatpush.msra.mxu3 %v291_v1  ;;  %v575_v37 = vld [vmem:[#allocation5 + $0xf98] sm:$0xff] }
 0x2ba   :  { %2072 = vmatpush.msra.mxu0 %v91_v2  ;;  %2091 = vmatpush.msra.mxu1 %v159_v3  ;;  %v375_v38 = vld [vmem:[#allocation5 + $0x958] sm:$0xff] }
 0x2bb   :  { %2112 = vmatpush.msra.mxu2 %v219_v4  ;;  %2131 = vmatpush.msra.mxu3 %v287_v5  ;;  %v443_v39 = vld [vmem:[#allocation5 + $0xb78] sm:$0xff] }
 0x2bc   :  { %2073 = vmatpush.msra.mxu0 %v87_v6  ;;  %2092 = vmatpush.msra.mxu1 %v155_v7  ;;  %v503_v40 = vld [vmem:[#allocation5 + $0xd58] sm:$0xff] }
 0x2bd   :  { %2113 = vmatpush.msra.mxu2 %v215_v8  ;;  %2132 = vmatpush.msra.mxu3 %v283_v9  ;;  %v571_v41 = vld [vmem:[#allocation5 + $0xf78] sm:$0xff] }
 0x2be   :  { %2074 = vmatpush.msra.mxu0 %v83_v10  ;;  %2093 = vmatpush.msra.mxu1 %v151_v11  ;;  %v371_v42 = vld [vmem:[#allocation5 + $0x938] sm:$0xff] }
 0x2bf   :  { %2114 = vmatpush.msra.mxu2 %v211_v12  ;;  %2133 = vmatpush.msra.mxu3 %v279_v13  ;;  %v439_v43 = vld [vmem:[#allocation5 + $0xb58] sm:$0xff] }
 0x2c0   :  { %2075 = vmatpush.msra.mxu0 %v79_v14  ;;  %2094 = vmatpush.msra.mxu1 %v147_v15  ;;  %v499_v44 = vld [vmem:[#allocation5 + $0xd38] sm:$0xff] }
 0x2c1   :  { %2115 = vmatpush.msra.mxu2 %v207_v16  ;;  %2134 = vmatpush.msra.mxu3 %v275_v17  ;;  %v567_v45 = vld [vmem:[#allocation5 + $0xf58] sm:$0xff] }
 0x2c2   :  { %2140 = vmatpush.msrb.mxu0 %v395_v18  ;;  %2095 = vmatpush.msra.mxu1 %v143_v20  ;;  %v367_v46 = vld [vmem:[#allocation5 + $0x918] sm:$0xff] }
 0x2c3   :  { %2180 = vmatpush.msrb.mxu2 %v523_v19  ;;  %2135 = vmatpush.msra.mxu3 %v271_v21  ;;  %v435_v47 = vld [vmem:[#allocation5 + $0xb38] sm:$0xff]  ;;  %v3042_v19 = vld [vmem:[#allocation2 + $0x10] sm:$0xff] }
 0x2c4   :  { %2141 = vmatpush.msrb.mxu0 %v391_v22  ;;  %2160 = vmatpush.msrb.mxu1 %v459_v23  ;;  %v495_v49 = vld [vmem:[#allocation5 + $0xd18] sm:$0xff]  ;;  %v3043_v23 = vld [vmem:[#allocation2] sm:$0xff] }
 0x2c5   :  { %2181 = vmatpush.msrb.mxu2 %v519_v24  ;;  %2200 = vmatpush.msrb.mxu3 %v587_v25  ;;  %v563_v48 = vld [vmem:[#allocation5 + $0xf38] sm:$0xff] }
 0x2c6   :  { %2142 = vmatpush.msrb.mxu0 %v387_v26  ;;  %2161 = vmatpush.msrb.mxu1 %v455_v27  ;;  %v363_v50 = vld [vmem:[#allocation5 + $0x8f8] sm:$0xff] }
 0x2c7   :  { %2182 = vmatpush.msrb.mxu2 %v515_v28  ;;  %2201 = vmatpush.msrb.mxu3 %v583_v29  ;;  %v431_v51 = vld [vmem:[#allocation5 + $0xb18] sm:$0xff] }
 0x2c8   :  { %2143 = vmatpush.msrb.mxu0 %v383_v30  ;;  %2162 = vmatpush.msrb.mxu1 %v451_v31  ;;  %v491_v52 = vld [vmem:[#allocation5 + $0xcf8] sm:$0xff]  ;;  %v3045_v30 = vld [vmem:[#allocation2 + $0x8] sm:$0xff] }
 0x2c9   :  { %2183 = vmatpush.msrb.mxu2 %v511_v32  ;;  %2202 = vmatpush.msrb.mxu3 %v579_v33  ;;  %v559_v53 = vld [vmem:[#allocation5 + $0xf18] sm:$0xff] }
 0x2ca   :  { %2144 = vmatpush.msrb.mxu0 %v379_v34  ;;  %2163 = vmatpush.msrb.mxu1 %v447_v35  ;;  %v359_v54 = vld [vmem:[#allocation5 + $0x8d8] sm:$0xff] }
 0x2cb   :  { %2184 = vmatpush.msrb.mxu2 %v507_v36  ;;  %2203 = vmatpush.msrb.mxu3 %v575_v37  ;;  %v427_v55 = vld [vmem:[#allocation5 + $0xaf8] sm:$0xff] }
 0x2cc   :  { %2145 = vmatpush.msrb.mxu0 %v375_v38  ;;  %2164 = vmatpush.msrb.mxu1 %v443_v39  ;;  %v487_v56 = vld [vmem:[#allocation5 + $0xcd8] sm:$0xff]  ;;  %v3046_v39 = vld [vmem:[#allocation2 + $0x30] sm:$0xff] }
 0x2cd   :  { %2185 = vmatpush.msrb.mxu2 %v503_v40  ;;  %2204 = vmatpush.msrb.mxu3 %v571_v41  ;;  %v555_v57 = vld [vmem:[#allocation5 + $0xef8] sm:$0xff] }
 0x2ce   :  { %2146 = vmatpush.msrb.mxu0 %v371_v42  ;;  %2165 = vmatpush.msrb.mxu1 %v439_v43  ;;  %v355_v58 = vld [vmem:[#allocation5 + $0x8b8] sm:$0xff]  ;;  %v3047_v43 = vld [vmem:[#allocation2 + $0x20] sm:$0xff] }
 0x2cf   :  { %2186 = vmatpush.msrb.mxu2 %v499_v44  ;;  %2205 = vmatpush.msrb.mxu3 %v567_v45  ;;  %v423_v59 = vld [vmem:[#allocation5 + $0xad8] sm:$0xff] }
 0x2d0   :  { %2147 = vmatpush.msrb.mxu0 %v367_v46  ;;  %2166 = vmatpush.msrb.mxu1 %v435_v47  ;;  %v483_v61 = vld [vmem:[#allocation5 + $0xcb8] sm:$0xff] }
 0x2d1   :  { %2187 = vmatpush.msrb.mxu2 %v495_v49  ;;  %2206 = vmatpush.msrb.mxu3 %v563_v48  ;;  %v551_v62 = vld [vmem:[#allocation5 + $0xed8] sm:$0xff] }
 0x2d2   :  { %2148 = vmatpush.msrb.mxu0 %v363_v50  ;;  %2167 = vmatpush.msrb.mxu1 %v431_v51  ;;  %v351_v63 = vld [vmem:[#allocation5 + $0x898] sm:$0xff]  ;;  %v3049_v50 = vld [vmem:[#allocation2 + $0x28] sm:$0xff] }
 0x2d3   :  { %2188 = vmatpush.msrb.mxu2 %v491_v52  ;;  %2207 = vmatpush.msrb.mxu3 %v559_v53  ;;  %v419_v0 = vld [vmem:[#allocation5 + $0xab8] sm:$0xff] }
 0x2d4   :  { %2149 = vmatpush.msrb.mxu0 %v359_v54  ;;  %2168 = vmatpush.msrb.mxu1 %v427_v55  ;;  %v479_v1 = vld [vmem:[#allocation5 + $0xc98] sm:$0xff] }
 0x2d5   :  { %2189 = vmatpush.msrb.mxu2 %v487_v56  ;;  %2208 = vmatpush.msrb.mxu3 %v555_v57  ;;  %v547_v2 = vld [vmem:[#allocation5 + $0xeb8] sm:$0xff] }
 0x2d6   :  { %2150 = vmatpush.msrb.mxu0 %v355_v58  ;;  %2169 = vmatpush.msrb.mxu1 %v423_v59  ;;  %v347_v3 = vld [vmem:[#allocation5 + $0x878] sm:$0xff] }
 0x2d7   :  { %2190 = vmatpush.msrb.mxu2 %v483_v61  ;;  %2209 = vmatpush.msrb.mxu3 %v551_v62  ;;  %v415_v4 = vld [vmem:[#allocation5 + $0xa98] sm:$0xff] }
 0x2d8   :  { %2151 = vmatpush.msrb.mxu0 %v351_v63  ;;  %2170 = vmatpush.msrb.mxu1 %v419_v0  ;;  %v475_v5 = vld [vmem:[#allocation5 + $0xc78] sm:$0xff] }
 0x2d9   :  { %v543_v6 = vld [vmem:[#allocation5 + $0xe98] sm:$0xff]  ;;  %2191 = vmatpush.msrb.mxu2 %v479_v1  ;;  %2210 = vmatpush.msrb.mxu3 %v547_v2 }
 0x2da   :  { %v343_v7 = vld [vmem:[#allocation5 + $0x858] sm:$0xff]  ;;  %2152 = vmatpush.msrb.mxu0 %v347_v3  ;;  %2171 = vmatpush.msrb.mxu1 %v415_v4 }
 0x2db   :  { %v411_v8 = vld [vmem:[#allocation5 + $0xa78] sm:$0xff]  ;;  %2192 = vmatpush.msrb.mxu2 %v475_v5  ;;  %2211 = vmatpush.msrb.mxu3 %v543_v6 }
 0x2dc   :  { %v471_v9 = vld [vmem:[#allocation5 + $0xc58] sm:$0xff]  ;;  %2153 = vmatpush.msrb.mxu0 %v343_v7  ;;  %2172 = vmatpush.msrb.mxu1 %v411_v8 }
 0x2dd   :  { %v539_v10 = vld [vmem:[#allocation5 + $0xe78] sm:$0xff]  ;;  %2193 = vmatpush.msrb.mxu2 %v471_v9  ;;  %2076 = vmatmul.f32.vlgmr.msra.gmra.mxu0 %v3043_v23 }
 0x2de   :  { %v339_v11 = vld [vmem:[#allocation5 + $0x838] sm:$0xff]  ;;  %2212 = vmatpush.msrb.mxu3 %v539_v10  ;;  %2116 = vmatmul.f32.vlgmr.msra.gmra.mxu2 %v3042_v19 }
 0x2df   :  { %v407_v12 = vld [vmem:[#allocation5 + $0xa58] sm:$0xff]  ;;  %2154 = vmatpush.msrb.mxu0 %v339_v11  ;;  %2096 = vmatmul.f32.vlgmr.msra.gmra.mxu1 %v3045_v30 }
 0x2e0   :  { %v467_v13 = vld [vmem:[#allocation5 + $0xc38] sm:$0xff]  ;;  %2173 = vmatpush.msrb.mxu1 %v407_v12 }
 0x2e1   :  { %v535_v14 = vld [vmem:[#allocation5 + $0xe58] sm:$0xff]  ;;  %2194 = vmatpush.msrb.mxu2 %v467_v13 }
 0x2e2   :  { %v335_v15 = vld [vmem:[#allocation5 + $0x818] sm:$0xff]  ;;  %2213 = vmatpush.msrb.mxu3 %v535_v14 }
 0x2e3   :  { %v403_v16 = vld [vmem:[#allocation5 + $0xa38] sm:$0xff]  ;;  %2155 = vmatpush.msrb.mxu0 %v335_v15 }
 0x2e4   :  { %v463_v17 = vld [vmem:[#allocation5 + $0xc18] sm:$0xff]  ;;  %2174 = vmatpush.msrb.mxu1 %v403_v16 }
 0x2e5   :  { %v531_v18 = vld [vmem:[#allocation5 + $0xe38] sm:$0xff]  ;;  %2195 = vmatpush.msrb.mxu2 %v463_v17  ;;  %2156 = vmatmul.f32.vlgmr.msrb.gmra.mxu0 %v3047_v43 }
 0x2e6   :  { %v651_v20 = vld [vmem:[#allocation5 + $0x11f8] sm:$0xff]  ;;  %2214 = vmatpush.msrb.mxu3 %v531_v18  ;;  %2196 = vmatmul.f32.vlgmr.msrb.gmra.mxu2 %v3046_v39 }
 0x2e7   :  { %v779_v21 = vld [vmem:[#allocation5 + $0x15f8] sm:$0xff]  ;;  %2220 = vmatpush.msra.mxu0 %v651_v20 }
 0x2e8   :  { %v399_v22 = vld [vmem:[#allocation5 + $0xa18] sm:$0xff]  ;;  %2260 = vmatpush.msra.mxu2 %v779_v21 }
 0x2e9   :  { %v527_v24 = vld [vmem:[#allocation5 + $0xe18] sm:$0xff]  ;;  %2175 = vmatpush.msrb.mxu1 %v399_v22 }
 0x2ea   :  { %v3044_v25 = vld [vmem:[#allocation2 + $0x18] sm:$0xff]  ;;  %2215 = vmatpush.msrb.mxu3 %v527_v24  ;;  %2176 = vmatmul.f32.vlgmr.msrb.gmra.mxu1 %v3049_v50 }
 0x2eb   :  { %2136 = vmatmul.f32.vlgmr.msra.gmra.mxu3 %v3044_v25  ;;  %v647_v26 = vld [vmem:[#allocation5 + $0x11d8] sm:$0xff] }
 0x2ec   :  { %v715_v27 = vld [vmem:[#allocation5 + $0x13f8] sm:$0xff]  ;;  %2221 = vmatpush.msra.mxu0 %v647_v26 }
 0x2ed   :  { %v775_v28 = vld [vmem:[#allocation5 + $0x15d8] sm:$0xff]  ;;  %2240 = vmatpush.msra.mxu1 %v715_v27 }
 0x2ee   :  { %v843_v29 = vld [vmem:[#allocation5 + $0x17f8] sm:$0xff]  ;;  %2261 = vmatpush.msra.mxu2 %v775_v28 }
 0x2ef   :  { %v643_v31 = vld [vmem:[#allocation5 + $0x11b8] sm:$0xff]  ;;  %2280 = vmatpush.msra.mxu3 %v843_v29 }
 0x2f0   :  { %v711_v32 = vld [vmem:[#allocation5 + $0x13d8] sm:$0xff]  ;;  %2222 = vmatpush.msra.mxu0 %v643_v31 }
 0x2f1   :  { %v771_v33 = vld [vmem:[#allocation5 + $0x15b8] sm:$0xff]  ;;  %2241 = vmatpush.msra.mxu1 %v711_v32  ;;  %v3050_v32 = vld [vmem:[#allocation2 + $0x40] sm:$0xff] }
 0x2f2   :  { %v839_v34 = vld [vmem:[#allocation5 + $0x17d8] sm:$0xff]  ;;  %2262 = vmatpush.msra.mxu2 %v771_v33  ;;  %v3051_v33 = vld [vmem:[#allocation2 + $0x50] sm:$0xff] }
 0x2f3   :  { %v639_v35 = vld [vmem:[#allocation5 + $0x1198] sm:$0xff]  ;;  %2281 = vmatpush.msra.mxu3 %v839_v34 }
 0x2f4   :  { %v707_v36 = vld [vmem:[#allocation5 + $0x13b8] sm:$0xff]  ;;  %2223 = vmatpush.msra.mxu0 %v639_v35 }
 0x2f5   :  { %v767_v37 = vld [vmem:[#allocation5 + $0x1598] sm:$0xff]  ;;  %2242 = vmatpush.msra.mxu1 %v707_v36 }
 0x2f6   :  { %v835_v38 = vld [vmem:[#allocation5 + $0x17b8] sm:$0xff]  ;;  %2263 = vmatpush.msra.mxu2 %v767_v37 }
 0x2f7   :  { %v635_v40 = vld [vmem:[#allocation5 + $0x1178] sm:$0xff]  ;;  %2282 = vmatpush.msra.mxu3 %v835_v38  ;;  %v3052_v38 = vld [vmem:[#allocation2 + $0x48] sm:$0xff] }
 0x2f8   :  { %v703_v41 = vld [vmem:[#allocation5 + $0x1398] sm:$0xff]  ;;  %2224 = vmatpush.msra.mxu0 %v635_v40 }
 0x2f9   :  { %v763_v42 = vld [vmem:[#allocation5 + $0x1578] sm:$0xff]  ;;  %2243 = vmatpush.msra.mxu1 %v703_v41 }
 0x2fa   :  { %v831_v44 = vld [vmem:[#allocation5 + $0x1798] sm:$0xff]  ;;  %2264 = vmatpush.msra.mxu2 %v763_v42 }
 0x2fb   :  { %v3048_v45 = vld [vmem:[#allocation2 + $0x38] sm:$0xff]  ;;  %2283 = vmatpush.msra.mxu3 %v831_v44 }
 0x2fc   :  { %2216 = vmatmul.f32.vlgmr.msrb.gmra.mxu3 %v3048_v45  ;;  %v631_v46 = vld [vmem:[#allocation5 + $0x1158] sm:$0xff] }
 0x2fd   :  { %v699_v47 = vld [vmem:[#allocation5 + $0x1378] sm:$0xff]  ;;  %2225 = vmatpush.msra.mxu0 %v631_v46 }
 0x2fe   :  { %v759_v49 = vld [vmem:[#allocation5 + $0x1558] sm:$0xff]  ;;  %2244 = vmatpush.msra.mxu1 %v699_v47 }
 0x2ff   :  { %v827_v48 = vld [vmem:[#allocation5 + $0x1778] sm:$0xff]  ;;  %2265 = vmatpush.msra.mxu2 %v759_v49 }
 0x300   :  { %v627_v51 = vld [vmem:[#allocation5 + $0x1138] sm:$0xff]  ;;  %2284 = vmatpush.msra.mxu3 %v827_v48 }
 0x301   :  { %v695_v52 = vld [vmem:[#allocation5 + $0x1358] sm:$0xff]  ;;  %2226 = vmatpush.msra.mxu0 %v627_v51 }
 0x302   :  { %v755_v53 = vld [vmem:[#allocation5 + $0x1538] sm:$0xff]  ;;  %2245 = vmatpush.msra.mxu1 %v695_v52 }
 0x303   :  { %v823_v54 = vld [vmem:[#allocation5 + $0x1758] sm:$0xff]  ;;  %2266 = vmatpush.msra.mxu2 %v755_v53 }
 0x304   :  { %v623_v55 = vld [vmem:[#allocation5 + $0x1118] sm:$0xff]  ;;  %2285 = vmatpush.msra.mxu3 %v823_v54 }
 0x305   :  { %v691_v56 = vld [vmem:[#allocation5 + $0x1338] sm:$0xff]  ;;  %2227 = vmatpush.msra.mxu0 %v623_v55 }
 0x306   :  { %v751_v57 = vld [vmem:[#allocation5 + $0x1518] sm:$0xff]  ;;  %2246 = vmatpush.msra.mxu1 %v691_v56 }
 0x307   :  { %v819_v58 = vld [vmem:[#allocation5 + $0x1738] sm:$0xff]  ;;  %2267 = vmatpush.msra.mxu2 %v751_v57 }
 0x308   :  { %v619_v59 = vld [vmem:[#allocation5 + $0x10f8] sm:$0xff]  ;;  %2286 = vmatpush.msra.mxu3 %v819_v58 }
 0x309   :  { %v687_v61 = vld [vmem:[#allocation5 + $0x1318] sm:$0xff]  ;;  %2228 = vmatpush.msra.mxu0 %v619_v59 }
 0x30a   :  { %v747_v62 = vld [vmem:[#allocation5 + $0x14f8] sm:$0xff]  ;;  %2247 = vmatpush.msra.mxu1 %v687_v61 }
 0x30b   :  { %v815_v63 = vld [vmem:[#allocation5 + $0x1718] sm:$0xff]  ;;  %2268 = vmatpush.msra.mxu2 %v747_v62 }
 0x30c   :  { %v615_v0 = vld [vmem:[#allocation5 + $0x10d8] sm:$0xff]  ;;  %2287 = vmatpush.msra.mxu3 %v815_v63 }
 0x30d   :  { %v683_v1 = vld [vmem:[#allocation5 + $0x12f8] sm:$0xff]  ;;  %2229 = vmatpush.msra.mxu0 %v615_v0 }
 0x30e   :  { %v743_v2 = vld [vmem:[#allocation5 + $0x14d8] sm:$0xff]  ;;  %2248 = vmatpush.msra.mxu1 %v683_v1 }
 0x30f   :  { %v811_v3 = vld [vmem:[#allocation5 + $0x16f8] sm:$0xff]  ;;  %2269 = vmatpush.msra.mxu2 %v743_v2 }
 0x310   :  { %v611_v4 = vld [vmem:[#allocation5 + $0x10b8] sm:$0xff]  ;;  %2288 = vmatpush.msra.mxu3 %v811_v3 }
 0x311   :  { %v679_v5 = vld [vmem:[#allocation5 + $0x12d8] sm:$0xff]  ;;  %2230 = vmatpush.msra.mxu0 %v611_v4 }
 0x312   :  { %v739_v6 = vld [vmem:[#allocation5 + $0x14b8] sm:$0xff]  ;;  %2249 = vmatpush.msra.mxu1 %v679_v5 }
 0x313   :  { %v807_v7 = vld [vmem:[#allocation5 + $0x16d8] sm:$0xff]  ;;  %2270 = vmatpush.msra.mxu2 %v739_v6 }
 0x314   :  { %v607_v8 = vld [vmem:[#allocation5 + $0x1098] sm:$0xff]  ;;  %2289 = vmatpush.msra.mxu3 %v807_v7 }
 0x315   :  { %v675_v9 = vld [vmem:[#allocation5 + $0x12b8] sm:$0xff]  ;;  %2231 = vmatpush.msra.mxu0 %v607_v8 }
 0x316   :  { %v735_v10 = vld [vmem:[#allocation5 + $0x1498] sm:$0xff]  ;;  %2250 = vmatpush.msra.mxu1 %v675_v9 }
 0x317   :  { %v803_v11 = vld [vmem:[#allocation5 + $0x16b8] sm:$0xff]  ;;  %2271 = vmatpush.msra.mxu2 %v735_v10 }
 0x318   :  { %v603_v12 = vld [vmem:[#allocation5 + $0x1078] sm:$0xff]  ;;  %2290 = vmatpush.msra.mxu3 %v803_v11 }
 0x319   :  { %v671_v13 = vld [vmem:[#allocation5 + $0x1298] sm:$0xff]  ;;  %2232 = vmatpush.msra.mxu0 %v603_v12 }
 0x31a   :  { %v731_v14 = vld [vmem:[#allocation5 + $0x1478] sm:$0xff]  ;;  %2251 = vmatpush.msra.mxu1 %v671_v13 }
 0x31b   :  { %v799_v15 = vld [vmem:[#allocation5 + $0x1698] sm:$0xff]  ;;  %2272 = vmatpush.msra.mxu2 %v731_v14 }
 0x31c   :  { %v599_v16 = vld [vmem:[#allocation5 + $0x1058] sm:$0xff]  ;;  %2291 = vmatpush.msra.mxu3 %v799_v15 }
 0x31d   :  { %v667_v17 = vld [vmem:[#allocation5 + $0x1278] sm:$0xff]  ;;  %2233 = vmatpush.msra.mxu0 %v599_v16 }
 0x31e   :  { %v727_v18 = vld [vmem:[#allocation5 + $0x1458] sm:$0xff]  ;;  %2252 = vmatpush.msra.mxu1 %v667_v17 }
 0x31f   :  { %v795_v19 = vld [vmem:[#allocation5 + $0x1678] sm:$0xff]  ;;  %2273 = vmatpush.msra.mxu2 %v727_v18 }
 0x320   :  { %v595_v20 = vld [vmem:[#allocation5 + $0x1038] sm:$0xff]  ;;  %2292 = vmatpush.msra.mxu3 %v795_v19 }
 0x321   :  { %v663_v21 = vld [vmem:[#allocation5 + $0x1258] sm:$0xff]  ;;  %2234 = vmatpush.msra.mxu0 %v595_v20 }
 0x322   :  { %v723_v22 = vld [vmem:[#allocation5 + $0x1438] sm:$0xff]  ;;  %2253 = vmatpush.msra.mxu1 %v663_v21 }
 0x323   :  { %v791_v23 = vld [vmem:[#allocation5 + $0x1658] sm:$0xff]  ;;  %2274 = vmatpush.msra.mxu2 %v723_v22 }
 0x324   :  { %v591_v24 = vld [vmem:[#allocation5 + $0x1018] sm:$0xff]  ;;  %2293 = vmatpush.msra.mxu3 %v791_v23 }
 0x325   :  { %v659_v25 = vld [vmem:[#allocation5 + $0x1238] sm:$0xff]  ;;  %2235 = vmatpush.msra.mxu0 %v591_v24 }
 0x326   :  { %v719_v26 = vld [vmem:[#allocation5 + $0x1418] sm:$0xff]  ;;  %2254 = vmatpush.msra.mxu1 %v659_v25  ;;  %2236 = vmatmul.f32.vlgmr.msra.gmra.mxu0 %v3050_v32 }
 0x327   :  { %v787_v27 = vld [vmem:[#allocation5 + $0x1638] sm:$0xff]  ;;  %2275 = vmatpush.msra.mxu2 %v719_v26 }
 0x328   :  { %v907_v28 = vld [vmem:[#allocation5 + $0x19f8] sm:$0xff]  ;;  %2294 = vmatpush.msra.mxu3 %v787_v27  ;;  %2276 = vmatmul.f32.vlgmr.msra.gmra.mxu2 %v3051_v33 }
 0x329   :  { %v1035_v29 = vld [vmem:[#allocation5 + $0x1df8] sm:$0xff]  ;;  %2300 = vmatpush.msrb.mxu0 %v907_v28 }
 0x32a   :  { %v655_v30 = vld [vmem:[#allocation5 + $0x1218] sm:$0xff]  ;;  %2340 = vmatpush.msrb.mxu2 %v1035_v29 }
 0x32b   :  { %v783_v31 = vld [vmem:[#allocation5 + $0x1618] sm:$0xff]  ;;  %2255 = vmatpush.msra.mxu1 %v655_v30 }
 0x32c   :  { %v903_v34 = vld [vmem:[#allocation5 + $0x19d8] sm:$0xff]  ;;  %2295 = vmatpush.msra.mxu3 %v783_v31  ;;  %2256 = vmatmul.f32.vlgmr.msra.gmra.mxu1 %v3052_v38 }
 0x32d   :  { %v971_v35 = vld [vmem:[#allocation5 + $0x1bf8] sm:$0xff]  ;;  %2301 = vmatpush.msrb.mxu0 %v903_v34 }
 0x32e   :  { %v1031_v36 = vld [vmem:[#allocation5 + $0x1dd8] sm:$0xff]  ;;  %2320 = vmatpush.msrb.mxu1 %v971_v35  ;;  %v3054_v35 = vld [vmem:[#allocation2 + $0x60] sm:$0xff] }
 0x32f   :  { %v1099_v37 = vld [vmem:[#allocation5 + $0x1ff8] sm:$0xff]  ;;  %2341 = vmatpush.msrb.mxu2 %v1031_v36  ;;  %v3055_v36 = vld [vmem:[#allocation2 + $0x70] sm:$0xff] }
 0x330   :  { %v3053_v39 = vld [vmem:[#allocation2 + $0x58] sm:$0xff]  ;;  %2360 = vmatpush.msrb.mxu3 %v1099_v37  ;;  %v3056_v37 = vld [vmem:[#allocation2 + $0x68] sm:$0xff] }
 0x331   :  { %2296 = vmatmul.f32.vlgmr.msra.gmra.mxu3 %v3053_v39  ;;  %v899_v40 = vld [vmem:[#allocation5 + $0x19b8] sm:$0xff]  ;;  %v1457_v39 = vpop.f32.mrf.mxu1 }
 0x332   :  { %v967_v41 = vld [vmem:[#allocation5 + $0x1bd8] sm:$0xff]  ;;  %2302 = vmatpush.msrb.mxu0 %v899_v40  ;;  %v1437_v40 = vpop.f32.mrf.mxu0 }
 0x333   :  { %v1027_v42 = vld [vmem:[#allocation5 + $0x1db8] sm:$0xff]  ;;  %2321 = vmatpush.msrb.mxu1 %v967_v41  ;;  %v1477_v41 = vpop.f32.mrf.mxu2 }
 0x334   :  { %v1095_v43 = vld [vmem:[#allocation5 + $0x1fd8] sm:$0xff]  ;;  %2342 = vmatpush.msrb.mxu2 %v1027_v42  ;;  %v1497_v42 = vpop.f32.mrf.mxu3 }
 0x335   :  { %v895_v44 = vld [vmem:[#allocation5 + $0x1998] sm:$0xff]  ;;  %2361 = vmatpush.msrb.mxu3 %v1095_v43 }
 0x336   :  { %v963_v45 = vld [vmem:[#allocation5 + $0x1bb8] sm:$0xff]  ;;  %2303 = vmatpush.msrb.mxu0 %v895_v44 }
 0x337   :  { %v1023_v46 = vld [vmem:[#allocation5 + $0x1d98] sm:$0xff]  ;;  %2322 = vmatpush.msrb.mxu1 %v963_v45 }
 0x338   :  { %v1091_v47 = vld [vmem:[#allocation5 + $0x1fb8] sm:$0xff]  ;;  %2343 = vmatpush.msrb.mxu2 %v1023_v46 }
 0x339   :  { %v891_v49 = vld [vmem:[#allocation5 + $0x1978] sm:$0xff]  ;;  %2362 = vmatpush.msrb.mxu3 %v1091_v47  ;;  %v1537_v43 = vpop.f32.mrf.mxu1 }
 0x33a   :  { %v959_v48 = vld [vmem:[#allocation5 + $0x1b98] sm:$0xff]  ;;  %2304 = vmatpush.msrb.mxu0 %v891_v49  ;;  %v1517_v44 = vpop.f32.mrf.mxu0 }
 0x33b   :  { %v1019_v50 = vld [vmem:[#allocation5 + $0x1d78] sm:$0xff]  ;;  %2323 = vmatpush.msrb.mxu1 %v959_v48  ;;  %v1557_v45 = vpop.f32.mrf.mxu2 }
 0x33c   :  { %v1087_v51 = vld [vmem:[#allocation5 + $0x1f98] sm:$0xff]  ;;  %2344 = vmatpush.msrb.mxu2 %v1019_v50  ;;  %v1577_v46 = vpop.f32.mrf.mxu3 }
 0x33d   :  { %v887_v52 = vld [vmem:[#allocation5 + $0x1958] sm:$0xff]  ;;  %2363 = vmatpush.msrb.mxu3 %v1087_v51 }
 0x33e   :  { %v955_v53 = vld [vmem:[#allocation5 + $0x1b78] sm:$0xff]  ;;  %2305 = vmatpush.msrb.mxu0 %v887_v52 }
 0x33f   :  { %v1015_v54 = vld [vmem:[#allocation5 + $0x1d58] sm:$0xff]  ;;  %2324 = vmatpush.msrb.mxu1 %v955_v53 }
 0x340   :  { %v1083_v55 = vld [vmem:[#allocation5 + $0x1f78] sm:$0xff]  ;;  %2345 = vmatpush.msrb.mxu2 %v1015_v54 }
 0x341   :  { %v883_v56 = vld [vmem:[#allocation5 + $0x1938] sm:$0xff]  ;;  %2364 = vmatpush.msrb.mxu3 %v1083_v55  ;;  %v1617_v47 = vpop.f32.mrf.mxu1 }
 0x342   :  { %v951_v57 = vld [vmem:[#allocation5 + $0x1b58] sm:$0xff]  ;;  %2306 = vmatpush.msrb.mxu0 %v883_v56  ;;  %v1597_v49 = vpop.f32.mrf.mxu0 }
 0x343   :  { %v1011_v58 = vld [vmem:[#allocation5 + $0x1d38] sm:$0xff]  ;;  %2325 = vmatpush.msrb.mxu1 %v951_v57  ;;  %v1637_v48 = vpop.f32.mrf.mxu2 }
 0x344   :  { %v1079_v59 = vld [vmem:[#allocation5 + $0x1f58] sm:$0xff]  ;;  %2346 = vmatpush.msrb.mxu2 %v1011_v58  ;;  %v3203_v50 = vpop.f32.mrf.mxu3 }
 0x345   :  { %v879_v61 = vld [vmem:[#allocation5 + $0x1918] sm:$0xff]  ;;  %2365 = vmatpush.msrb.mxu3 %v1079_v59 }
 0x346   :  { %v947_v62 = vld [vmem:[#allocation5 + $0x1b38] sm:$0xff]  ;;  %2307 = vmatpush.msrb.mxu0 %v879_v61 }
 0x347   :  { %v1007_v63 = vld [vmem:[#allocation5 + $0x1d18] sm:$0xff]  ;;  %2326 = vmatpush.msrb.mxu1 %v947_v62 }
 0x348   :  { %v1075_v0 = vld [vmem:[#allocation5 + $0x1f38] sm:$0xff]  ;;  %2347 = vmatpush.msrb.mxu2 %v1007_v63 }
 0x349   :  { %v875_v1 = vld [vmem:[#allocation5 + $0x18f8] sm:$0xff]  ;;  %2366 = vmatpush.msrb.mxu3 %v1075_v0  ;;  %v3205_v51 = vpop.f32.mrf.mxu1 }
 0x34a   :  { %v943_v2 = vld [vmem:[#allocation5 + $0x1b18] sm:$0xff]  ;;  %2308 = vmatpush.msrb.mxu0 %v875_v1  ;;  %v3207_v52 = vpop.f32.mrf.mxu0 }
 0x34b   :  { %v1003_v3 = vld [vmem:[#allocation5 + $0x1cf8] sm:$0xff]  ;;  %2327 = vmatpush.msrb.mxu1 %v943_v2  ;;  %v3209_v53 = vpop.f32.mrf.mxu2 }
 0x34c   :  { %v1071_v4 = vld [vmem:[#allocation5 + $0x1f18] sm:$0xff]  ;;  %2348 = vmatpush.msrb.mxu2 %v1003_v3  ;;  %v3211_v54 = vpop.f32.mrf.mxu3 }
 0x34d   :  { %v871_v5 = vld [vmem:[#allocation5 + $0x18d8] sm:$0xff]  ;;  %2367 = vmatpush.msrb.mxu3 %v1071_v4 }
 0x34e   :  { %v939_v6 = vld [vmem:[#allocation5 + $0x1af8] sm:$0xff]  ;;  %2309 = vmatpush.msrb.mxu0 %v871_v5  ;;  %v1458_v5 = vadd.f32 %v1457_v39, %v1437_v40  ;;  %v2528_v39 = vld [vmem:[#allocation7 + $0x3e0] sm:$0xff] }
 0x34f   :  { %v999_v7 = vld [vmem:[#allocation5 + $0x1cd8] sm:$0xff]  ;;  %2328 = vmatpush.msrb.mxu1 %v939_v6  ;;  %v2592_v40 = vld [vmem:[#allocation7 + $0x5e0] sm:$0xff] }
 0x350   :  { %v1067_v8 = vld [vmem:[#allocation5 + $0x1ef8] sm:$0xff]  ;;  %2349 = vmatpush.msrb.mxu2 %v999_v7 }
 0x351   :  { %v867_v9 = vld [vmem:[#allocation5 + $0x18b8] sm:$0xff]  ;;  %2368 = vmatpush.msrb.mxu3 %v1067_v8  ;;  %v1777_v55 = vpop.f32.mrf.mxu1 }
 0x352   :  { %v935_v10 = vld [vmem:[#allocation5 + $0x1ad8] sm:$0xff]  ;;  %2310 = vmatpush.msrb.mxu0 %v867_v9  ;;  %v1757_v56 = vpop.f32.mrf.mxu0  ;;  %v1478_v9 = vadd.f32 %v1477_v41, %v1458_v5 }
 0x353   :  { %v995_v11 = vld [vmem:[#allocation5 + $0x1cb8] sm:$0xff]  ;;  %2329 = vmatpush.msrb.mxu1 %v935_v10  ;;  %v1797_v57 = vpop.f32.mrf.mxu2  ;;  %v1778_v7 = vadd.f32 %v1777_v55, %v1757_v56  ;;  %v2456_v56 = vld [vmem:[#allocation7 + $0x1a0] sm:$0xff] }
 0x354   :  { %v1063_v12 = vld [vmem:[#allocation5 + $0x1ed8] sm:$0xff]  ;;  %2350 = vmatpush.msrb.mxu2 %v995_v11  ;;  %v1817_v58 = vpop.f32.mrf.mxu3 }
 0x355   :  { %v863_v13 = vld [vmem:[#allocation5 + $0x1898] sm:$0xff]  ;;  %2369 = vmatpush.msrb.mxu3 %v1063_v12  ;;  %v1798_v10 = vadd.f32 %v1797_v57, %v1778_v7 }
 0x356   :  { %v931_v14 = vld [vmem:[#allocation5 + $0x1ab8] sm:$0xff]  ;;  %2311 = vmatpush.msrb.mxu0 %v863_v13  ;;  %v1498_v13 = vadd.f32 %v1497_v42, %v1478_v9  ;;  %v2656_v42 = vld [vmem:[#allocation7 + $0x7e0] sm:$0xff] }
 0x357   :  { %v991_v15 = vld [vmem:[#allocation5 + $0x1c98] sm:$0xff]  ;;  %2330 = vmatpush.msrb.mxu1 %v931_v14  ;;  %v2448_v9 = vld [vmem:[#allocation7 + $0x160] sm:$0xff] }
 0x358   :  { %v1059_v16 = vld [vmem:[#allocation5 + $0x1eb8] sm:$0xff]  ;;  %2351 = vmatpush.msrb.mxu2 %v991_v15  ;;  %v1818_v15 = vadd.f32 %v1817_v58, %v1798_v10  ;;  %v2584_v58 = vld [vmem:[#allocation7 + $0x5a0] sm:$0xff] }
 0x359   :  { %v859_v17 = vld [vmem:[#allocation5 + $0x1878] sm:$0xff]  ;;  %2370 = vmatpush.msrb.mxu3 %v1059_v16  ;;  %v1857_v59 = vpop.f32.mrf.mxu1  ;;  %v2512_v10 = vld [vmem:[#allocation7 + $0x360] sm:$0xff] }
 0x35a   :  { %v927_v18 = vld [vmem:[#allocation5 + $0x1a98] sm:$0xff]  ;;  %2312 = vmatpush.msrb.mxu0 %v859_v17  ;;  %v1837_v61 = vpop.f32.mrf.mxu0 }
 0x35b   :  { %v987_v19 = vld [vmem:[#allocation5 + $0x1c78] sm:$0xff]  ;;  %2331 = vmatpush.msrb.mxu1 %v927_v18  ;;  %v1877_v62 = vpop.f32.mrf.mxu2  ;;  %v1518_v18 = vadd.f32 %v1517_v44, %v1498_v13  ;;  %v2524_v44 = vld [vmem:[#allocation7 + $0x3c0] sm:$0xff] }
 0x35c   :  { %v1055_v20 = vld [vmem:[#allocation5 + $0x1e98] sm:$0xff]  ;;  %2352 = vmatpush.msrb.mxu2 %v987_v19  ;;  %v1897_v63 = vpop.f32.mrf.mxu3  ;;  %v1838_v19 = vadd.f32 %v1837_v61, %v1818_v15  ;;  %v2640_v13 = vld [vmem:[#allocation7 + $0x760] sm:$0xff] }
 0x35d   :  { %v855_v21 = vld [vmem:[#allocation5 + $0x1858] sm:$0xff]  ;;  %2371 = vmatpush.msrb.mxu3 %v1055_v20 }
 0x35e   :  { %v923_v22 = vld [vmem:[#allocation5 + $0x1a78] sm:$0xff]  ;;  %2313 = vmatpush.msrb.mxu0 %v855_v21 }
 0x35f   :  { %v983_v23 = vld [vmem:[#allocation5 + $0x1c58] sm:$0xff]  ;;  %2332 = vmatpush.msrb.mxu1 %v923_v22  ;;  %v1538_v22 = vadd.f32 %v1537_v43, %v1518_v18  ;;  %v2460_v43 = vld [vmem:[#allocation7 + $0x1c0] sm:$0xff] }
 0x360   :  { %v1051_v24 = vld [vmem:[#allocation5 + $0x1e78] sm:$0xff]  ;;  %2353 = vmatpush.msrb.mxu2 %v983_v23  ;;  %v1858_v23 = vadd.f32 %v1857_v59, %v1838_v19  ;;  %v2648_v59 = vld [vmem:[#allocation7 + $0x7a0] sm:$0xff] }
 0x361   :  { %v851_v25 = vld [vmem:[#allocation5 + $0x1838] sm:$0xff]  ;;  %2372 = vmatpush.msrb.mxu3 %v1051_v24  ;;  %v1937_v0 = vpop.f32.mrf.mxu1  ;;  %v2636_v19 = vld [vmem:[#allocation7 + $0x740] sm:$0xff] }
 0x362   :  { %v919_v26 = vld [vmem:[#allocation5 + $0x1a58] sm:$0xff]  ;;  %2314 = vmatpush.msrb.mxu0 %v851_v25  ;;  %v1917_v1 = vpop.f32.mrf.mxu0 }
 0x363   :  { %v979_v27 = vld [vmem:[#allocation5 + $0x1c38] sm:$0xff]  ;;  %2333 = vmatpush.msrb.mxu1 %v919_v26  ;;  %v1957_v2 = vpop.f32.mrf.mxu2  ;;  %v1558_v26 = vadd.f32 %v1557_v45, %v1538_v22  ;;  %v2440_v22 = vld [vmem:[#allocation7 + $0x120] sm:$0xff] }
 0x364   :  { %v1047_v28 = vld [vmem:[#allocation5 + $0x1e58] sm:$0xff]  ;;  %2354 = vmatpush.msrb.mxu2 %v979_v27  ;;  %v3213_v3 = vpop.f32.mrf.mxu3  ;;  %v1878_v27 = vadd.f32 %v1877_v62, %v1858_v23  ;;  %v2504_v23 = vld [vmem:[#allocation7 + $0x320] sm:$0xff] }
 0x365   :  { %v847_v29 = vld [vmem:[#allocation5 + $0x1818] sm:$0xff]  ;;  %2373 = vmatpush.msrb.mxu3 %v1047_v28 }
 0x366   :  { %v915_v30 = vld [vmem:[#allocation5 + $0x1a38] sm:$0xff]  ;;  %2315 = vmatpush.msrb.mxu0 %v847_v29 }
 0x367   :  { %v975_v31 = vld [vmem:[#allocation5 + $0x1c18] sm:$0xff]  ;;  %2334 = vmatpush.msrb.mxu1 %v915_v30  ;;  %2316 = vmatmul.f32.vlgmr.msrb.gmra.mxu0 %v3054_v35  ;;  %v1578_v30 = vadd.f32 %v1577_v46, %v1558_v26  ;;  %v2588_v46 = vld [vmem:[#allocation7 + $0x5c0] sm:$0xff] }
 0x368   :  { %v1043_v32 = vld [vmem:[#allocation5 + $0x1e38] sm:$0xff]  ;;  %2355 = vmatpush.msrb.mxu2 %v975_v31  ;;  %v2436_v26 = vld [vmem:[#allocation7 + $0x100] sm:$0xff] }
 0x369   :  { %v911_v33 = vld [vmem:[#allocation5 + $0x1a18] sm:$0xff]  ;;  %2374 = vmatpush.msrb.mxu3 %v1043_v32  ;;  %2356 = vmatmul.f32.vlgmr.msrb.gmra.mxu2 %v3055_v36  ;;  %v3215_v4 = vpop.f32.mrf.mxu1  ;;  %v1598_v31 = vadd.f32 %v1597_v49, %v1578_v30  ;;  %v1898_v32 = vadd.f32 %v1897_v63, %v1878_v27  ;;  %v2652_v49 = vld [vmem:[#allocation7 + $0x7c0] sm:$0xff] }
 0x36a   :  { %v1039_v34 = vld [vmem:[#allocation5 + $0x1e18] sm:$0xff]  ;;  %2335 = vmatpush.msrb.mxu1 %v911_v33  ;;  %v3217_v6 = vpop.f32.mrf.mxu0  ;;  %2700 = vmatpush.msra.mxu2 %v2592_v40  ;;  %v2452_v63 = vld [vmem:[#allocation7 + $0x180] sm:$0xff] }
 0x36b   :  { %2375 = vmatpush.msrb.mxu3 %v1039_v34  ;;  %2336 = vmatmul.f32.vlgmr.msrb.gmra.mxu1 %v3056_v37  ;;  %v3057_v38 = vld [vmem:[#allocation2 + $0x78] sm:$0xff]  ;;  %v3219_v8 = vpop.f32.mrf.mxu2  ;;  %v1918_v35 = vadd.f32 %v1917_v1, %v1898_v32  ;;  %v1618_v36 = vadd.f32 %v1617_v47, %v1598_v31  ;;  %v2520_v47 = vld [vmem:[#allocation7 + $0x3a0] sm:$0xff] }
 0x36c   :  { %2376 = vmatmul.f32.vlgmr.msrb.gmra.mxu3 %v3057_v38  ;;  %v3221_v11 = vpop.f32.mrf.mxu3  ;;  %v2464_v38 = vld [vmem:[#allocation7 + $0x1e0] sm:$0xff]  ;;  %2680 = vmatpush.msra.mxu1 %v2528_v39 }
 0x36d   :  { %2660 = vmatpush.msra.mxu0 %v2464_v38  ;;  %v1638_v45 = vadd.f32 %v1637_v48, %v1618_v36  ;;  %v1938_v55 = vadd.f32 %v1937_v0, %v1918_v35  ;;  %2720 = vmatpush.msra.mxu3 %v2656_v42  ;;  %v2516_v1 = vld [vmem:[#allocation7 + $0x380] sm:$0xff] }
 0x36e   :  { %2681 = vmatpush.msra.mxu1 %v2524_v44  ;;  %2701 = vmatpush.msra.mxu2 %v2588_v46  ;;  %v2580_v48 = vld [vmem:[#allocation7 + $0x580] sm:$0xff] }
 0x36f   :  { %2661 = vmatpush.msra.mxu0 %v2460_v43  ;;  %v1958_v61 = vadd.f32 %v1957_v2, %v1938_v55  ;;  %2721 = vmatpush.msra.mxu3 %v2652_v49  ;;  %v2644_v0 = vld [vmem:[#allocation7 + $0x780] sm:$0xff]  ;;  %v1658_v5 = vadd.f32 %v3203_v50, %v1638_v45 }
 0x370   :  { %2682 = vmatpush.msra.mxu1 %v2520_v47  ;;  %2702 = vmatpush.msra.mxu2 %v2584_v58  ;;  %v2576_v2 = vld [vmem:[#allocation7 + $0x560] sm:$0xff] }
 0x371   :  { %v2097_v12 = vpop.f32.mrf.mxu1  ;;  %2662 = vmatpush.msra.mxu0 %v2456_v56  ;;  %2722 = vmatpush.msra.mxu3 %v2648_v59  ;;  %v1978_v15 = vadd.f32 %v3213_v3, %v1958_v61  ;;  %v2572_v50 = vld [vmem:[#allocation7 + $0x540] sm:$0xff] }
 0x372   :  { %v2077_v14 = vpop.f32.mrf.mxu0  ;;  %2683 = vmatpush.msra.mxu1 %v2516_v1  ;;  %2703 = vmatpush.msra.mxu2 %v2580_v48  ;;  %v2632_v3 = vld [vmem:[#allocation7 + $0x720] sm:$0xff] }
 0x373   :  { %v2098_v16 = vadd.f32 %v2097_v12, %v2077_v14  ;;  %v2117_v17 = vpop.f32.mrf.mxu2  ;;  %2663 = vmatpush.msra.mxu0 %v2452_v63  ;;  %v1678_v14 = vadd.f32 %v3207_v52, %v1658_v5  ;;  %2723 = vmatpush.msra.mxu3 %v2644_v0  ;;  %v2568_v52 = vld [vmem:[#allocation7 + $0x520] sm:$0xff]  ;;  %v2380_v63 = vmul.f32 %v3201_v60, %v3201_v60 }
 0x374   :  { %v2137_v21 = vpop.f32.mrf.mxu3  ;;  %2684 = vmatpush.msra.mxu1 %v2512_v10  ;;  %2704 = vmatpush.msra.mxu2 %v2576_v2  ;;  %v2500_v27 = vld [vmem:[#allocation7 + $0x300] sm:$0xff] }
 0x375   :  { %v2118_v20 = vadd.f32 %v2117_v17, %v2098_v16  ;;  %v2444_v16 = vld [vmem:[#allocation7 + $0x140] sm:$0xff]  ;;  %2664 = vmatpush.msra.mxu0 %v2448_v9  ;;  %2724 = vmatpush.msra.mxu3 %v2640_v13 }
 0x376   :  { %v2508_v17 = vld [vmem:[#allocation7 + $0x340] sm:$0xff]  ;;  %2705 = vmatpush.msra.mxu2 %v2572_v50 }
 0x377   :  { %v2138_v24 = vadd.f32 %v2137_v21, %v2118_v20  ;;  %v1998_v20 = vadd.f32 %v3217_v6, %v1978_v15  ;;  %2665 = vmatpush.msra.mxu0 %v2444_v16  ;;  %2685 = vmatpush.msra.mxu1 %v2508_v17  ;;  %v2564_v6 = vld [vmem:[#allocation7 + $0x500] sm:$0xff] }
 0x378   :  { %2725 = vmatpush.msra.mxu3 %v2636_v19  ;;  %2706 = vmatpush.msra.mxu2 %v2568_v52  ;;  %v2432_v32 = vld [vmem:[#allocation7 + $0xe0] sm:$0xff]  ;;  %v2529_v52 = vld [vmem:[#allocation7 + $0x3e8] sm:$0xff] }
 0x379   :  { %v2177_v29 = vpop.f32.mrf.mxu1  ;;  %2666 = vmatpush.msra.mxu0 %v2440_v22  ;;  %2686 = vmatpush.msra.mxu1 %v2504_v23  ;;  %v2018_v31 = vadd.f32 %v3215_v4, %v1998_v20  ;;  %v2492_v38 = vld [vmem:[#allocation7 + $0x2c0] sm:$0xff]  ;;  %v2465_v23 = vld [vmem:[#allocation7 + $0x1e8] sm:$0xff] }
 0x37a   :  { %v2157_v25 = vpop.f32.mrf.mxu0  ;;  %2726 = vmatpush.msra.mxu3 %v2632_v3  ;;  %2707 = vmatpush.msra.mxu2 %v2564_v6  ;;  %v2620_v4 = vld [vmem:[#allocation7 + $0x6c0] sm:$0xff]  ;;  %v2593_v3 = vld [vmem:[#allocation7 + $0x5e8] sm:$0xff] }
 0x37b   :  { %v2158_v28 = vadd.f32 %v2157_v25, %v2138_v24  ;;  %v2197_v34 = vpop.f32.mrf.mxu2  ;;  %v1698_v24 = vadd.f32 %v3205_v51, %v1678_v14  ;;  %2667 = vmatpush.msra.mxu0 %v2436_v26  ;;  %2687 = vmatpush.msra.mxu1 %v2500_v27  ;;  %v2560_v51 = vld [vmem:[#allocation7 + $0x4e0] sm:$0xff]  ;;  %v2038_v35 = vadd.f32 %v3219_v8, %v2018_v31  ;;  %v2525_v26 = vld [vmem:[#allocation7 + $0x3c8] sm:$0xff] }
 0x37c   :  { %2708 = vmatpush.msra.mxu2 %v2560_v51  ;;  %v2424_v42 = vld [vmem:[#allocation7 + $0xa0] sm:$0xff]  ;;  %v2589_v27 = vld [vmem:[#allocation7 + $0x5c8] sm:$0xff] }
 0x37d   :  { %v2178_v33 = vadd.f32 %v2177_v29, %v2158_v28  ;;  %v2628_v29 = vld [vmem:[#allocation7 + $0x700] sm:$0xff]  ;;  %v1718_v30 = vadd.f32 %v3209_v53, %v1698_v24  ;;  %2668 = vmatpush.msra.mxu0 %v2432_v32  ;;  %v3235_v55 = vadd.f32 %v3221_v11, %v2038_v35  ;;  %v2657_v24 = vld [vmem:[#allocation7 + $0x7e8] sm:$0xff] }
 0x37e   :  { %2727 = vmatpush.msra.mxu3 %v2628_v29  ;;  %v2556_v53 = vld [vmem:[#allocation7 + $0x4c0] sm:$0xff]  ;;  %v2457_v6 = vld [vmem:[#allocation7 + $0x1a8] sm:$0xff] }
 0x37f   :  { %v2198_v37 = vadd.f32 %v2197_v34, %v2178_v33  ;;  %v2217_v41 = vpop.f32.mrf.mxu3  ;;  %v2496_v33 = vld [vmem:[#allocation7 + $0x2e0] sm:$0xff]  ;;  %v3232_v40 = vadd.f32 %v3211_v54, %v1718_v30  ;;  %2709 = vmatpush.msra.mxu2 %v2556_v53  ;;  %v2382_v1 = vmul.f32 %v3235_v55, %v3235_v55  ;;  %v2521_v29 = vld [vmem:[#allocation7 + $0x3a8] sm:$0xff] }
 0x380   :  { %v2624_v34 = vld [vmem:[#allocation7 + $0x6e0] sm:$0xff]  ;;  %2688 = vmatpush.msra.mxu1 %v2496_v33  ;;  %v2585_v30 = vld [vmem:[#allocation7 + $0x5a8] sm:$0xff] }
 0x381   :  { %v2218_v62 = vadd.f32 %v2217_v41, %v2198_v37  ;;  %v2428_v37 = vld [vmem:[#allocation7 + $0xc0] sm:$0xff]  ;;  %2728 = vmatpush.msra.mxu3 %v2624_v34  ;;  %v2649_v31 = vld [vmem:[#allocation7 + $0x7a8] sm:$0xff] }
 0x382   :  { %v2488_v43 = vld [vmem:[#allocation7 + $0x2a0] sm:$0xff]  ;;  %2669 = vmatpush.msra.mxu0 %v2428_v37  ;;  %2689 = vmatpush.msra.mxu1 %v2492_v38  ;;  %v2453_v32 = vld [vmem:[#allocation7 + $0x188] sm:$0xff] }
 0x383   :  { %v2552_v8 = vld [vmem:[#allocation7 + $0x4a0] sm:$0xff]  ;;  %2729 = vmatpush.msra.mxu3 %v2620_v4  ;;  %v2517_v33 = vld [vmem:[#allocation7 + $0x388] sm:$0xff] }
 0x384   :  { %v2616_v45 = vld [vmem:[#allocation7 + $0x6a0] sm:$0xff]  ;;  %2670 = vmatpush.msra.mxu0 %v2424_v42  ;;  %2690 = vmatpush.msra.mxu1 %v2488_v43  ;;  %v2581_v51 = vld [vmem:[#allocation7 + $0x588] sm:$0xff] }
 0x385   :  { %v2420_v46 = vld [vmem:[#allocation7 + $0x80] sm:$0xff]  ;;  %2710 = vmatpush.msra.mxu2 %v2552_v8  ;;  %2730 = vmatpush.msra.mxu3 %v2616_v45  ;;  %v2645_v34 = vld [vmem:[#allocation7 + $0x788] sm:$0xff] }
 0x386   :  { %v2484_v49 = vld [vmem:[#allocation7 + $0x280] sm:$0xff]  ;;  %2671 = vmatpush.msra.mxu0 %v2420_v46  ;;  %v2449_v35 = vld [vmem:[#allocation7 + $0x168] sm:$0xff] }
 0x387   :  { %v2548_v54 = vld [vmem:[#allocation7 + $0x480] sm:$0xff]  ;;  %2691 = vmatpush.msra.mxu1 %v2484_v49  ;;  %v2577_v37 = vld [vmem:[#allocation7 + $0x568] sm:$0xff] }
 0x388   :  { %v2612_v56 = vld [vmem:[#allocation7 + $0x680] sm:$0xff]  ;;  %2711 = vmatpush.msra.mxu2 %v2548_v54  ;;  %v2641_v38 = vld [vmem:[#allocation7 + $0x768] sm:$0xff] }
 0x389   :  { %v2416_v58 = vld [vmem:[#allocation7 + $0x60] sm:$0xff]  ;;  %2731 = vmatpush.msra.mxu3 %v2612_v56  ;;  %v2509_v53 = vld [vmem:[#allocation7 + $0x348] sm:$0xff] }
 0x38a   :  { %v2480_v59 = vld [vmem:[#allocation7 + $0x260] sm:$0xff]  ;;  %2672 = vmatpush.msra.mxu0 %v2416_v58  ;;  %v2573_v4 = vld [vmem:[#allocation7 + $0x548] sm:$0xff] }
 0x38b   :  { %v2544_v11 = vld [vmem:[#allocation7 + $0x460] sm:$0xff]  ;;  %2692 = vmatpush.msra.mxu1 %v2480_v59  ;;  %v2441_v42 = vld [vmem:[#allocation7 + $0x128] sm:$0xff] }
 0x38c   :  { %v2412_v0 = vld [vmem:[#allocation7 + $0x40] sm:$0xff]  ;;  %2712 = vmatpush.msra.mxu2 %v2544_v11  ;;  %v2505_v43 = vld [vmem:[#allocation7 + $0x328] sm:$0xff] }
 0x38d   :  { %v2476_v5 = vld [vmem:[#allocation7 + $0x240] sm:$0xff]  ;;  %2673 = vmatpush.msra.mxu0 %v2412_v0  ;;  %v2633_v8 = vld [vmem:[#allocation7 + $0x728] sm:$0xff] }
 0x38e   :  { %v2540_v9 = vld [vmem:[#allocation7 + $0x440] sm:$0xff]  ;;  %2693 = vmatpush.msra.mxu1 %v2476_v5  ;;  %v2437_v45 = vld [vmem:[#allocation7 + $0x108] sm:$0xff] }
 0x38f   :  { %v2604_v10 = vld [vmem:[#allocation7 + $0x640] sm:$0xff]  ;;  %2713 = vmatpush.msra.mxu2 %v2540_v9  ;;  %v2501_v46 = vld [vmem:[#allocation7 + $0x308] sm:$0xff] }
 0x390   :  { %v2408_v13 = vld [vmem:[#allocation7 + $0x20] sm:$0xff]  ;;  %v2565_v49 = vld [vmem:[#allocation7 + $0x508] sm:$0xff] }
 0x391   :  { %v2472_v14 = vld [vmem:[#allocation7 + $0x220] sm:$0xff]  ;;  %2674 = vmatpush.msra.mxu0 %v2408_v13  ;;  %v2629_v54 = vld [vmem:[#allocation7 + $0x708] sm:$0xff] }
 0x392   :  { %v2536_v15 = vld [vmem:[#allocation7 + $0x420] sm:$0xff]  ;;  %2694 = vmatpush.msra.mxu1 %v2472_v14  ;;  %v2433_v56 = vld [vmem:[#allocation7 + $0xe8] sm:$0xff] }
 0x393   :  { %v2600_v16 = vld [vmem:[#allocation7 + $0x620] sm:$0xff]  ;;  %2714 = vmatpush.msra.mxu2 %v2536_v15  ;;  %v2625_v58 = vld [vmem:[#allocation7 + $0x6e8] sm:$0xff] }
 0x394   :  { %v2404_v50 = vld [vmem:[#allocation7] sm:$0xff]  ;;  %v2429_v59 = vld [vmem:[#allocation7 + $0xc8] sm:$0xff] }
 0x395   :  { %v2468_v19 = vld [vmem:[#allocation7 + $0x200] sm:$0xff]  ;;  %2675 = vmatpush.msra.mxu0 %v2404_v50  ;;  %v2557_v11 = vld [vmem:[#allocation7 + $0x4c8] sm:$0xff] }
 0x396   :  { %v2532_v20 = vld [vmem:[#allocation7 + $0x400] sm:$0xff]  ;;  %2695 = vmatpush.msra.mxu1 %v2468_v19  ;;  %v2617_v0 = vld [vmem:[#allocation7 + $0x6a8] sm:$0xff] }
 0x397   :  { %v2596_v22 = vld [vmem:[#allocation7 + $0x600] sm:$0xff]  ;;  %2715 = vmatpush.msra.mxu2 %v2532_v20  ;;  %2740 = vmatpush.msrb.mxu0 %v2465_v23  ;;  %v2421_v5 = vld [vmem:[#allocation7 + $0x88] sm:$0xff] }
 0x398   :  { %2760 = vmatpush.msrb.mxu1 %v2529_v52  ;;  %v2549_v9 = vld [vmem:[#allocation7 + $0x488] sm:$0xff] }
 0x399   :  { %2780 = vmatpush.msrb.mxu2 %v2593_v3  ;;  %v2481_v13 = vld [vmem:[#allocation7 + $0x268] sm:$0xff] }
 0x39a   :  { %2761 = vmatpush.msrb.mxu1 %v2525_v26  ;;  %v2545_v14 = vld [vmem:[#allocation7 + $0x468] sm:$0xff] }
 0x39b   :  { %2781 = vmatpush.msrb.mxu2 %v2589_v27  ;;  %v2609_v15 = vld [vmem:[#allocation7 + $0x668] sm:$0xff] }
 0x39c   :  { %2762 = vmatpush.msrb.mxu1 %v2521_v29  ;;  %v2605_v50 = vld [vmem:[#allocation7 + $0x648] sm:$0xff] }
 0x39d   :  { %2782 = vmatpush.msrb.mxu2 %v2585_v30  ;;  %v2409_v19 = vld [vmem:[#allocation7 + $0x28] sm:$0xff] }
 0x39e   :  { %2763 = vmatpush.msrb.mxu1 %v2517_v33  ;;  %v2473_v20 = vld [vmem:[#allocation7 + $0x228] sm:$0xff] }
 0x39f   :  { %2783 = vmatpush.msrb.mxu2 %v2581_v51  ;;  %v2405_v23 = vld [vmem:[#allocation7 + $0x8] sm:$0xff] }
 0x3a0   :  { %v2469_v52 = vld [vmem:[#allocation7 + $0x208] sm:$0xff] }
 0x3a1   :  { %2784 = vmatpush.msrb.mxu2 %v2577_v37  ;;  %v2533_v3 = vld [vmem:[#allocation7 + $0x408] sm:$0xff]  ;;  %v2530_v37 = vld [vmem:[#allocation7 + $0x3f0] sm:$0xff] }
 0x3a3   :  { %v2237_v57 = vpop.f32.mrf.mxu0  ;;  %2785 = vmatpush.msrb.mxu2 %v2573_v4  ;;  %v2522_v4 = vld [vmem:[#allocation7 + $0x3b0] sm:$0xff] }
 0x3a4   :  { %v2238_v7 = vadd.f32 %v2237_v57, %v2218_v62  ;;  %v2381_v57 = vmul.f32 %v3232_v40, %v3232_v40  ;;  %v2608_v62 = vld [vmem:[#allocation7 + $0x660] sm:$0xff] }
 0x3a5   :  { %2732 = vmatpush.msra.mxu3 %v2608_v62  ;;  %v2621_v62 = vld [vmem:[#allocation7 + $0x6c8] sm:$0xff] }
 0x3a6   :  { %v2384_v2 = vadd.f32 %v2381_v57, %v2380_v63  ;;  %v2497_v57 = vld [vmem:[#allocation7 + $0x2e8] sm:$0xff] }
 0x3a7   :  { %2733 = vmatpush.msra.mxu3 %v2604_v10  ;;  %v2425_v63 = vld [vmem:[#allocation7 + $0xa8] sm:$0xff] }
 0x3a8   :  { %v2613_v10 = vld [vmem:[#allocation7 + $0x688] sm:$0xff] }
 0x3a9   :  { %v2257_v12 = vpop.f32.mrf.mxu1  ;;  %2734 = vmatpush.msra.mxu3 %v2600_v16  ;;  %v2413_v16 = vld [vmem:[#allocation7 + $0x48] sm:$0xff] }
 0x3aa   :  { %v2258_v21 = vadd.f32 %v2257_v12, %v2238_v7 }
 0x3ab   :  { %v2277_v18 = vpop.f32.mrf.mxu2  ;;  %2735 = vmatpush.msra.mxu3 %v2596_v22  ;;  %v2601_v22 = vld [vmem:[#allocation7 + $0x628] sm:$0xff] }
 0x3ac   :  { %v2278_v25 = vadd.f32 %v2277_v18, %v2258_v21  ;;  %v2385_v18 = vadd.f32 %v2384_v2, %v2382_v1  ;;  %v2489_v1 = vld [vmem:[#allocation7 + $0x2a8] sm:$0xff] }
 0x3ad   :  { %2800 = vmatpush.msrb.mxu3 %v2657_v24  ;;  %v2417_v2 = vld [vmem:[#allocation7 + $0x68] sm:$0xff] }
 0x3ae   :  { %v2597_v24 = vld [vmem:[#allocation7 + $0x608] sm:$0xff] }
 0x3b4   :  { %v2297_v28 = vpop.f32.mrf.mxu3 }
 0x3b5   :  { %v2298_v36 = vadd.f32 %v2297_v28, %v2278_v25  ;;  %v2461_v25 = vld [vmem:[#allocation7 + $0x1c8] sm:$0xff] }
 0x3b6   :  { %v2653_v28 = vld [vmem:[#allocation7 + $0x7c8] sm:$0xff]  ;;  %2741 = vmatpush.msrb.mxu0 %v2461_v25 }
 0x3b7   :  { %2801 = vmatpush.msrb.mxu3 %v2653_v28 }
 0x3b8   :  { %2742 = vmatpush.msrb.mxu0 %v2457_v6 }
 0x3b9   :  { %2802 = vmatpush.msrb.mxu3 %v2649_v31 }
 0x3ba   :  { %2743 = vmatpush.msrb.mxu0 %v2453_v32 }
 0x3bb   :  { %2803 = vmatpush.msrb.mxu3 %v2645_v34 }
 0x3bc   :  { %2744 = vmatpush.msrb.mxu0 %v2449_v35 }
 0x3bd   :  { %2804 = vmatpush.msrb.mxu3 %v2641_v38  ;;  %v2594_v38 = vld [vmem:[#allocation7 + $0x5f0] sm:$0xff] }
 0x3e4   :  { %v2317_v39 = vpop.f32.mrf.mxu0 }
 0x3e5   :  { %v2318_v41 = vadd.f32 %v2317_v39, %v2298_v36  ;;  %v2513_v36 = vld [vmem:[#allocation7 + $0x368] sm:$0xff] }
 0x3e6   :  { %2764 = vmatpush.msrb.mxu1 %v2513_v36  ;;  %v2445_v39 = vld [vmem:[#allocation7 + $0x148] sm:$0xff]  ;;  %v2466_v36 = vld [vmem:[#allocation7 + $0x1f0] sm:$0xff] }
 0x3e7   :  { %2745 = vmatpush.msrb.mxu0 %v2445_v39  ;;  %v2658_v39 = vld [vmem:[#allocation7 + $0x7f0] sm:$0xff] }
 0x3e8   :  { %v2337_v44 = vpop.f32.mrf.mxu1  ;;  %2765 = vmatpush.msrb.mxu1 %v2509_v53  ;;  %v2654_v53 = vld [vmem:[#allocation7 + $0x7d0] sm:$0xff] }
 0x3e9   :  { %v2338_v47 = vadd.f32 %v2337_v44, %v2318_v41  ;;  %v2637_v41 = vld [vmem:[#allocation7 + $0x748] sm:$0xff]  ;;  %2746 = vmatpush.msrb.mxu0 %v2441_v42  ;;  %v2650_v42 = vld [vmem:[#allocation7 + $0x7b0] sm:$0xff] }
 0x3ea   :  { %2805 = vmatpush.msrb.mxu3 %v2637_v41  ;;  %v2569_v44 = vld [vmem:[#allocation7 + $0x528] sm:$0xff]  ;;  %2766 = vmatpush.msrb.mxu1 %v2505_v43  ;;  %v2586_v41 = vld [vmem:[#allocation7 + $0x5b0] sm:$0xff] }
 0x3eb   :  { %2786 = vmatpush.msrb.mxu2 %v2569_v44  ;;  %2747 = vmatpush.msrb.mxu0 %v2437_v45  ;;  %v2454_v43 = vld [vmem:[#allocation7 + $0x190] sm:$0xff] }
 0x3ec   :  { %v2357_v61 = vpop.f32.mrf.mxu2  ;;  %2806 = vmatpush.msrb.mxu3 %v2633_v8  ;;  %2767 = vmatpush.msrb.mxu1 %v2501_v46  ;;  %v2518_v44 = vld [vmem:[#allocation7 + $0x390] sm:$0xff] }
 0x3ed   :  { %v2358_v48 = vadd.f32 %v2357_v61, %v2338_v47  ;;  %2787 = vmatpush.msrb.mxu2 %v2565_v49  ;;  %v2561_v47 = vld [vmem:[#allocation7 + $0x4e8] sm:$0xff]  ;;  %2748 = vmatpush.msrb.mxu0 %v2433_v56  ;;  %v2582_v8 = vld [vmem:[#allocation7 + $0x590] sm:$0xff] }
 0x3ee   :  { %2807 = vmatpush.msrb.mxu3 %v2629_v54  ;;  %2768 = vmatpush.msrb.mxu1 %v2497_v57  ;;  %v2493_v61 = vld [vmem:[#allocation7 + $0x2c8] sm:$0xff]  ;;  %v2646_v45 = vld [vmem:[#allocation7 + $0x790] sm:$0xff] }
 0x3ef   :  { %v2377_v7 = vpop.f32.mrf.mxu3  ;;  %2788 = vmatpush.msrb.mxu2 %v2561_v47  ;;  %2749 = vmatpush.msrb.mxu0 %v2429_v59  ;;  %v2450_v46 = vld [vmem:[#allocation7 + $0x170] sm:$0xff] }
 0x3f0   :  { %v3243_v12 = vadd.f32 %v2377_v7, %v2358_v48  ;;  %2808 = vmatpush.msrb.mxu3 %v2625_v58  ;;  %2769 = vmatpush.msrb.mxu1 %v2493_v61  ;;  %v2553_v48 = vld [vmem:[#allocation7 + $0x4a8] sm:$0xff]  ;;  %v2514_v49 = vld [vmem:[#allocation7 + $0x370] sm:$0xff] }
 0x3f1   :  { %2789 = vmatpush.msrb.mxu2 %v2557_v11  ;;  %2750 = vmatpush.msrb.mxu0 %v2425_v63  ;;  %v2485_v7 = vld [vmem:[#allocation7 + $0x288] sm:$0xff]  ;;  %v2578_v54 = vld [vmem:[#allocation7 + $0x570] sm:$0xff] }
 0x3f2   :  { %v2383_v17 = vmul.f32 %v3243_v12, %v3243_v12  ;;  %2809 = vmatpush.msrb.mxu3 %v2621_v62  ;;  %2770 = vmatpush.msrb.mxu1 %v2489_v1  ;;  %v2642_v56 = vld [vmem:[#allocation7 + $0x770] sm:$0xff] }
 0x3f3   :  { %2790 = vmatpush.msrb.mxu2 %v2553_v48  ;;  %2751 = vmatpush.msrb.mxu0 %v2421_v5  ;;  %v2446_v57 = vld [vmem:[#allocation7 + $0x150] sm:$0xff] }
 0x3f4   :  { %v2386_v21 = vadd.f32 %v2385_v18, %v2383_v17  ;;  %2810 = vmatpush.msrb.mxu3 %v2617_v0  ;;  %2771 = vmatpush.msrb.mxu1 %v2485_v7  ;;  %v2477_v17 = vld [vmem:[#allocation7 + $0x248] sm:$0xff]  ;;  %v2510_v47 = vld [vmem:[#allocation7 + $0x350] sm:$0xff] }
 0x3f5   :  { %2791 = vmatpush.msrb.mxu2 %v2549_v9  ;;  %2752 = vmatpush.msrb.mxu0 %v2417_v2  ;;  %v2541_v18 = vld [vmem:[#allocation7 + $0x448] sm:$0xff]  ;;  %v2574_v58 = vld [vmem:[#allocation7 + $0x550] sm:$0xff] }
 0x3f6   :  { %2387 = vadd.xlane.f32.xlu0 %v2386_v21  ;;  %2811 = vmatpush.msrb.mxu3 %v2613_v10  ;;  %v2537_v21 = vld [vmem:[#allocation7 + $0x428] sm:$0xff]  ;;  %v2638_v59 = vld [vmem:[#allocation7 + $0x750] sm:$0xff] }
 0x3f7   :  { %2772 = vmatpush.msrb.mxu1 %v2481_v13  ;;  %2792 = vmatpush.msrb.mxu2 %v2545_v14  ;;  %v2442_v61 = vld [vmem:[#allocation7 + $0x130] sm:$0xff] }
 0x3f8   :  { %2812 = vmatpush.msrb.mxu3 %v2609_v15  ;;  %2753 = vmatpush.msrb.mxu0 %v2413_v16  ;;  %v2506_v11 = vld [vmem:[#allocation7 + $0x330] sm:$0xff] }
 0x3f9   :  { %2773 = vmatpush.msrb.mxu1 %v2477_v17  ;;  %2793 = vmatpush.msrb.mxu2 %v2541_v18  ;;  %v2570_v62 = vld [vmem:[#allocation7 + $0x530] sm:$0xff] }
 0x3fa   :  { %2813 = vmatpush.msrb.mxu3 %v2605_v50  ;;  %2754 = vmatpush.msrb.mxu0 %v2409_v19  ;;  %v2634_v63 = vld [vmem:[#allocation7 + $0x730] sm:$0xff] }
 0x3fb   :  { %2774 = vmatpush.msrb.mxu1 %v2473_v20  ;;  %2794 = vmatpush.msrb.mxu2 %v2537_v21  ;;  %v2438_v1 = vld [vmem:[#allocation7 + $0x110] sm:$0xff] }
 0x3fc   :  { %2814 = vmatpush.msrb.mxu3 %v2601_v22  ;;  %2755 = vmatpush.msrb.mxu0 %v2405_v23  ;;  %v2502_v48 = vld [vmem:[#allocation7 + $0x310] sm:$0xff] }
 0x3fd   :  { %2775 = vmatpush.msrb.mxu1 %v2469_v52  ;;  %2795 = vmatpush.msrb.mxu2 %v2533_v3  ;;  %v2566_v0 = vld [vmem:[#allocation7 + $0x510] sm:$0xff] }
 0x3fe   :  { %2815 = vmatpush.msrb.mxu3 %v2597_v24  ;;  %v2630_v5 = vld [vmem:[#allocation7 + $0x710] sm:$0xff] }
 0x3ff   :  { %v2434_v7 = vld [vmem:[#allocation7 + $0xf0] sm:$0xff] }
 0x400   :  { %v2498_v9 = vld [vmem:[#allocation7 + $0x2f0] sm:$0xff] }
 0x401   :  { %v2562_v10 = vld [vmem:[#allocation7 + $0x4f0] sm:$0xff] }
 0x402   :  { %v2626_v2 = vld [vmem:[#allocation7 + $0x6f0] sm:$0xff] }
 0x403   :  { %v2430_v13 = vld [vmem:[#allocation7 + $0xd0] sm:$0xff] }
 0x404   :  { %v2494_v14 = vld [vmem:[#allocation7 + $0x2d0] sm:$0xff] }
 0x405   :  { %v2558_v15 = vld [vmem:[#allocation7 + $0x4d0] sm:$0xff] }
 0x406   :  { %v2622_v16 = vld [vmem:[#allocation7 + $0x6d0] sm:$0xff] }
 0x407   :  { %v2426_v17 = vld [vmem:[#allocation7 + $0xb0] sm:$0xff] }
 0x408   :  { %v2490_v18 = vld [vmem:[#allocation7 + $0x2b0] sm:$0xff] }
 0x409   :  { %v2554_v50 = vld [vmem:[#allocation7 + $0x4b0] sm:$0xff] }
 0x40a   :  { %v2618_v19 = vld [vmem:[#allocation7 + $0x6b0] sm:$0xff] }
 0x40b   :  { %v2422_v20 = vld [vmem:[#allocation7 + $0x90] sm:$0xff] }
 0x40c   :  { %v2486_v21 = vld [vmem:[#allocation7 + $0x290] sm:$0xff] }
 0x40d   :  { %v2550_v22 = vld [vmem:[#allocation7 + $0x490] sm:$0xff] }
 0x40e   :  { %v2614_v23 = vld [vmem:[#allocation7 + $0x690] sm:$0xff] }
 0x40f   :  { %v2418_v52 = vld [vmem:[#allocation7 + $0x70] sm:$0xff] }
 0x410   :  { %v2482_v3 = vld [vmem:[#allocation7 + $0x270] sm:$0xff] }
 0x411   :  { %v2546_v24 = vld [vmem:[#allocation7 + $0x470] sm:$0xff] }
 0x469   :  { %v2388_v25 = vpop.xlane.xlu0 %2387 }
 0x46a   :  { %v2389_v26 = vmax.f32 %v2388_v25, 1e-24  ;;  %v2610_v25 = vld [vmem:[#allocation7 + $0x670] sm:$0xff] }
 0x46c   :  { %3008 = vrsqrt.f32 %v2389_v26  ;;  %vm2396_vm1 = vweird.f32 %v2389_v26 }
 0x472   :  { %v3009_v27 = vpop.eup %3008 }
 0x473   :  { %v2391_v28 = vmul.f32 %v3009_v27, %v2389_v26  ;;  %vm2397_vm0 = vweird.f32 %v3009_v27  ;;  %v2414_v26 = vld [vmem:[#allocation7 + $0x50] sm:$0xff] }
 0x474   :  { %vm2398_vm2 = vmor %vm2396_vm1, %vm2397_vm0 }
 0x475   :  { %v2392_v6 = vmul.f32 %v3009_v27, %v2391_v28  ;;  %v2542_v28 = vld [vmem:[#allocation7 + $0x450] sm:$0xff] }
 0x477   :  { %v2393_v29 = vmul.f32 0.5, %v2392_v6  ;;  %v2606_v6 = vld [vmem:[#allocation7 + $0x650] sm:$0xff] }
 0x479   :  { %v2394_v30 = vsub.f32 1.5, %v2393_v29  ;;  %v2410_v29 = vld [vmem:[#allocation7 + $0x30] sm:$0xff] }
 0x47b   :  { %v2395_v31 = vmul.f32 %v3009_v27, %v2394_v30  ;;  %v2474_v30 = vld [vmem:[#allocation7 + $0x230] sm:$0xff] }
 0x47d   :  { %v2399_v32 = vsel %vm2398_vm2, %v3009_v27, %v2395_v31  ;;  %v2478_v27 = vld [vmem:[#allocation7 + $0x250] sm:$0xff] }
 0x47e   :  { %v3248_v33 = vmul.f32 %v2399_v32, %v3201_v60  ;;  %v3251_v51 = vmul.f32 %v2399_v32, %v3232_v40  ;;  %v3254_v34 = vmul.f32 %v2399_v32, %v3235_v55  ;;  %v3257_v35 = vmul.f32 %v2399_v32, %v3243_v12  ;;  %v2462_v60 = vld [vmem:[#allocation7 + $0x1d0] sm:$0xff] }
 0x47f   :  { %v2526_v40 = vld [vmem:[#allocation7 + $0x3d0] sm:$0xff] }
 0x480   :  { %2676 = vmatmul.f32.vlgmr.msra.gmra.mxu0 %v3248_v33  ;;  %2696 = vmatmul.f32.vlgmr.msra.gmra.mxu1 %v3251_v51  ;;  %v2590_v55 = vld [vmem:[#allocation7 + $0x5d0] sm:$0xff] }
 0x481   :  { %2716 = vmatmul.f32.vlgmr.msra.gmra.mxu2 %v3254_v34  ;;  %2736 = vmatmul.f32.vlgmr.msra.gmra.mxu3 %v3257_v35  ;;  %v2458_v12 = vld [vmem:[#allocation7 + $0x1b0] sm:$0xff] }
 0x482   :  { %2820 = vmatpush.msra.mxu0 %v2466_v36  ;;  %2840 = vmatpush.msra.mxu1 %v2530_v37  ;;  %v2538_v31 = vld [vmem:[#allocation7 + $0x430] sm:$0xff] }
 0x483   :  { %2860 = vmatpush.msra.mxu2 %v2594_v38  ;;  %2880 = vmatpush.msra.mxu3 %v2658_v39  ;;  %v2602_v32 = vld [vmem:[#allocation7 + $0x630] sm:$0xff] }
 0x484   :  { %2821 = vmatpush.msra.mxu0 %v2462_v60  ;;  %2841 = vmatpush.msra.mxu1 %v2526_v40  ;;  %v2406_v36 = vld [vmem:[#allocation7 + $0x10] sm:$0xff]  ;;  %v2467_v60 = vld [vmem:[#allocation7 + $0x1f8] sm:$0xff] }
 0x485   :  { %2861 = vmatpush.msra.mxu2 %v2590_v55  ;;  %2881 = vmatpush.msra.mxu3 %v2654_v53  ;;  %v2470_v37 = vld [vmem:[#allocation7 + $0x210] sm:$0xff]  ;;  %v2531_v40 = vld [vmem:[#allocation7 + $0x3f8] sm:$0xff] }
 0x486   :  { %2822 = vmatpush.msra.mxu0 %v2458_v12  ;;  %2842 = vmatpush.msra.mxu1 %v2522_v4  ;;  %v2534_v38 = vld [vmem:[#allocation7 + $0x410] sm:$0xff]  ;;  %v2595_v55 = vld [vmem:[#allocation7 + $0x5f8] sm:$0xff] }
 0x487   :  { %2862 = vmatpush.msra.mxu2 %v2586_v41  ;;  %2882 = vmatpush.msra.mxu3 %v2650_v42  ;;  %v2598_v39 = vld [vmem:[#allocation7 + $0x610] sm:$0xff]  ;;  %v2659_v53 = vld [vmem:[#allocation7 + $0x7f8] sm:$0xff] }
 0x488   :  { %2823 = vmatpush.msra.mxu0 %v2454_v43  ;;  %2843 = vmatpush.msra.mxu1 %v2518_v44  ;;  %v2463_v12 = vld [vmem:[#allocation7 + $0x1d8] sm:$0xff] }
 0x489   :  { %2863 = vmatpush.msra.mxu2 %v2582_v8  ;;  %2883 = vmatpush.msra.mxu3 %v2646_v45  ;;  %v2527_v4 = vld [vmem:[#allocation7 + $0x3d8] sm:$0xff] }
 0x48a   :  { %2756 = vmatmul.f32.vlgmr.msrb.gmra.mxu0 %v3248_v33  ;;  %2776 = vmatmul.f32.vlgmr.msrb.gmra.mxu1 %v3251_v51  ;;  %v2591_v41 = vld [vmem:[#allocation7 + $0x5d8] sm:$0xff] }
 0x48b   :  { %2796 = vmatmul.f32.vlgmr.msrb.gmra.mxu2 %v3254_v34  ;;  %2816 = vmatmul.f32.vlgmr.msrb.gmra.mxu3 %v3257_v35  ;;  %v2655_v42 = vld [vmem:[#allocation7 + $0x7d8] sm:$0xff] }
 0x48c   :  { %2824 = vmatpush.msra.mxu0 %v2450_v46  ;;  %2844 = vmatpush.msra.mxu1 %v2514_v49  ;;  %v2459_v43 = vld [vmem:[#allocation7 + $0x1b8] sm:$0xff] }
 0x48d   :  { %2864 = vmatpush.msra.mxu2 %v2578_v54  ;;  %2884 = vmatpush.msra.mxu3 %v2642_v56  ;;  %v2523_v44 = vld [vmem:[#allocation7 + $0x3b8] sm:$0xff] }
 0x48e   :  { %2825 = vmatpush.msra.mxu0 %v2446_v57  ;;  %2845 = vmatpush.msra.mxu1 %v2510_v47  ;;  %v2587_v8 = vld [vmem:[#allocation7 + $0x5b8] sm:$0xff] }
 0x48f   :  { %2865 = vmatpush.msra.mxu2 %v2574_v58  ;;  %2885 = vmatpush.msra.mxu3 %v2638_v59  ;;  %v2651_v45 = vld [vmem:[#allocation7 + $0x7b8] sm:$0xff] }
 0x490   :  { %2826 = vmatpush.msra.mxu0 %v2442_v61  ;;  %2846 = vmatpush.msra.mxu1 %v2506_v11  ;;  %v2455_v46 = vld [vmem:[#allocation7 + $0x198] sm:$0xff] }
 0x491   :  { %2866 = vmatpush.msra.mxu2 %v2570_v62  ;;  %2886 = vmatpush.msra.mxu3 %v2634_v63  ;;  %v2519_v49 = vld [vmem:[#allocation7 + $0x398] sm:$0xff] }
 0x492   :  { %2827 = vmatpush.msra.mxu0 %v2438_v1  ;;  %2847 = vmatpush.msra.mxu1 %v2502_v48  ;;  %v2583_v54 = vld [vmem:[#allocation7 + $0x598] sm:$0xff] }
 0x493   :  { %2867 = vmatpush.msra.mxu2 %v2566_v0  ;;  %2887 = vmatpush.msra.mxu3 %v2630_v5  ;;  %v2647_v56 = vld [vmem:[#allocation7 + $0x798] sm:$0xff] }
 0x494   :  { %2828 = vmatpush.msra.mxu0 %v2434_v7  ;;  %2848 = vmatpush.msra.mxu1 %v2498_v9  ;;  %v2451_v57 = vld [vmem:[#allocation7 + $0x178] sm:$0xff] }
 0x495   :  { %2868 = vmatpush.msra.mxu2 %v2562_v10  ;;  %2888 = vmatpush.msra.mxu3 %v2626_v2  ;;  %v2515_v47 = vld [vmem:[#allocation7 + $0x378] sm:$0xff] }
 0x496   :  { %2829 = vmatpush.msra.mxu0 %v2430_v13  ;;  %2849 = vmatpush.msra.mxu1 %v2494_v14  ;;  %v2579_v58 = vld [vmem:[#allocation7 + $0x578] sm:$0xff] }
 0x497   :  { %2869 = vmatpush.msra.mxu2 %v2558_v15  ;;  %2889 = vmatpush.msra.mxu3 %v2622_v16  ;;  %v2643_v59 = vld [vmem:[#allocation7 + $0x778] sm:$0xff] }
 0x498   :  { %2830 = vmatpush.msra.mxu0 %v2426_v17  ;;  %2850 = vmatpush.msra.mxu1 %v2490_v18  ;;  %v2447_v61 = vld [vmem:[#allocation7 + $0x158] sm:$0xff] }
 0x499   :  { %2870 = vmatpush.msra.mxu2 %v2554_v50  ;;  %2890 = vmatpush.msra.mxu3 %v2618_v19  ;;  %v2511_v11 = vld [vmem:[#allocation7 + $0x358] sm:$0xff] }
 0x49a   :  { %2831 = vmatpush.msra.mxu0 %v2422_v20  ;;  %2851 = vmatpush.msra.mxu1 %v2486_v21  ;;  %v2575_v62 = vld [vmem:[#allocation7 + $0x558] sm:$0xff] }
 0x49b   :  { %2871 = vmatpush.msra.mxu2 %v2550_v22  ;;  %2891 = vmatpush.msra.mxu3 %v2614_v23  ;;  %v2639_v63 = vld [vmem:[#allocation7 + $0x758] sm:$0xff] }
 0x49c   :  { %2832 = vmatpush.msra.mxu0 %v2418_v52  ;;  %2852 = vmatpush.msra.mxu1 %v2482_v3  ;;  %v2443_v1 = vld [vmem:[#allocation7 + $0x138] sm:$0xff] }
 0x49d   :  { %2872 = vmatpush.msra.mxu2 %v2546_v24  ;;  %2892 = vmatpush.msra.mxu3 %v2610_v25  ;;  %v2507_v48 = vld [vmem:[#allocation7 + $0x338] sm:$0xff] }
 0x49e   :  { %2833 = vmatpush.msra.mxu0 %v2414_v26  ;;  %2853 = vmatpush.msra.mxu1 %v2478_v27  ;;  %v2571_v0 = vld [vmem:[#allocation7 + $0x538] sm:$0xff] }
 0x49f   :  { %2873 = vmatpush.msra.mxu2 %v2542_v28  ;;  %2893 = vmatpush.msra.mxu3 %v2606_v6  ;;  %v2635_v5 = vld [vmem:[#allocation7 + $0x738] sm:$0xff] }
 0x4a0   :  { %2834 = vmatpush.msra.mxu0 %v2410_v29  ;;  %2854 = vmatpush.msra.mxu1 %v2474_v30  ;;  %v2439_v7 = vld [vmem:[#allocation7 + $0x118] sm:$0xff] }
 0x4a1   :  { %2874 = vmatpush.msra.mxu2 %v2538_v31  ;;  %2894 = vmatpush.msra.mxu3 %v2602_v32  ;;  %v2503_v9 = vld [vmem:[#allocation7 + $0x318] sm:$0xff] }
 0x4a2   :  { %2835 = vmatpush.msra.mxu0 %v2406_v36  ;;  %2855 = vmatpush.msra.mxu1 %v2470_v37  ;;  %v2567_v10 = vld [vmem:[#allocation7 + $0x518] sm:$0xff] }
 0x4a3   :  { %2875 = vmatpush.msra.mxu2 %v2534_v38  ;;  %2895 = vmatpush.msra.mxu3 %v2598_v39  ;;  %v2631_v2 = vld [vmem:[#allocation7 + $0x718] sm:$0xff] }
 0x4a4   :  { %2836 = vmatmul.f32.vlgmr.msra.gmra.mxu0 %v3248_v33  ;;  %2856 = vmatmul.f32.vlgmr.msra.gmra.mxu1 %v3251_v51  ;;  %v2435_v13 = vld [vmem:[#allocation7 + $0xf8] sm:$0xff] }
 0x4a5   :  { %2876 = vmatmul.f32.vlgmr.msra.gmra.mxu2 %v3254_v34  ;;  %2896 = vmatmul.f32.vlgmr.msra.gmra.mxu3 %v3257_v35  ;;  %v2499_v14 = vld [vmem:[#allocation7 + $0x2f8] sm:$0xff] }
 0x4a6   :  { %2900 = vmatpush.msrb.mxu0 %v2467_v60  ;;  %2920 = vmatpush.msrb.mxu1 %v2531_v40  ;;  %v2563_v15 = vld [vmem:[#allocation7 + $0x4f8] sm:$0xff] }
 0x4a7   :  { %2940 = vmatpush.msrb.mxu2 %v2595_v55  ;;  %2960 = vmatpush.msrb.mxu3 %v2659_v53  ;;  %v2627_v16 = vld [vmem:[#allocation7 + $0x6f8] sm:$0xff] }
 0x4a8   :  { %2901 = vmatpush.msrb.mxu0 %v2463_v12  ;;  %2921 = vmatpush.msrb.mxu1 %v2527_v4  ;;  %v2431_v17 = vld [vmem:[#allocation7 + $0xd8] sm:$0xff] }
 0x4a9   :  { %2941 = vmatpush.msrb.mxu2 %v2591_v41  ;;  %2961 = vmatpush.msrb.mxu3 %v2655_v42  ;;  %v2495_v18 = vld [vmem:[#allocation7 + $0x2d8] sm:$0xff] }
 0x4aa   :  { %2902 = vmatpush.msrb.mxu0 %v2459_v43  ;;  %2922 = vmatpush.msrb.mxu1 %v2523_v44  ;;  %v2559_v50 = vld [vmem:[#allocation7 + $0x4d8] sm:$0xff] }
 0x4ab   :  { %2942 = vmatpush.msrb.mxu2 %v2587_v8  ;;  %2962 = vmatpush.msrb.mxu3 %v2651_v45  ;;  %v2623_v19 = vld [vmem:[#allocation7 + $0x6d8] sm:$0xff] }
 0x4ac   :  { %2903 = vmatpush.msrb.mxu0 %v2455_v46  ;;  %2923 = vmatpush.msrb.mxu1 %v2519_v49  ;;  %v2427_v20 = vld [vmem:[#allocation7 + $0xb8] sm:$0xff] }
 0x4ad   :  { %2943 = vmatpush.msrb.mxu2 %v2583_v54  ;;  %2963 = vmatpush.msrb.mxu3 %v2647_v56  ;;  %v2491_v21 = vld [vmem:[#allocation7 + $0x2b8] sm:$0xff] }
 0x4ae   :  { %2904 = vmatpush.msrb.mxu0 %v2451_v57  ;;  %2924 = vmatpush.msrb.mxu1 %v2515_v47  ;;  %v2555_v22 = vld [vmem:[#allocation7 + $0x4b8] sm:$0xff] }
 0x4af   :  { %2944 = vmatpush.msrb.mxu2 %v2579_v58  ;;  %2964 = vmatpush.msrb.mxu3 %v2643_v59  ;;  %v2619_v23 = vld [vmem:[#allocation7 + $0x6b8] sm:$0xff] }
 0x4b0   :  { %2905 = vmatpush.msrb.mxu0 %v2447_v61  ;;  %2925 = vmatpush.msrb.mxu1 %v2511_v11  ;;  %v2423_v52 = vld [vmem:[#allocation7 + $0x98] sm:$0xff] }
 0x4b1   :  { %2945 = vmatpush.msrb.mxu2 %v2575_v62  ;;  %2965 = vmatpush.msrb.mxu3 %v2639_v63  ;;  %v2487_v3 = vld [vmem:[#allocation7 + $0x298] sm:$0xff] }
 0x4b2   :  { %2906 = vmatpush.msrb.mxu0 %v2443_v1  ;;  %2926 = vmatpush.msrb.mxu1 %v2507_v48  ;;  %v2551_v24 = vld [vmem:[#allocation7 + $0x498] sm:$0xff] }
 0x4b3   :  { %2946 = vmatpush.msrb.mxu2 %v2571_v0  ;;  %2966 = vmatpush.msrb.mxu3 %v2635_v5  ;;  %v2615_v25 = vld [vmem:[#allocation7 + $0x698] sm:$0xff] }
 0x4b4   :  { %2907 = vmatpush.msrb.mxu0 %v2439_v7  ;;  %2927 = vmatpush.msrb.mxu1 %v2503_v9  ;;  %v2419_v26 = vld [vmem:[#allocation7 + $0x78] sm:$0xff] }
 0x4b5   :  { %2947 = vmatpush.msrb.mxu2 %v2567_v10  ;;  %2967 = vmatpush.msrb.mxu3 %v2631_v2  ;;  %v2483_v27 = vld [vmem:[#allocation7 + $0x278] sm:$0xff] }
 0x4b6   :  { %2908 = vmatpush.msrb.mxu0 %v2435_v13  ;;  %2928 = vmatpush.msrb.mxu1 %v2499_v14  ;;  %v2547_v28 = vld [vmem:[#allocation7 + $0x478] sm:$0xff] }
 0x4b7   :  { %2948 = vmatpush.msrb.mxu2 %v2563_v15  ;;  %2968 = vmatpush.msrb.mxu3 %v2627_v16  ;;  %v2611_v6 = vld [vmem:[#allocation7 + $0x678] sm:$0xff] }
 0x4b8   :  { %2909 = vmatpush.msrb.mxu0 %v2431_v17  ;;  %2929 = vmatpush.msrb.mxu1 %v2495_v18  ;;  %v2415_v29 = vld [vmem:[#allocation7 + $0x58] sm:$0xff] }
 0x4b9   :  { %2949 = vmatpush.msrb.mxu2 %v2559_v50  ;;  %2969 = vmatpush.msrb.mxu3 %v2623_v19  ;;  %v2479_v30 = vld [vmem:[#allocation7 + $0x258] sm:$0xff] }
 0x4ba   :  { %2910 = vmatpush.msrb.mxu0 %v2427_v20  ;;  %2930 = vmatpush.msrb.mxu1 %v2491_v21  ;;  %v2543_v31 = vld [vmem:[#allocation7 + $0x458] sm:$0xff] }
 0x4bb   :  { %2950 = vmatpush.msrb.mxu2 %v2555_v22  ;;  %2970 = vmatpush.msrb.mxu3 %v2619_v23  ;;  %v2607_v32 = vld [vmem:[#allocation7 + $0x658] sm:$0xff] }
 0x4bc   :  { %2911 = vmatpush.msrb.mxu0 %v2423_v52  ;;  %2931 = vmatpush.msrb.mxu1 %v2487_v3  ;;  %v2411_v36 = vld [vmem:[#allocation7 + $0x38] sm:$0xff] }
 0x4bd   :  { %2951 = vmatpush.msrb.mxu2 %v2551_v24  ;;  %2971 = vmatpush.msrb.mxu3 %v2615_v25  ;;  %v2475_v37 = vld [vmem:[#allocation7 + $0x238] sm:$0xff] }
 0x4be   :  { %2912 = vmatpush.msrb.mxu0 %v2419_v26  ;;  %2932 = vmatpush.msrb.mxu1 %v2483_v27  ;;  %v2539_v38 = vld [vmem:[#allocation7 + $0x438] sm:$0xff] }
 0x4bf   :  { %2952 = vmatpush.msrb.mxu2 %v2547_v28  ;;  %2972 = vmatpush.msrb.mxu3 %v2611_v6  ;;  %v2603_v39 = vld [vmem:[#allocation7 + $0x638] sm:$0xff] }
 0x4c0   :  { %2913 = vmatpush.msrb.mxu0 %v2415_v29  ;;  %2933 = vmatpush.msrb.mxu1 %v2479_v30  ;;  %v2407_v60 = vld [vmem:[#allocation7 + $0x18] sm:$0xff] }
 0x4c1   :  { %2953 = vmatpush.msrb.mxu2 %v2543_v31  ;;  %2973 = vmatpush.msrb.mxu3 %v2607_v32  ;;  %v2471_v40 = vld [vmem:[#allocation7 + $0x218] sm:$0xff] }
 0x4c2   :  { %2914 = vmatpush.msrb.mxu0 %v2411_v36  ;;  %2934 = vmatpush.msrb.mxu1 %v2475_v37  ;;  %v2535_v55 = vld [vmem:[#allocation7 + $0x418] sm:$0xff] }
 0x4c3   :  { %v2599_v53 = vld [vmem:[#allocation7 + $0x618] sm:$0xff]  ;;  %2954 = vmatpush.msrb.mxu2 %v2539_v38  ;;  %2974 = vmatpush.msrb.mxu3 %v2603_v39 }
 0x4c4   :  { %2915 = vmatpush.msrb.mxu0 %v2407_v60  ;;  %2935 = vmatpush.msrb.mxu1 %v2471_v40 }
 0x4c5   :  { %2955 = vmatpush.msrb.mxu2 %v2535_v55  ;;  %2975 = vmatpush.msrb.mxu3 %v2599_v53 }
 0x4c6   :  { %2916 = vmatmul.f32.vlgmr.msrb.gmra.mxu0 %v3248_v33  ;;  %2936 = vmatmul.f32.vlgmr.msrb.gmra.mxu1 %v3251_v51 }
 0x4c7   :  { %2956 = vmatmul.f32.vlgmr.msrb.gmra.mxu2 %v3254_v34  ;;  %2976 = vmatmul.f32.vlgmr.msrb.gmra.mxu3 %v3257_v35 }
 0x4fd   :  { %v2677_v12 = vpop.f32.mrf.mxu0  ;;  %v2697_v4 = vpop.f32.mrf.mxu1 }
 0x4fe   :  { %v2698_v41 = vadd.f32 %v2697_v4, %v2677_v12 }
 0x504   :  { %v2717_v42 = vpop.f32.mrf.mxu2  ;;  %v2737_v44 = vpop.f32.mrf.mxu3 }
 0x505   :  { %v2718_v43 = vadd.f32 %v2717_v42, %v2698_v41 }
 0x507   :  { %v2738_v8 = vadd.f32 %v2737_v44, %v2718_v43  ;;  %v2757_v45 = vpop.f32.mrf.mxu0  ;;  %v2777_v46 = vpop.f32.mrf.mxu1 }
 0x508   :  { %v2778_v49 = vadd.f32 %v2777_v46, %v2757_v45 }
 0x509   :  { %2980 = vst [vmem:[#allocation8] sm:$0xff] %v2738_v8 }
 0x50e   :  { %v2797_v54 = vpop.f32.mrf.mxu2  ;;  %v2817_v33 = vpop.f32.mrf.mxu3 }
 0x50f   :  { %v2798_v56 = vadd.f32 %v2797_v54, %v2778_v49 }
 0x511   :  { %v2818_v57 = vadd.f32 %v2817_v33, %v2798_v56 }
 0x513   :  { %2981 = vst [vmem:[#allocation8 + $0x8] sm:$0xff] %v2818_v57 }
 0x521   :  { %v2837_v51 = vpop.f32.mrf.mxu0  ;;  %v2857_v34 = vpop.f32.mrf.mxu1 }
 0x522   :  { %v2858_v47 = vadd.f32 %v2857_v34, %v2837_v51 }
 0x528   :  { %v2877_v35 = vpop.f32.mrf.mxu2  ;;  %v2897_v59 = vpop.f32.mrf.mxu3 }
 0x529   :  { %v2878_v58 = vadd.f32 %v2877_v35, %v2858_v47 }
 0x52b   :  { %v2898_v61 = vadd.f32 %v2897_v59, %v2878_v58 }
 0x52d   :  { %2982 = vst [vmem:[#allocation8 + $0x10] sm:$0xff] %v2898_v61 }
 0x543   :  { %v2917_v11 = vpop.f32.mrf.mxu0  ;;  %v2937_v62 = vpop.f32.mrf.mxu1 }
 0x544   :  { %v2938_v63 = vadd.f32 %v2937_v62, %v2917_v11 }
 0x54a   :  { %v2957_v1 = vpop.f32.mrf.mxu2  ;;  %v2977_v0 = vpop.f32.mrf.mxu3 }
 0x54b   :  { %v2958_v48 = vadd.f32 %v2957_v1, %v2938_v63 }
 0x54d   :  { %v2978_v5 = vadd.f32 %v2977_v0, %v2958_v48 }
 0x54f   :  { %2983 = vst [vmem:[#allocation8 + $0x18] sm:$0xff] %v2978_v5 }
 0x550   :  { %2994 = dma.vmem_to_hbm [thread:$0]  %s2990_s2, 512, %s2992_s30, [#allocation4]  }
 0x551   :  { %3158 = dma.done.wait [#allocation4], 512  }
 0x552   :  { %3159 = vsyncadd [#allocation4], 4294966784 }
 0x553   :  { %2999 = vsyncpa [#allocation3], 1 }
 0x554   :  { %3000 = vsyncpa [#allocation6], 1 }
 0x555   :  { %3001 = vsyncpa [#allocation4], 1 }

</bundles_post_ra>
